<compile_context>
chip_gen: v6e
topology: v6e:2x2x1
jax: 0.10.0
libtpu: 0.0.40
codegen_flags: <defaults>
</compile_context>

<pallas_src>
import functools

import jax
import jax.numpy as jnp
from jax.experimental import pallas as pl
from jax.experimental.pallas import tpu as pltpu

CLASS_NUMBERS = 10   # config.class_numbers (synthetic, deterministic choice)
IN_FEATURES = 1280
LANE = 128
SUBLANE = 8
DEFAULT_TM = 2048
VMEM_LIMIT_BYTES = 48 * 1024 * 1024


def _round_up(x, m):
    return ((x + m - 1) // m) * m


def prepare_classifier_params(w, b):
    """One-time parameter prep, hoisted out of the forward path.

    w: (N, K) PyTorch-layout weight, b: (N,) bias.
    Returns (w_t_pad: (K, n_pad), b_pad: (1, n_pad)) with the class dim zero
    padded to a lane multiple so the in-kernel matmul runs on 128-wide tiles.
    """
    n, _ = w.shape
    n_pad = _round_up(n, LANE)
    w_t_pad = jnp.pad(w.T, ((0, 0), (0, n_pad - n)))
    b_pad = jnp.pad(b, (0, n_pad - n)).reshape(1, n_pad)
    return w_t_pad, b_pad


def _linear_kernel(x_ref, w_ref, b_ref, o_ref, *, n_real):
    # x_ref: (tm, K), w_ref: (K, n_pad), b_ref: (1, n_pad), o_ref: (tm, n_real)
    prec = (jax.lax.Precision.HIGHEST
            if x_ref.dtype == jnp.float32 else jax.lax.Precision.DEFAULT)
    acc = jnp.dot(x_ref[...], w_ref[...],
                  preferred_element_type=jnp.float32, precision=prec)
    acc = acc + b_ref[...]
    # Store only the real class columns: narrow masked store (~1% of traffic),
    # and no padded (B, 128) writeback + slice pass afterwards.
    o_ref[...] = acc[:, :n_real].astype(o_ref.dtype)


def classifier_forward(x, w_t_pad, b_pad, *, class_numbers=CLASS_NUMBERS,
                       tm=DEFAULT_TM):
    """x: (B, 1280) -> (B, class_numbers), using pre-prepared padded params."""
    B, K = x.shape
    k2, n_pad = w_t_pad.shape
    assert k2 == K and b_pad.shape == (1, n_pad)
    N = class_numbers

    # Megacore-aware batch tiling: aim for >= 2 grid steps so both v7x
    # TensorCores get work; never below one sublane group.  No padding of x --
    # the last block may overhang B and is handled by masked boundary writes.
    tm_eff = max(SUBLANE, min(tm, _round_up(pl.cdiv(B, 2), SUBLANE)))
    num_tiles = pl.cdiv(B, tm_eff)

    cost = pl.CostEstimate(
        flops=2 * B * K * n_pad,
        transcendentals=0,
        bytes_accessed=(x.size * x.dtype.itemsize
                        + B * N * x.dtype.itemsize
                        + w_t_pad.size * w_t_pad.dtype.itemsize
                        + b_pad.size * b_pad.dtype.itemsize),
    )

    kernel = functools.partial(_linear_kernel, n_real=N)

    return pl.pallas_call(
        kernel,
        out_shape=jax.ShapeDtypeStruct((B, N), x.dtype),
        grid_spec=pltpu.PrefetchScalarGridSpec(
            num_scalar_prefetch=0,
            grid=(num_tiles,),
            in_specs=[
                pl.BlockSpec((tm_eff, K), lambda i: (i, 0)),   # streamed x tiles
                pl.BlockSpec((K, n_pad), lambda i: (0, 0)),    # resident weight
                pl.BlockSpec((1, n_pad), lambda i: (0, 0)),    # resident bias
            ],
            out_specs=pl.BlockSpec((tm_eff, N), lambda i: (i, 0)),
        ),
        compiler_params=pltpu.CompilerParams(
            dimension_semantics=("parallel",),   # batch axis shards across TCs
            vmem_limit_bytes=VMEM_LIMIT_BYTES,
        ),
        cost_estimate=cost,
    )(x, w_t_pad, b_pad)


def reference_forward(x, w, b):
    return x @ w.T + b[None, :]


if __name__ == "__main__":
    key = jax.random.PRNGKey(0)
    kx, kw, kb = jax.random.split(key, 3)

    batch = 8
    x = jax.random.normal(kx, (batch, IN_FEATURES), dtype=jnp.float32)

    # Deterministic PyTorch-style Linear init: W (N, K), b (N,).
    bound = 1.0 / (IN_FEATURES ** 0.5)
    w = jax.random.uniform(kw, (CLASS_NUMBERS, IN_FEATURES),
                           minval=-bound, maxval=bound, dtype=jnp.float32)
    b = jax.random.uniform(kb, (CLASS_NUMBERS,),
                           minval=-bound, maxval=bound, dtype=jnp.float32)

    # One-time parameter prep (transpose + lane padding hoisted out of forward).
    w_t_pad, b_pad = prepare_classifier_params(w, b)

    out = jax.block_until_ready(classifier_forward(x, w_t_pad, b_pad))
    ref = reference_forward(x, w, b)
    assert out.shape == (batch, CLASS_NUMBERS)
    assert jnp.allclose(out, ref, atol=1e-4, rtol=1e-4)

    # Ragged batch exercises the cdiv grid + masked last block (no jnp.pad of x).
    x2 = jax.random.normal(kx, (13, IN_FEATURES), dtype=jnp.float32)
    out2 = jax.block_until_ready(classifier_forward(x2, w_t_pad, b_pad))
    assert out2.shape == (13, CLASS_NUMBERS)
    assert jnp.allclose(out2, reference_forward(x2, w, b), atol=1e-4, rtol=1e-4)

    print("KERNEL_OK")
</pallas_src>

<mosaic_0001>
module attributes {stable_mosaic.version = 11 : i64} {
  func.func @_linear_kernel(%arg0: i32, %arg1: memref<8x1280xf32, #tpu.memory_space<vmem>>, %arg2: memref<1280x128xf32, #tpu.memory_space<vmem>>, %arg3: memref<1x128xf32, #tpu.memory_space<vmem>>, %arg4: memref<8x10xf32, #tpu.memory_space<vmem>>) attributes {dimension_semantics = [#tpu.dimension_semantics<parallel>], iteration_bounds = array<i64: 1>, scalar_prefetch = 0 : i64, scratch_operands = 0 : i64, tpu.core_type = #tpu.core_type<tc>, window_params = [{transform_indices = @transform_0, window_bounds = array<i64: 8, 1280>}, {pipeline_mode = #tpu.pipeline_mode<synchronous>, transform_indices = @transform_1, window_bounds = array<i64: 1280, 128>}, {pipeline_mode = #tpu.pipeline_mode<synchronous>, transform_indices = @transform_2, window_bounds = array<i64: 1, 128>}, {transform_indices = @transform_3, window_bounds = array<i64: 8, 10>}]} {
    %c0 = arith.constant 0 : index
    %c0_0 = arith.constant 0 : index
    %0 = vector.load %arg1[%c0, %c0_0] : memref<8x1280xf32, #tpu.memory_space<vmem>>, vector<8x1280xf32>
    %c0_1 = arith.constant 0 : index
    %c0_2 = arith.constant 0 : index
    %1 = vector.load %arg2[%c0_1, %c0_2] : memref<1280x128xf32, #tpu.memory_space<vmem>>, vector<1280x128xf32>
    %cst = arith.constant dense<0.000000e+00> : vector<8x128xf32>
    %2 = tpu.matmul %0, %1, %cst {dimension_numbers = #tpu.dot_dimension_numbers<[1], [0], [0], [1], [0, 0, 1, 1], [], []>, precision = #tpu.contract_precision<fp32>} : vector<8x1280xf32>, vector<1280x128xf32>, vector<8x128xf32> -> vector<8x128xf32>
    %c0_3 = arith.constant 0 : index
    %c0_4 = arith.constant 0 : index
    %3 = vector.load %arg3[%c0_3, %c0_4] : memref<1x128xf32, #tpu.memory_space<vmem>>, vector<1x128xf32>
    %4 = vector.broadcast %3 : vector<1x128xf32> to vector<8x128xf32>
    %5 = arith.addf %2, %4 : vector<8x128xf32>
    %6 = vector.extract_strided_slice %5 {offsets = [0, 0], sizes = [8, 10], strides = [1, 1]} : vector<8x128xf32> to vector<8x10xf32>
    %c0_5 = arith.constant 0 : index
    %c0_6 = arith.constant 0 : index
    %7 = vector.load %arg4[%c0_5, %c0_6] : memref<8x10xf32, #tpu.memory_space<vmem>>, vector<8x10xf32>
    tpu.vector_store %arg4[%c0_5, %c0_6], %6 {strides = array<i32>} : memref<8x10xf32, #tpu.memory_space<vmem>>, vector<8x10xf32>,
    return
  }
  func.func @transform_0(%arg0: i32) -> (i32, i32) {
    %c0_i32 = arith.constant 0 : i32
    %c0_i32_0 = arith.constant 0 : i32
    return %arg0, %c0_i32 : i32, i32
  }
  func.func @transform_1(%arg0: i32) -> (i32, i32) {
    %c0_i32 = arith.constant 0 : i32
    %c0_i32_0 = arith.constant 0 : i32
    %c0_i32_1 = arith.constant 0 : i32
    return %c0_i32, %c0_i32_0 : i32, i32
  }
  func.func @transform_2(%arg0: i32) -> (i32, i32) {
    %c0_i32 = arith.constant 0 : i32
    %c0_i32_0 = arith.constant 0 : i32
    %c0_i32_1 = arith.constant 0 : i32
    return %c0_i32, %c0_i32_0 : i32, i32
  }
  func.func @transform_3(%arg0: i32) -> (i32, i32) {
    %c0_i32 = arith.constant 0 : i32
    %c0_i32_0 = arith.constant 0 : i32
    return %arg0, %c0_i32 : i32, i32
  }
}

</mosaic_0001>

<bundles_post_ra>
// kernel: tpu_custom_call.1
= control target key start
LH: loop header
LB: loop body
LE: loop exit
PB: predicated region body
PF: predicated region fallthrough
CT: control target
= control target key end

     0   :  { %8 = vsyncpa [#allocation3], 0  ;;  %s8610_s0 = inlined_call_operand.hbm [shape: f32[8,1280], index: 0, kind: input, shape index: {}]   ;;  %s8611_s1 = inlined_call_operand.hbm [shape: f32[1280,128], index: 1, kind: input, shape index: {}]   ;;  %s8612_s2 = inlined_call_operand.vmem [shape: f32[1,128], index: 2, kind: input, shape index: {}]   ;;  %s8613_s3 = inlined_call_operand.hbm [shape: f32[8,10], index: 3, kind: output, shape index: {}]  }
   0x1   :  { %9 = vsyncpa [#allocation6], 0 }
   0x2   :  { %10 = vsyncpa [#allocation4], 0  ;;  %s5668_s12 = smov [#allocation2]   ;;  %s5669_s14 = smov [#allocation5]  }
   0x3   :  { %s17_s13 = sshll.u32 %s5668_s12, 4  ;;  %s26_s15 = sshll.u32 %s5669_s14, 4  ;;  %s18_s13 = int_to_ptr.vmem [resolvable:$true] %s17_s13  ;;  %s27_s15 = int_to_ptr.vmem [resolvable:$true] %s26_s15 }
   0x4   :  { %s5610_s16 = scalar_lea.vmem %s18_s13, 1280  ;;  %p5615_p1 = scmp.lt.s32.totalorder %s18_s13, %s18_s13 }
   0x5   :  { %p5611_p0 = scmp.ne.s32.totalorder %s18_s13, %s5610_s16  ;;  %p5616_p2 = scmp.lt.s32.totalorder %s5610_s16, %s5610_s16 }
   0x7   :  { %p5617_p3 = por %p5616_p2, %p5615_p1 }
   0x9   :  { %p5618_p4 = pnand %p5617_p3, %p5611_p0 }
   0xb   :  { %5621 = shalt.err (!%p5618_p4)
}
   0xc   :  { %20 = dma.hbm_to_vmem [thread:$0]  %s8610_s0, 1280, %s18_s13, [#allocation3]  }
   0xd   :  { %s5630_s19 = scalar_lea.vmem %s27_s15, 20480  ;;  %p5635_p6 = scmp.lt.s32.totalorder %s27_s15, %s27_s15 }
   0xe   :  { %p5631_p5 = scmp.ne.s32.totalorder %s27_s15, %s5630_s19  ;;  %p5636_p7 = scmp.lt.s32.totalorder %s5630_s19, %s5630_s19 }
  0x10   :  { %p5637_p8 = por %p5636_p7, %p5635_p6 }
  0x12   :  { %p5638_p9 = pnand %p5637_p8, %p5631_p5 }
  0x14   :  { %5641 = shalt.err (!%p5638_p9)
}
  0x15   :  { %s5670_s20 = smov 128   ;;  %s5671_s21 = smov 8  }
  0x16   :  { %32 = dma.hbm_to_vmem [thread:$0]  %s8611_s1, 20480, %s27_s15, [#allocation6], %s5670_s20, %s5670_s20, %s5671_s21  }
  0x17   :  { %5662 = dma.done.wait [#allocation3], 1280  }
  0x18   :  { %5663 = vsyncadd [#allocation3], 4294966016 }
  0x19   :  { %5664 = dma.done.wait [#allocation6], 20480  }
  0x1a   :  { %5665 = vsyncadd [#allocation6], 4294946816  ;;  %v82_v0 = vld [vmem:[#allocation5 + $0xf8] sm:$0xff]  ;;  %v81_v2 = vld [vmem:[#allocation5 + $0xf0] sm:$0xff]  ;;  %vm4528_vm0 = vcmask 80896  }
  0x1b   :  { %v66_v1 = vld [vmem:[#allocation5 + $0x78] sm:$0xff]  ;;  %v5699_v3 = vand.u32 4294901760, %v82_v0  ;;  %v5703_v5 = vand.u32 4294901760, %v81_v2  ;;  %v65_v6 = vld [vmem:[#allocation5 + $0x70] sm:$0xff]  ;;  %v80_v7 = vld [vmem:[#allocation5 + $0xe8] sm:$0xff] }
  0x1c   :  { %v5701_v4 = vand.u32 4294901760, %v66_v1  ;;  %v64_v8 = vld [vmem:[#allocation5 + $0x68] sm:$0xff]  ;;  %v5705_v9 = vand.u32 4294901760, %v65_v6  ;;  %v5707_v10 = vand.u32 4294901760, %v80_v7  ;;  %v79_v12 = vld [vmem:[#allocation5 + $0xe0] sm:$0xff]  ;;  %v78_v14 = vld [vmem:[#allocation5 + $0xd8] sm:$0xff] }
  0x1d   :  { %v5709_v11 = vand.u32 4294901760, %v64_v8  ;;  %v63_v13 = vld [vmem:[#allocation5 + $0x60] sm:$0xff]  ;;  %4547 = vmatprep.subr.mxu0 %v5699_v3  ;;  %v5712_v15 = vand.u32 4294901760, %v79_v12  ;;  %v5716_v17 = vand.u32 4294901760, %v78_v14  ;;  %v5719_v18 = vsub.f32 %v82_v0, %v5699_v3  ;;  %v5721_v19 = vld [vmem:[#allocation5 + $0x58] sm:$0xff]  ;;  %v5723_v20 = vld [vmem:[#allocation5 + $0xd0] sm:$0xff] }
  0x1e   :  { %v5714_v16 = vand.u32 4294901760, %v63_v13  ;;  %v5725_v21 = vld [vmem:[#allocation5 + $0x50] sm:$0xff]  ;;  %4548 = vmatpush3.msra.mxu0 %v5701_v4  ;;  %v5729_v22 = vand.u32 4294901760, %v5721_v19  ;;  %v5732_v23 = vsub.f32 %v66_v1, %v5701_v4  ;;  %v5735_v24 = vand.u32 4294901760, %v5723_v20  ;;  %v5740_v26 = vld [vmem:[#allocation5 + $0xc8] sm:$0xff]  ;;  %v5744_v28 = vld [vmem:[#allocation5 + $0xc0] sm:$0xff] }
  0x1f   :  { %v5738_v25 = vsub.f32 %v81_v2, %v5703_v5  ;;  %v5742_v27 = vld [vmem:[#allocation5 + $0x48] sm:$0xff]  ;;  %4549 = vmatprep.subr.mxu0 %v5703_v5  ;;  %v8627_v29 = vand.u32 4294901760, %v5719_v18  ;;  %v5749_v30 = vand.u32 4294901760, %v5725_v21  ;;  %v5752_v31 = vsub.f32 %v65_v6, %v5705_v9  ;;  %v5766_v37 = vld [vmem:[#allocation5 + $0x40] sm:$0xff]  ;;  %v5790_v46 = vld [vmem:[#allocation5 + $0xb8] sm:$0xff] }
  0x20   :  { %8950 = vst [vmem:[#allocation11_spill] sm:$0xff] %v5735_v24  ;;  %v5755_v32 = vand.u32 4294901760, %v5740_v26  ;;  %4550 = vmatpush3.msra.mxu0 %v5705_v9  ;;  %v8625_v33 = vand.u32 4294901760, %v5732_v23  ;;  %v5761_v35 = vsub.f32 %v80_v7, %v5707_v10  ;;  %v5764_v36 = vand.u32 4294901760, %v5742_v27  ;;  %v5800_v51 = vld [vmem:[#allocation5 + $0x38] sm:$0xff]  ;;  %v5807_v56 = vld [vmem:[#allocation5 + $0xb0] sm:$0xff] }
  0x21   :  { %8951 = vst [vmem:[#allocation12_spill] sm:$0xff] %v5749_v30  ;;  %v8624_v34 = vand.u32 4294901760, %v5738_v25  ;;  %4551 = vmatprep.subr.mxu0 %v5707_v10  ;;  %v446_v38 = vsub.f32 %v5719_v18, %v8627_v29  ;;  %v8622_v39 = vand.u32 4294901760, %v5752_v31  ;;  %v5774_v40 = vsub.f32 %v64_v8, %v5709_v11  ;;  %v5819_v61 = vld [vmem:[#allocation5 + $0x30] sm:$0xff]  ;;  %v5831_v2 = vld [vmem:[#allocation5 + $0xa8] sm:$0xff] }
  0x22   :  { %8952 = vst [vmem:[#allocation13_spill] sm:$0xff] %v5755_v32  ;;  %8953 = vst [vmem:[#allocation14_spill] sm:$0xff] %v5764_v36  ;;  %v5777_v41 = vand.u32 4294901760, %v5744_v28  ;;  %4552 = vmatpush3.msra.mxu0 %v5709_v11  ;;  %v334_v42 = vsub.f32 %v5732_v23, %v8625_v33  ;;  %v8620_v44 = vand.u32 4294901760, %v5761_v35  ;;  %v5788_v45 = vsub.f32 %v79_v12, %v5712_v15 }
  0x23   :  { %v453_v43 = vsub.f32 %v5738_v25, %v8624_v34  ;;  %4553 = vmatprep.subr.mxu0 %v5712_v15  ;;  %v447_v47 = vand.u32 4294901760, %v446_v38  ;;  %v341_v48 = vsub.f32 %v5752_v31, %v8622_v39  ;;  %v8619_v49 = vand.u32 4294901760, %v5774_v40  ;;  %v5922_v39 = vld [vmem:[#allocation5 + $0x90] sm:$0xff] }
  0x24   :  { %8954 = vst [vmem:[#allocation15_spill] sm:$0xff] %v5777_v41  ;;  %v5798_v50 = vand.u32 4294901760, %v5766_v37  ;;  %4554 = vmatpush3.msra.mxu0 %v5714_v16  ;;  %v335_v52 = vand.u32 4294901760, %v334_v42  ;;  %v460_v54 = vsub.f32 %v5761_v35, %v8620_v44  ;;  %v8617_v55 = vand.u32 4294901760, %v5788_v45  ;;  %v5932_v34 = vld [vmem:[#allocation5 + $0x10] sm:$0xff] }
  0x25   :  { %v454_v53 = vand.u32 4294901760, %v453_v43  ;;  %4555 = vmatprep.subr.mxu0 %v5716_v17  ;;  %4582 = vmatprep.subr.mxu1 %v447_v47  ;;  %v342_v57 = vand.u32 4294901760, %v341_v48  ;;  %v348_v58 = vsub.f32 %v5774_v40, %v8619_v49  ;;  %v5814_v59 = vsub.f32 %v63_v13, %v5714_v16  ;;  %v5842_v13 = vld [vmem:[#allocation5 + $0x28] sm:$0xff]  ;;  %v5909_v49 = vld [vmem:[#allocation5 + $0x18] sm:$0xff] }
  0x26   :  { %8955 = vst [vmem:[#allocation16_spill] sm:$0xff] %v5798_v50  ;;  %v5817_v60 = vand.u32 4294901760, %v5790_v46  ;;  %4556 = vmatpush3.msra.mxu0 %v5729_v22  ;;  %4583 = vmatpush3.msra.mxu1 %v335_v52  ;;  %v461_v62 = vand.u32 4294901760, %v460_v54  ;;  %v467_v63 = vsub.f32 %v5788_v45, %v8617_v55  ;;  %v5826_v0 = vsub.f32 %v78_v14, %v5716_v17 }
  0x27   :  { %v5829_v1 = vand.u32 4294901760, %v5800_v51  ;;  %4557 = vmatprep.subr.mxu0 %v5735_v24  ;;  %4584 = vmatprep.subr.mxu1 %v454_v53  ;;  %v349_v6 = vand.u32 4294901760, %v348_v58  ;;  %v8615_v7 = vand.u32 4294901760, %v5814_v59  ;;  %v5837_v8 = vsub.f32 %v5721_v19, %v5729_v22 }
  0x28   :  { %8956 = vst [vmem:[#allocation17_spill] sm:$0xff] %v5817_v60  ;;  %v5840_v12 = vand.u32 4294901760, %v5807_v56  ;;  %4558 = vmatpush3.msra.mxu0 %v5749_v30  ;;  %4585 = vmatpush3.msra.mxu1 %v342_v57  ;;  %v468_v14 = vand.u32 4294901760, %v467_v63  ;;  %v8614_v38 = vand.u32 4294901760, %v5826_v0  ;;  %v5848_v42 = vsub.f32 %v5723_v20, %v5735_v24  ;;  %v5865_v20 = vld [vmem:[#allocation5 + $0xa0] sm:$0xff] }
  0x29   :  { %8957 = vst [vmem:[#allocation18_spill] sm:$0xff] %v5829_v1  ;;  %v5851_v43 = vand.u32 4294901760, %v5819_v61  ;;  %4559 = vmatprep.subr.mxu0 %v5755_v32  ;;  %4586 = vmatprep.subr.mxu1 %v461_v62  ;;  %v355_v19 = vsub.f32 %v5814_v59, %v8615_v7  ;;  %v8616_v47 = vand.u32 4294901760, %v5837_v8  ;;  %v5860_v48 = vsub.f32 %v5725_v21, %v5749_v30 }
  0x2a   :  { %8958 = vst [vmem:[#allocation19_spill] sm:$0xff] %v5840_v12  ;;  %v5863_v52 = vand.u32 4294901760, %v5831_v2  ;;  %4560 = vmatpush3.msra.mxu0 %v5764_v36  ;;  %4587 = vmatpush3.msra.mxu1 %v349_v6  ;;  %v474_v53 = vsub.f32 %v5826_v0, %v8614_v38  ;;  %v8618_v54 = vand.u32 4294901760, %v5848_v42  ;;  %v5874_v57 = vsub.f32 %v5740_v26, %v5755_v32  ;;  %v5888_v38 = vld [vmem:[#allocation5 + $0x20] sm:$0xff] }
  0x2b   :  { %8959 = vst [vmem:[#allocation20_spill] sm:$0xff] %v5851_v43  ;;  %v5877_v21 = vand.u32 4294901760, %v5842_v13  ;;  %4561 = vmatprep.subr.mxu0 %v5777_v41  ;;  %4588 = vmatprep.subr.mxu1 %v468_v14  ;;  %v356_v58 = vand.u32 4294901760, %v355_v19  ;;  %v362_v62 = vsub.f32 %v5837_v8, %v8616_v47  ;;  %v8621_v63 = vand.u32 4294901760, %v5860_v48  ;;  %v5898_v47 = vld [vmem:[#allocation5 + $0x98] sm:$0xff] }
  0x2c   :  { %8960 = vst [vmem:[#allocation21_spill] sm:$0xff] %v5863_v52  ;;  %v5886_v6 = vsub.f32 %v5742_v27, %v5764_v36  ;;  %4562 = vmatpush3.msra.mxu0 %v5798_v50  ;;  %v475_v26 = vand.u32 4294901760, %v474_v53  ;;  %v481_v14 = vsub.f32 %v5848_v42, %v8618_v54  ;;  %v8623_v19 = vand.u32 4294901760, %v5874_v57  ;;  %v42_v36 = vld [vmem:[#allocation2 + $0x8] sm:$0xff] }
  0x2d   :  { %8961 = vst [vmem:[#allocation22_spill] sm:$0xff] %v5877_v21  ;;  %v5896_v7 = vand.u32 4294901760, %v5865_v20  ;;  %4589 = vmatpush3.msra.mxu1 %v356_v58  ;;  %4563 = vmatprep.subr.mxu0 %v5817_v60  ;;  %v363_v27 = vand.u32 4294901760, %v362_v62  ;;  %v369_v55 = vsub.f32 %v5860_v48, %v8621_v63  ;;  %v5907_v54 = vsub.f32 %v5744_v28, %v5777_v41 }
  0x2e   :  { %v8626_v53 = vand.u32 4294901760, %v5886_v6  ;;  %4590 = vmatprep.subr.mxu1 %v475_v26  ;;  %4564 = vmatpush3.msra.mxu0 %v5829_v1  ;;  %v482_v44 = vand.u32 4294901760, %v481_v14  ;;  %v488_v58 = vsub.f32 %v5874_v57, %v8623_v19  ;;  %v5916_v62 = vand.u32 4294901760, %v5888_v38 }
  0x2f   :  { %8962 = vst [vmem:[#allocation23_spill] sm:$0xff] %v5896_v7  ;;  %v5920_v63 = vsub.f32 %v5766_v37, %v5798_v50  ;;  %4591 = vmatpush3.msra.mxu1 %v363_v27  ;;  %4565 = vmatprep.subr.mxu0 %v5840_v12  ;;  %v370_v28 = vand.u32 4294901760, %v369_v55  ;;  %v8630_v14 = vand.u32 4294901760, %v5907_v54  ;;  %v5930_v19 = vand.u32 4294901760, %v5898_v47 }
  0x30   :  { %8963 = vst [vmem:[#allocation24_spill] sm:$0xff] %v5916_v62  ;;  %v376_v26 = vsub.f32 %v5886_v6, %v8626_v53  ;;  %4592 = vmatprep.subr.mxu1 %v482_v44  ;;  %4566 = vmatpush3.msra.mxu0 %v5851_v43  ;;  %v489_v37 = vand.u32 4294901760, %v488_v58  ;;  %v5938_v55 = vsub.f32 %v5790_v46, %v5817_v60  ;;  %v5941_v33 = vand.u32 4294901760, %v5909_v49  ;;  %v5943_v53 = vld [vmem:[#allocation5 + $0x88] sm:$0xff] }
  0x31   :  { %v8633_v27 = vand.u32 4294901760, %v5920_v63  ;;  %4593 = vmatpush3.msra.mxu1 %v370_v28  ;;  %4567 = vmatprep.subr.mxu0 %v5863_v52  ;;  %v495_v44 = vsub.f32 %v5907_v54, %v8630_v14  ;;  %v5951_v58 = vsub.f32 %v5800_v51, %v5829_v1  ;;  %v5954_v46 = vand.u32 4294901760, %v5922_v39  ;;  %v5968_v51 = vld [vmem:[#allocation5 + $0x8] sm:$0xff] }
  0x32   :  { %8964 = vst [vmem:[#allocation25_spill] sm:$0xff] %v5941_v33  ;;  %v377_v29 = vand.u32 4294901760, %v376_v26  ;;  %4594 = vmatprep.subr.mxu1 %v489_v37  ;;  %4568 = vmatpush3.msra.mxu0 %v5877_v21  ;;  %v5963_v60 = vsub.f32 %v5807_v56, %v5840_v12  ;;  %v5966_v14 = vand.u32 4294901760, %v5932_v34  ;;  %v5977_v26 = vand.u32 4294901760, %v5943_v53  ;;  %v5979_v56 = vld [vmem:[#allocation5 + $0x80] sm:$0xff] }
  0x33   :  { %8965 = vst [vmem:[#allocation26_spill] sm:$0xff] %v5954_v46  ;;  %v383_v28 = vsub.f32 %v5920_v63, %v8633_v27  ;;  %4569 = vmatprep.subr.mxu0 %v5896_v7  ;;  %v496_v37 = vand.u32 4294901760, %v495_v44  ;;  %v5974_v27 = vsub.f32 %v5819_v61, %v5851_v43  ;;  %v8968_v50 = vand.u32 4294901760, %v5938_v55  ;;  %v6002_v44 = vld [vmem:[#allocation5] sm:$0xff] }
  0x34   :  { %8966 = vst [vmem:[#allocation27_spill] sm:$0xff] %v5966_v14  ;;  %4595 = vmatpush3.msra.mxu1 %v377_v29  ;;  %8967 = vst [vmem:[#allocation28_spill] sm:$0xff] %v5977_v26  ;;  %4570 = vmatpush3.msra.mxu0 %v5916_v62  ;;  %v5988_v1 = vsub.f32 %v5831_v2, %v5863_v52  ;;  %v8970_v61 = vand.u32 4294901760, %v5951_v58  ;;  %v6010_v41 = vand.u32 4294901760, %v5979_v56  ;;  %v6026_v24 = vand.u32 4294901760, %v6002_v44 }
  0x35   :  { %v384_v12 = vand.u32 4294901760, %v383_v28  ;;  %v502_v29 = vsub.f32 %v5938_v55, %v8968_v50  ;;  %4596 = vmatprep.subr.mxu1 %v496_v37  ;;  %4571 = vmatprep.subr.mxu0 %v5930_v19  ;;  %v5996_v28 = vand.u32 4294901760, %v5968_v51  ;;  %v6000_v50 = vsub.f32 %v5842_v13, %v5877_v21 }
  0x36   :  { %8969 = vst [vmem:[#allocation29_spill] sm:$0xff] %v5988_v1  ;;  %v390_v43 = vsub.f32 %v5951_v58, %v8970_v61  ;;  %4572 = vmatpush3.msra.mxu0 %v5941_v33  ;;  %v8971_v37 = vand.u32 4294901760, %v5963_v60  ;;  %v8972_v13 = vand.u32 4294901760, %v5974_v27  ;;  %v6019_v21 = vsub.f32 %v5865_v20, %v5896_v7 }
  0x37   :  { %4597 = vmatpush3.msra.mxu1 %v384_v12  ;;  %v503_v2 = vand.u32 4294901760, %v502_v29  ;;  %4573 = vmatprep.subr.mxu0 %v5954_v46  ;;  %v8973_v30 = vand.u32 4294901760, %v5988_v1  ;;  %v8974_v20 = vand.u32 4294901760, %v6000_v50  ;;  %v6037_v7 = vand.u32 4294901760, %v42_v36 }
  0x38   :  { %v509_v52 = vsub.f32 %v5963_v60, %v8971_v37  ;;  %v391_v32 = vand.u32 4294901760, %v390_v43  ;;  %v397_v12 = vsub.f32 %v5974_v27, %v8972_v13  ;;  %v41_v37 = vld [vmem:[#allocation2] sm:$0xff]  ;;  %4574 = vmatpush3.msra.mxu0 %v5966_v14  ;;  %v6030_v13 = vsub.f32 %v5888_v38, %v5916_v62 }
  0x39   :  { %4598 = vmatprep.subr.mxu1 %v503_v2  ;;  %v516_v43 = vsub.f32 %v5988_v1, %v8973_v30  ;;  %4575 = vmatprep.subr.mxu0 %v5977_v26  ;;  %v8658_v2 = vand.u32 4294901760, %v6019_v21  ;;  %8975 = vst [vmem:[#allocation30_spill] sm:$0xff] %v6037_v7  ;;  %v6045_v38 = vand.u32 4294901760, %v41_v37 }
  0x3a   :  { %v510_v61 = vand.u32 4294901760, %v509_v52  ;;  %4599 = vmatpush3.msra.mxu1 %v391_v32  ;;  %v398_v29 = vand.u32 4294901760, %v397_v12  ;;  %v404_v52 = vsub.f32 %v6000_v50, %v8974_v20  ;;  %4576 = vmatpush3.msra.mxu0 %v5996_v28  ;;  %v8659_v1 = vand.u32 4294901760, %v6030_v13 }
  0x3b   :  { %v517_v30 = vand.u32 4294901760, %v516_v43  ;;  %v6043_v32 = vsub.f32 %v5898_v47, %v5930_v19  ;;  %8976 = vst [vmem:[#allocation31_spill] sm:$0xff] %v6045_v38  ;;  %4577 = vmatprep.subr.mxu0 %v6010_v41  ;;  %v523_v20 = vsub.f32 %v6019_v21, %v8658_v2  ;;  %v6056_v43 = vsub.f32 %v5909_v49, %v5941_v33 }
  0x3c   :  { %4600 = vmatprep.subr.mxu1 %v510_v61  ;;  %v405_v12 = vand.u32 4294901760, %v404_v52  ;;  %v6052_v61 = vsub.f32 %v42_v36, %v6037_v7  ;;  %4578 = vmatpush3.msra.mxu0 %v6026_v24  ;;  %v411_v47 = vsub.f32 %v6030_v13, %v8659_v1  ;;  %v6064_v52 = vsub.f32 %v41_v37, %v6045_v38 }
  0x3d   :  { %4601 = vmatpush3.msra.mxu1 %v398_v29  ;;  %v6068_v36 = vsub.f32 %v5922_v39, %v5954_v46  ;;  %v524_v2 = vand.u32 4294901760, %v523_v20  ;;  %4617 = vmatprep.subr.mxu0 %v5719_v18  ;;  %v6075_v1 = vsub.f32 %v5932_v34, %v5966_v14  ;;  %v8977_v37 = vand.u32 4294901760, %v6043_v32 }
  0x3e   :  { %4602 = vmatprep.subr.mxu1 %v517_v30  ;;  %v8664_v49 = vand.u32 4294901760, %v6052_v61  ;;  %v8667_v30 = vand.u32 4294901760, %v6056_v43  ;;  %v412_v29 = vand.u32 4294901760, %v411_v47  ;;  %555 = vmatprep.mubr.f32.mxu1 %v6037_v7  ;;  %v6102_v14 = vsub.f32 %v5968_v51, %v5996_v28 }
  0x3f   :  { %4603 = vmatpush3.msra.mxu1 %v405_v12  ;;  %v530_v33 = vsub.f32 %v6043_v32, %v8977_v37  ;;  %v6092_v37 = vsub.f32 %v5943_v53, %v5977_v26  ;;  %v8978_v12 = vand.u32 4294901760, %v6064_v52  ;;  %v8979_v7 = vand.u32 4294901760, %v6068_v36 }
  0x40   :  { %4604 = vmatprep.subr.mxu1 %v524_v2  ;;  %v317_v20 = vsub.f32 %v6052_v61, %v8664_v49  ;;  %v418_v34 = vsub.f32 %v6056_v43, %v8667_v30  ;;  %8980 = vst [vmem:[#allocation32_spill] sm:$0xff] %v6102_v14  ;;  %v8981_v46 = vand.u32 4294901760, %v6075_v1 }
  0x41   :  { %4605 = vmatpush3.msra.mxu1 %v412_v29  ;;  %v531_v39 = vand.u32 4294901760, %v530_v33  ;;  %v323_v2 = vsub.f32 %v6064_v52, %v8978_v12  ;;  %v537_v49 = vsub.f32 %v6068_v36, %v8979_v7  ;;  %v8675_v33 = vand.u32 4294901760, %v6092_v37 }
  0x42   :  { %v318_v30 = vand.u32 4294901760, %v317_v20  ;;  %v419_v47 = vand.u32 4294901760, %v418_v34  ;;  %v425_v53 = vsub.f32 %v6075_v1, %v8981_v46  ;;  %v8674_v12 = vand.u32 4294901760, %v6102_v14 }
  0x43   :  { %4606 = vmatprep.subr.mxu1 %v531_v39  ;;  %v324_v29 = vand.u32 4294901760, %v323_v2  ;;  %v538_v26 = vand.u32 4294901760, %v537_v49  ;;  %v6111_v7 = vsub.f32 %v5979_v56, %v6010_v41  ;;  %v544_v20 = vsub.f32 %v6092_v37, %v8675_v33 }
  0x44   :  { %319 = vmatprep.mubr.f32.mxu0 %v318_v30  ;;  %4607 = vmatpush3.msra.mxu1 %v419_v47  ;;  %v426_v51 = vand.u32 4294901760, %v425_v53  ;;  %v6118_v46 = vsub.f32 %v6002_v44, %v6026_v24  ;;  %v432_v49 = vsub.f32 %v6102_v14, %v8674_v12  ;;  %v8984_v53 = vld [vmem:[#allocation11_spill] sm:$0xff]  ;;  %v8998_v33 = vand.u32 4294901760, %v5719_v18 }
  0x45   :  { %8982 = vst [vmem:[#allocation33_spill] sm:$0xff] %v6111_v7  ;;  %325 = vmatmul.mubr.f32.vlgmr.msra.gmra.mxu0 %v324_v29  ;;  %4608 = vmatprep.subr.mxu1 %v538_v26  ;;  %v8673_v56 = vand.u32 4294901760, %v6111_v7  ;;  %v545_v30 = vand.u32 4294901760, %v544_v20  ;;  %v8985_v29 = vld [vmem:[#allocation12_spill] sm:$0xff]  ;;  %v8987_v20 = vld [vmem:[#allocation13_spill] sm:$0xff]  ;;  %v8997_v12 = vld [vmem:[#allocation23_spill] sm:$0xff] }
  0x46   :  { %8983 = vst [vmem:[#allocation34_spill] sm:$0xff] %v6118_v46  ;;  %4618 = vmatpush3.msra.mxu0 %v5732_v23  ;;  %4609 = vmatpush3.msra.mxu1 %v426_v51  ;;  %v8672_v39 = vand.u32 4294901760, %v6118_v46  ;;  %v433_v34 = vand.u32 4294901760, %v432_v49  ;;  %v8986_v51 = vld [vmem:[#allocation29_spill] sm:$0xff]  ;;  %v8988_v49 = vld [vmem:[#allocation14_spill] sm:$0xff]  ;;  %v9006_v18 = vand.u32 4294901760, %v5761_v35 }
  0x47   :  { %4619 = vmatprep.subr.mxu0 %v5738_v25  ;;  %v551_v44 = vsub.f32 %v6111_v7, %v8673_v56  ;;  %692 = vmatprep.mubr.f32.mxu0 %v6052_v61  ;;  %v8996_v56 = vld [vmem:[#allocation22_spill] sm:$0xff] }
  0x48   :  { %4620 = vmatpush3.msra.mxu0 %v5752_v31  ;;  %4610 = vmatprep.subr.mxu1 %v545_v30  ;;  %v439_v26 = vsub.f32 %v6118_v46, %v8672_v39  ;;  %v8989_v30 = vld [vmem:[#allocation15_spill] sm:$0xff]  ;;  %v8995_v39 = vld [vmem:[#allocation21_spill] sm:$0xff] }
  0x49   :  { %4621 = vmatprep.subr.mxu0 %v5761_v35  ;;  %4611 = vmatpush3.msra.mxu1 %v433_v34  ;;  %v552_v47 = vand.u32 4294901760, %v551_v44  ;;  %v8990_v34 = vld [vmem:[#allocation16_spill] sm:$0xff]  ;;  %v8991_v44 = vld [vmem:[#allocation17_spill] sm:$0xff]  ;;  %v9011_v35 = vand.u32 4294901760, %v6064_v52 }
  0x4a   :  { %4622 = vmatpush3.msra.mxu0 %v5774_v40  ;;  %v440_v2 = vand.u32 4294901760, %v439_v26  ;;  %v8992_v26 = vld [vmem:[#allocation18_spill] sm:$0xff] }
  0x4b   :  { %4612 = vmatprep.subr.mxu1 %v552_v47  ;;  %4623 = vmatprep.subr.mxu0 %v5788_v45  ;;  %v8993_v47 = vld [vmem:[#allocation19_spill] sm:$0xff] }
  0x4c   :  { %4613 = vmatpush3.msra.mxu1 %v440_v2  ;;  %4624 = vmatpush3.msra.mxu0 %v5814_v59  ;;  %v8994_v2 = vld [vmem:[#allocation20_spill] sm:$0xff] }
  0x4d   :  { %557 = vmatmul.mubr.f32.vlgmr.msra.gmra.mxu1 %v6045_v38  ;;  %4625 = vmatprep.subr.mxu0 %v5826_v0  ;;  %v8999_v38 = vld [vmem:[#allocation25_spill] sm:$0xff] }
  0x4e   :  { %4652 = vmatprep.subr.mxu1 %v5699_v3  ;;  %4626 = vmatpush3.msra.mxu0 %v5837_v8 }
  0x4f   :  { %4653 = vmatpush3.msra.mxu1 %v5701_v4  ;;  %4627 = vmatprep.subr.mxu0 %v5848_v42 }
  0x50   :  { %4654 = vmatprep.subr.mxu1 %v5703_v5  ;;  %4628 = vmatpush3.msra.mxu0 %v5860_v48 }
  0x51   :  { %4655 = vmatpush3.msra.mxu1 %v5705_v9  ;;  %4629 = vmatprep.subr.mxu0 %v5874_v57 }
  0x52   :  { %4656 = vmatprep.subr.mxu1 %v5707_v10  ;;  %4630 = vmatpush3.msra.mxu0 %v5886_v6 }
  0x53   :  { %4657 = vmatpush3.msra.mxu1 %v5709_v11  ;;  %4631 = vmatprep.subr.mxu0 %v5907_v54 }
  0x54   :  { %4658 = vmatprep.subr.mxu1 %v5712_v15  ;;  %4632 = vmatpush3.msra.mxu0 %v5920_v63 }
  0x55   :  { %4659 = vmatpush3.msra.mxu1 %v5714_v16  ;;  %4633 = vmatprep.subr.mxu0 %v5938_v55 }
  0x56   :  { %4660 = vmatprep.subr.mxu1 %v5716_v17  ;;  %4634 = vmatpush3.msra.mxu0 %v5951_v58 }
  0x57   :  { %4661 = vmatpush3.msra.mxu1 %v5729_v22  ;;  %4635 = vmatprep.subr.mxu0 %v5963_v60 }
  0x58   :  { %4662 = vmatprep.subr.mxu1 %v8984_v53  ;;  %4636 = vmatpush3.msra.mxu0 %v5974_v27 }
  0x59   :  { %4663 = vmatpush3.msra.mxu1 %v8985_v29  ;;  %4637 = vmatprep.subr.mxu0 %v8986_v51 }
  0x5a   :  { %4664 = vmatprep.subr.mxu1 %v8987_v20  ;;  %4638 = vmatpush3.msra.mxu0 %v6000_v50 }
  0x5b   :  { %4665 = vmatpush3.msra.mxu1 %v8988_v49  ;;  %4639 = vmatprep.subr.mxu0 %v6019_v21 }
  0x5c   :  { %4666 = vmatprep.subr.mxu1 %v8989_v30  ;;  %4640 = vmatpush3.msra.mxu0 %v6030_v13 }
  0x5d   :  { %4667 = vmatpush3.msra.mxu1 %v8990_v34  ;;  %4641 = vmatprep.subr.mxu0 %v6043_v32 }
  0x5e   :  { %4668 = vmatprep.subr.mxu1 %v8991_v44  ;;  %4642 = vmatpush3.msra.mxu0 %v6056_v43 }
  0x5f   :  { %4669 = vmatpush3.msra.mxu1 %v8992_v26  ;;  %4643 = vmatprep.subr.mxu0 %v6068_v36 }
  0x60   :  { %4670 = vmatprep.subr.mxu1 %v8993_v47  ;;  %4644 = vmatpush3.msra.mxu0 %v6075_v1 }
  0x61   :  { %4671 = vmatpush3.msra.mxu1 %v8994_v2  ;;  %4645 = vmatprep.subr.mxu0 %v6092_v37 }
  0x62   :  { %4672 = vmatprep.subr.mxu1 %v8995_v39  ;;  %4646 = vmatpush3.msra.mxu0 %v6102_v14  ;;  %v9000_v14 = vand.u32 4294901760, %v5732_v23  ;;  %v9007_v23 = vand.u32 4294901760, %v5774_v40  ;;  %v9013_v40 = vand.u32 4294901760, %v5837_v8  ;;  %v98_v8 = vld [vmem:[#allocation5 + $0x178] sm:$0xff] }
  0x63   :  { %4673 = vmatpush3.msra.mxu1 %v8996_v56  ;;  %4647 = vmatprep.subr.mxu0 %v6111_v7  ;;  %v9001_v56 = vld [vmem:[#allocation26_spill] sm:$0xff]  ;;  %v9005_v7 = vld [vmem:[#allocation28_spill] sm:$0xff] }
  0x64   :  { %4674 = vmatprep.subr.mxu1 %v8997_v12  ;;  %4648 = vmatpush3.msra.mxu0 %v6118_v46  ;;  %v9002_v12 = vand.u32 4294901760, %v5738_v25  ;;  %v9003_v46 = vld [vmem:[#allocation27_spill] sm:$0xff]  ;;  %v9008_v25 = vand.u32 4294901760, %v5788_v45  ;;  %v9014_v45 = vand.u32 4294901760, %v5848_v42  ;;  %v9018_v42 = vand.u32 4294901760, %v5907_v54 }
  0x65   :  { %4675 = vmatpush3.msra.mxu1 %v5916_v62  ;;  %695 = vmatmul.mubr.f32.vlgmr.msra.gmra.mxu0 %v6064_v52  ;;  %v9004_v62 = vand.u32 4294901760, %v5752_v31  ;;  %v9009_v31 = vand.u32 4294901760, %v6052_v61  ;;  %v96_v54 = vld [vmem:[#allocation5 + $0x168] sm:$0xff] }
  0x66   :  { %4676 = vmatprep.subr.mxu1 %v5930_v19  ;;  %4687 = vmatprep.subr.mxu0 %v8998_v33  ;;  %v6261_v61 = vand.u32 4294901760, %v96_v54  ;;  %v9027_v33 = vand.u32 4294901760, %v6000_v50 }
  0x67   :  { %4677 = vmatpush3.msra.mxu1 %v8999_v38  ;;  %4688 = vmatpush3.msra.mxu0 %v9000_v14  ;;  %v9012_v14 = vand.u32 4294901760, %v5826_v0  ;;  %v9016_v0 = vand.u32 4294901760, %v5874_v57  ;;  %v113_v57 = vld [vmem:[#allocation5 + $0x1f0] sm:$0xff] }
  0x68   :  { %4678 = vmatprep.subr.mxu1 %v9001_v56  ;;  %4689 = vmatprep.subr.mxu0 %v9002_v12  ;;  %9024 = vst [vmem:[#allocation11_spill] sm:$0xff] %v6261_v61  ;;  %v6289_v50 = vsub.f32 %v96_v54, %v6261_v61  ;;  %v9046_v54 = vld [vmem:[#allocation23_spill] sm:$0xff] }
  0x69   :  { %4679 = vmatpush3.msra.mxu1 %v9003_v46  ;;  %4690 = vmatpush3.msra.mxu0 %v9004_v62  ;;  %v9010_v62 = vand.u32 4294901760, %v5814_v59  ;;  %v9015_v59 = vand.u32 4294901760, %v5860_v48 }
  0x6a   :  { %4680 = vmatprep.subr.mxu1 %v9005_v7  ;;  %4691 = vmatprep.subr.mxu0 %v9006_v18  ;;  %v94_v18 = vld [vmem:[#allocation5 + $0x158] sm:$0xff] }
  0x6b   :  { %4681 = vmatpush3.msra.mxu1 %v5996_v28  ;;  %4692 = vmatpush3.msra.mxu0 %v9007_v23 }
  0x6c   :  { %4682 = vmatprep.subr.mxu1 %v6010_v41  ;;  %4693 = vmatprep.subr.mxu0 %v9008_v25  ;;  %v93_v25 = vld [vmem:[#allocation5 + $0x150] sm:$0xff] }
  0x6d   :  { %4683 = vmatpush3.msra.mxu1 %v6026_v24  ;;  %799 = vmatprep.mubr.f32.mxu1 %v9009_v31  ;;  %v9032_v31 = vand.u32 4294901760, %v6056_v43  ;;  %v9037_v43 = vand.u32 4294901760, %v6075_v1 }
  0x6e   :  { %4694 = vmatpush3.msra.mxu0 %v9010_v62  ;;  %803 = vmatmul.mubr.f32.vlgmr.msra.gmra.mxu1 %v9011_v35  ;;  %v109_v35 = vld [vmem:[#allocation5 + $0x1d0] sm:$0xff] }
  0x6f   :  { %4695 = vmatprep.subr.mxu0 %v9012_v14  ;;  %4722 = vmatprep.subr.mxu1 %v5699_v3  ;;  %v9017_v3 = vand.u32 4294901760, %v5886_v6  ;;  %v9021_v6 = vand.u32 4294901760, %v5951_v58  ;;  %v95_v58 = vld [vmem:[#allocation5 + $0x160] sm:$0xff] }
  0x70   :  { %4696 = vmatpush3.msra.mxu0 %v9013_v40  ;;  %4723 = vmatpush3.msra.mxu1 %v5701_v4  ;;  %v114_v4 = vld [vmem:[#allocation5 + $0x1f8] sm:$0xff] }
  0x71   :  { %4697 = vmatprep.subr.mxu0 %v9014_v45  ;;  %4724 = vmatprep.subr.mxu1 %v5703_v5  ;;  %v97_v5 = vld [vmem:[#allocation5 + $0x170] sm:$0xff]  ;;  %v6244_v48 = vand.u32 4294901760, %v114_v4  ;;  %v6316_v45 = vand.u32 4294901760, %v94_v18 }
  0x72   :  { %4698 = vmatpush3.msra.mxu0 %v9015_v59  ;;  %4725 = vmatpush3.msra.mxu1 %v5705_v9  ;;  %v9019_v9 = vand.u32 4294901760, %v5920_v63  ;;  %v112_v63 = vld [vmem:[#allocation5 + $0x1e8] sm:$0xff]  ;;  %v6322_v59 = vand.u32 4294901760, %v93_v25 }
  0x73   :  { %4699 = vmatprep.subr.mxu0 %v9016_v0  ;;  %4726 = vmatprep.subr.mxu1 %v5707_v10  ;;  %v9020_v10 = vand.u32 4294901760, %v5938_v55  ;;  %v6259_v55 = vand.u32 4294901760, %v113_v57  ;;  %v6269_v52 = vand.u32 4294901760, %v112_v63  ;;  %9036 = vst [vmem:[#allocation15_spill] sm:$0xff] %v6316_v45  ;;  %v8682_v0 = vand.u32 4294901760, %v6289_v50 }
  0x74   :  { %4700 = vmatpush3.msra.mxu0 %v9017_v3  ;;  %4727 = vmatpush3.msra.mxu1 %v5709_v11  ;;  %v6246_v11 = vand.u32 4294901760, %v98_v8  ;;  %9038 = vst [vmem:[#allocation16_spill] sm:$0xff] %v6322_v59 }
  0x75   :  { %4701 = vmatprep.subr.mxu0 %v9018_v42  ;;  %4728 = vmatprep.subr.mxu1 %v5712_v15  ;;  %v6251_v15 = vand.u32 4294901760, %v97_v5  ;;  %9026 = vst [vmem:[#allocation12_spill] sm:$0xff] %v6269_v52  ;;  %v6292_v23 = vsub.f32 %v113_v57, %v6259_v55  ;;  %v9041_v42 = vld [vmem:[#allocation32_spill] sm:$0xff] }
  0x76   :  { %4702 = vmatpush3.msra.mxu0 %v9019_v9  ;;  %4729 = vmatpush3.msra.mxu1 %v5714_v16  ;;  %v9022_v16 = vand.u32 4294901760, %v5963_v60  ;;  %v6267_v60 = vsub.f32 %v98_v8, %v6246_v11 }
  0x77   :  { %4703 = vmatprep.subr.mxu0 %v9020_v10  ;;  %4730 = vmatprep.subr.mxu1 %v5716_v17  ;;  %v9023_v17 = vand.u32 4294901760, %v5974_v27  ;;  %v6272_v27 = vsub.f32 %v114_v4, %v6244_v48  ;;  %v6278_v12 = vsub.f32 %v97_v5, %v6251_v15  ;;  %v108_v4 = vld [vmem:[#allocation5 + $0x1c8] sm:$0xff]  ;;  %v9043_v5 = vld [vmem:[#allocation22_spill] sm:$0xff]  ;;  %v9044_v10 = vld [vmem:[#allocation33_spill] sm:$0xff] }
  0x78   :  { %4704 = vmatpush3.msra.mxu0 %v9021_v6  ;;  %4731 = vmatpush3.msra.mxu1 %v5729_v22  ;;  %v9025_v22 = vand.u32 4294901760, %v8986_v51  ;;  %v6283_v51 = vand.u32 4294901760, %v95_v58  ;;  %v9045_v57 = vand.u32 4294901760, %v9044_v10  ;;  %v6356_v6 = vsub.f32 %v94_v18, %v6316_v45 }
  0x79   :  { %4705 = vmatprep.subr.mxu0 %v9022_v16  ;;  %4732 = vmatprep.subr.mxu1 %v8984_v53  ;;  %v9028_v53 = vand.u32 4294901760, %v6019_v21  ;;  %v9031_v21 = vand.u32 4294901760, %v6043_v32  ;;  %v8684_v32 = vand.u32 4294901760, %v6278_v12  ;;  %v107_v16 = vld [vmem:[#allocation5 + $0x1c0] sm:$0xff]  ;;  %v6373_v18 = vsub.f32 %v93_v25, %v6322_v59 }
  0x7a   :  { %4706 = vmatpush3.msra.mxu0 %v9023_v17  ;;  %4733 = vmatpush3.msra.mxu1 %v8985_v29  ;;  %v111_v29 = vld [vmem:[#allocation5 + $0x1e0] sm:$0xff]  ;;  %9029 = vst [vmem:[#allocation29_spill] sm:$0xff] %v6283_v51  ;;  %v6312_v14 = vsub.f32 %v95_v58, %v6283_v51 }
  0x7b   :  { %4707 = vmatprep.subr.mxu0 %v9025_v22  ;;  %4734 = vmatprep.subr.mxu1 %v8987_v20  ;;  %v9030_v20 = vand.u32 4294901760, %v6030_v13  ;;  %v8687_v13 = vand.u32 4294901760, %v6267_v60  ;;  %v6305_v62 = vand.u32 4294901760, %v111_v29  ;;  %v91_v17 = vld [vmem:[#allocation5 + $0x140] sm:$0xff] }
  0x7c   :  { %4708 = vmatpush3.msra.mxu0 %v9027_v33  ;;  %4735 = vmatpush3.msra.mxu1 %v8988_v49  ;;  %v110_v49 = vld [vmem:[#allocation5 + $0x1d8] sm:$0xff]  ;;  %v8685_v58 = vand.u32 4294901760, %v6312_v14  ;;  %v9048_v33 = vld [vmem:[#allocation34_spill] sm:$0xff] }
  0x7d   :  { %4709 = vmatprep.subr.mxu0 %v9028_v53  ;;  %4736 = vmatprep.subr.mxu1 %v8989_v30  ;;  %v8688_v30 = vand.u32 4294901760, %v6272_v27  ;;  %9033 = vst [vmem:[#allocation13_spill] sm:$0xff] %v6305_v62  ;;  %v6314_v40 = vand.u32 4294901760, %v110_v49  ;;  %v6336_v1 = vsub.f32 %v6267_v60, %v8687_v13  ;;  %v6350_v9 = vsub.f32 %v111_v29, %v6305_v62  ;;  %v9050_v29 = vld [vmem:[#allocation30_spill] sm:$0xff] }
  0x7e   :  { %4710 = vmatpush3.msra.mxu0 %v9030_v20  ;;  %4737 = vmatpush3.msra.mxu1 %v8990_v34  ;;  %v6300_v34 = vsub.f32 %v112_v63, %v6269_v52  ;;  %v9049_v53 = vand.u32 4294901760, %v9048_v33  ;;  %v90_v33 = vld [vmem:[#allocation5 + $0x138] sm:$0xff] }
  0x7f   :  { %4711 = vmatprep.subr.mxu0 %v9031_v21  ;;  %4738 = vmatprep.subr.mxu1 %v8991_v44  ;;  %v9034_v44 = vand.u32 4294901760, %v6068_v36  ;;  %9035 = vst [vmem:[#allocation14_spill] sm:$0xff] %v6314_v40  ;;  %v92_v36 = vld [vmem:[#allocation5 + $0x148] sm:$0xff]  ;;  %v6331_v3 = vsub.f32 %v6272_v27, %v8688_v30  ;;  %v6362_v22 = vsub.f32 %v110_v49, %v6314_v40  ;;  %v6375_v21 = vand.u32 4294901760, %v108_v4 }
  0x80   :  { %4712 = vmatpush3.msra.mxu0 %v9032_v31  ;;  %4739 = vmatpush3.msra.mxu1 %v8992_v26  ;;  %v8686_v26 = vand.u32 4294901760, %v6292_v23  ;;  %v8683_v8 = vand.u32 4294901760, %v6300_v34  ;;  %v6358_v63 = vand.u32 4294901760, %v92_v36  ;;  %v6380_v49 = vsub.f32 %v6289_v50, %v8682_v0  ;;  %v9052_v31 = vld [vmem:[#allocation24_spill] sm:$0xff]  ;;  %v88_v30 = vld [vmem:[#allocation5 + $0x128] sm:$0xff] }
  0x81   :  { %4713 = vmatprep.subr.mxu0 %v9034_v44  ;;  %4740 = vmatprep.subr.mxu1 %v8993_v47  ;;  %v9039_v47 = vand.u32 4294901760, %v6092_v37  ;;  %v9042_v37 = vand.u32 4294901760, %v9041_v42  ;;  %9051 = vst [vmem:[#allocation19_spill] sm:$0xff] %v6375_v21  ;;  %v9053_v44 = vld [vmem:[#allocation31_spill] sm:$0xff]  ;;  %v8689_v10 = vand.u32 4294901760, %v6350_v9  ;;  %v89_v0 = vld [vmem:[#allocation5 + $0x130] sm:$0xff] }
  0x82   :  { %4714 = vmatpush3.msra.mxu0 %v9037_v43  ;;  %4741 = vmatpush3.msra.mxu1 %v8994_v2  ;;  %v6338_v2 = vand.u32 4294901760, %v109_v35  ;;  %9047 = vst [vmem:[#allocation18_spill] sm:$0xff] %v6358_v63  ;;  %v6370_v20 = vsub.f32 %v6292_v23, %v8686_v26  ;;  %v6389_v25 = vsub.f32 %v6300_v34, %v8683_v8  ;;  %v6429_v13 = vand.u32 4294901760, %v90_v33  ;;  %v103_v43 = vld [vmem:[#allocation5 + $0x1a0] sm:$0xff] }
  0x83   :  { %4715 = vmatprep.subr.mxu0 %v9039_v47  ;;  %4742 = vmatprep.subr.mxu1 %v8995_v39  ;;  %v6347_v39 = vsub.f32 %v6278_v12, %v8684_v32  ;;  %v8692_v32 = vand.u32 4294901760, %v6373_v18  ;;  %v6442_v8 = vand.u32 4294901760, %v89_v0  ;;  %v6471_v47 = vand.u32 4294901760, %v88_v30 }
  0x84   :  { %9040 = vst [vmem:[#allocation17_spill] sm:$0xff] %v6338_v2  ;;  %4716 = vmatpush3.msra.mxu0 %v9042_v37  ;;  %4743 = vmatpush3.msra.mxu1 %v9043_v5  ;;  %v6392_v42 = vsub.f32 %v109_v35, %v6338_v2  ;;  %v6397_v5 = vand.u32 4294901760, %v107_v16  ;;  %v6405_v35 = vsub.f32 %v92_v36, %v6358_v63  ;;  %v6418_v36 = vld [vmem:[#allocation5 + $0x1b0] sm:$0xff]  ;;  %9058 = vst [vmem:[#allocation27_spill] sm:$0xff] %v6429_v13  ;;  %v87_v37 = vld [vmem:[#allocation5 + $0x120] sm:$0xff] }
  0x85   :  { %4717 = vmatprep.subr.mxu0 %v9045_v57  ;;  %4744 = vmatprep.subr.mxu1 %v9046_v54  ;;  %v6400_v57 = vand.u32 4294901760, %v91_v17  ;;  %v106_v54 = vld [vmem:[#allocation5 + $0x1b8] sm:$0xff]  ;;  %9060 = vst [vmem:[#allocation32_spill] sm:$0xff] %v6442_v8  ;;  %9063 = vst [vmem:[#allocation23_spill] sm:$0xff] %v6471_v47 }
  0x86   :  { %4718 = vmatpush3.msra.mxu0 %v9049_v53  ;;  %969 = vmatprep.mubr.f32.mxu0 %v9050_v29  ;;  %9054 = vst [vmem:[#allocation20_spill] sm:$0xff] %v6397_v5  ;;  %9056 = vst [vmem:[#allocation25_spill] sm:$0xff] %v6405_v35  ;;  %v8690_v53 = vand.u32 4294901760, %v6362_v22  ;;  %v6445_v26 = vsub.f32 %v107_v16, %v6397_v5  ;;  %v6461_v16 = vand.u32 4294901760, %v6418_v36 }
  0x87   :  { %4745 = vmatpush3.msra.mxu1 %v9052_v31  ;;  %971 = vmatmul.mubr.f32.vlgmr.msra.gmra.mxu0 %v9053_v44  ;;  %9055 = vst [vmem:[#allocation21_spill] sm:$0xff] %v6400_v57  ;;  %v8691_v31 = vand.u32 4294901760, %v6356_v6 }
  0x88   :  { %4746 = vmatprep.subr.mxu1 %v5930_v19  ;;  %4757 = vmatprep.subr.mxu0 %v6244_v48  ;;  %v6410_v19 = vsub.f32 %v6312_v14, %v8685_v58  ;;  %v6422_v58 = vsub.f32 %v108_v4, %v6375_v21  ;;  %v6437_v4 = vsub.f32 %v6350_v9, %v8689_v10 }
  0x89   :  { %4747 = vmatpush3.msra.mxu1 %v8999_v38  ;;  %4758 = vmatpush3.msra.mxu0 %v6246_v11  ;;  %v1316_v38 = vand.u32 4294901760, %v6370_v20  ;;  %v8695_v20 = vand.u32 4294901760, %v6392_v42  ;;  %9061 = vst [vmem:[#allocation22_spill] sm:$0xff] %v6445_v26  ;;  %v6453_v10 = vsub.f32 %v6362_v22, %v8690_v53  ;;  %9062 = vst [vmem:[#allocation33_spill] sm:$0xff] %v6461_v16 }
  0x8a   :  { %4748 = vmatprep.subr.mxu1 %v9001_v56  ;;  %4759 = vmatprep.subr.mxu0 %v6259_v55  ;;  %v6427_v56 = vand.u32 4294901760, %v106_v54 }
  0x8b   :  { %4749 = vmatpush3.msra.mxu1 %v9003_v46  ;;  %4760 = vmatpush3.msra.mxu0 %v6251_v15  ;;  %v6440_v46 = vsub.f32 %v91_v17, %v6400_v57  ;;  %v6458_v17 = vsub.f32 %v6356_v6, %v8691_v31 }
  0x8c   :  { %9057 = vst [vmem:[#allocation26_spill] sm:$0xff] %v6427_v56  ;;  %4750 = vmatprep.subr.mxu1 %v9005_v7  ;;  %4761 = vmatprep.subr.mxu0 %v6269_v52  ;;  %v104_v7 = vld [vmem:[#allocation5 + $0x1a8] sm:$0xff]  ;;  %v6487_v53 = vsub.f32 %v106_v54, %v6427_v56  ;;  %v1337_v54 = vand.u32 4294901760, %v6453_v10  ;;  %v6516_v10 = vsub.f32 %v88_v30, %v6471_v47  ;;  %v85_v52 = vld [vmem:[#allocation5 + $0x110] sm:$0xff] }
  0x8d   :  { %9059 = vst [vmem:[#allocation28_spill] sm:$0xff] %v6440_v46  ;;  %4751 = vmatpush3.msra.mxu1 %v5996_v28  ;;  %4762 = vmatpush3.msra.mxu0 %v6261_v61  ;;  %v6468_v28 = vsub.f32 %v6373_v18, %v8692_v32  ;;  %v6482_v32 = vsub.f32 %v6392_v42, %v8695_v20  ;;  %v9066_v20 = vand.u32 4294901760, %v6331_v3  ;;  %v6502_v61 = vand.u32 4294901760, %v104_v7 }
  0x8e   :  { %4752 = vmatprep.subr.mxu1 %v6010_v41  ;;  %4763 = vmatprep.subr.mxu0 %v6305_v62  ;;  %v6477_v41 = vsub.f32 %v90_v33, %v6429_v13  ;;  %v6484_v62 = vand.u32 4294901760, %v87_v37  ;;  %9065 = vst [vmem:[#allocation30_spill] sm:$0xff] %v6487_v53  ;;  %v9068_v33 = vand.u32 4294901760, %v6336_v1  ;;  %v9069_v3 = vand.u32 4294901760, %v6422_v58 }
  0x8f   :  { %4753 = vmatpush3.msra.mxu1 %v6026_v24  ;;  %1073 = vmatprep.mubr.f32.mxu1 %v9050_v29  ;;  %v1330_v24 = vand.u32 4294901760, %v6437_v4  ;;  %v6493_v29 = vsub.f32 %v89_v0, %v6442_v8  ;;  %9067 = vst [vmem:[#allocation24_spill] sm:$0xff] %v6502_v61  ;;  %v86_v4 = vld [vmem:[#allocation5 + $0x118] sm:$0xff]  ;;  %v44_v0 = vld [vmem:[#allocation2 + $0x18] sm:$0xff]  ;;  %v1344_v1 = vand.u32 4294901760, %v6482_v32  ;;  %v6531_v30 = vsub.f32 %v6418_v36, %v6461_v16 }
  0x90   :  { %9064 = vst [vmem:[#allocation34_spill] sm:$0xff] %v6484_v62  ;;  %4764 = vmatpush3.msra.mxu0 %v6283_v51  ;;  %1075 = vmatmul.mubr.f32.vlgmr.msra.gmra.mxu1 %v9053_v44  ;;  %v1225_v51 = vand.u32 4294901760, %v6458_v17  ;;  %v6504_v44 = vand.u32 4294901760, %v103_v43  ;;  %v9070_v17 = vand.u32 4294901760, %v6405_v35  ;;  %v9074_v32 = vand.u32 4294901760, %v6440_v46 }
  0x91   :  { %4765 = vmatprep.subr.mxu0 %v6314_v40  ;;  %4792 = vmatprep.subr.mxu1 %v9066_v20  ;;  %v6513_v20 = vsub.f32 %v6422_v58, %v9069_v3  ;;  %v102_v3 = vld [vmem:[#allocation5 + $0x198] sm:$0xff]  ;;  %v6546_v31 = vand.u32 4294901760, %v86_v4  ;;  %v6548_v36 = vand.u32 4294901760, %v44_v0 }
  0x92   :  { %4766 = vmatpush3.msra.mxu0 %v6316_v45  ;;  %4793 = vmatpush3.msra.mxu1 %v9068_v33  ;;  %v6521_v40 = vsub.f32 %v6405_v35, %v9070_v17  ;;  %v43_v45 = vld [vmem:[#allocation2 + $0x10] sm:$0xff]  ;;  %v6526_v33 = vsub.f32 %v87_v37, %v6484_v62  ;;  %v9072_v17 = vand.u32 4294901760, %v6347_v39  ;;  %v6544_v37 = vsub.f32 %v6440_v46, %v9074_v32  ;;  %v101_v35 = vld [vmem:[#allocation5 + $0x190] sm:$0xff] }
  0x93   :  { %4767 = vmatprep.subr.mxu0 %v6338_v2  ;;  %4794 = vmatprep.subr.mxu1 %v1316_v38  ;;  %v9073_v2 = vand.u32 4294901760, %v6445_v26  ;;  %9075 = vst [vmem:[#allocation35_spill] sm:$0xff] %v6548_v36  ;;  %v9076_v39 = vand.u32 4294901760, %v6389_v25  ;;  %v9078_v32 = vand.u32 4294901760, %v6380_v49  ;;  %v1351_v46 = vand.u32 4294901760, %v6513_v20 }
  0x94   :  { %9071 = vst [vmem:[#allocation31_spill] sm:$0xff] %v6526_v33  ;;  %4768 = vmatpush3.msra.mxu0 %v6322_v59  ;;  %4795 = vmatpush3.msra.mxu1 %v9072_v17  ;;  %v6554_v59 = vand.u32 4294901760, %v85_v52  ;;  %v6566_v25 = vand.u32 4294901760, %v102_v3  ;;  %v6579_v20 = vsub.f32 %v103_v43, %v6504_v44  ;;  %v9082_v43 = vand.u32 4294901760, %v6477_v41 }
  0x95   :  { %v6539_v38 = vsub.f32 %v6445_v26, %v9073_v2  ;;  %4769 = vmatprep.subr.mxu0 %v6375_v21  ;;  %4796 = vmatprep.subr.mxu1 %v9076_v39  ;;  %v6557_v2 = vsub.f32 %v104_v7, %v6502_v61  ;;  %v6559_v26 = vand.u32 4294901760, %v43_v45  ;;  %v1239_v21 = vand.u32 4294901760, %v6521_v40 }
  0x96   :  { %4770 = vmatpush3.msra.mxu0 %v6358_v63  ;;  %4797 = vmatpush3.msra.mxu1 %v9078_v32  ;;  %v9079_v7 = vand.u32 4294901760, %v6487_v53  ;;  %v6575_v63 = vand.u32 4294901760, %v101_v35  ;;  %v100_v32 = vld [vmem:[#allocation5 + $0x188] sm:$0xff]  ;;  %v9081_v40 = vand.u32 4294901760, %v6410_v19  ;;  %v1246_v39 = vand.u32 4294901760, %v6544_v37  ;;  %v99_v37 = vld [vmem:[#allocation5 + $0x180] sm:$0xff] }
  0x97   :  { %9077 = vst [vmem:[#allocation36_spill] sm:$0xff] %v6559_v26  ;;  %4771 = vmatprep.subr.mxu0 %v6397_v5  ;;  %4798 = vmatprep.subr.mxu1 %v1330_v24  ;;  %v1358_v24 = vand.u32 4294901760, %v6539_v38  ;;  %v84_v5 = vld [vmem:[#allocation5 + $0x108] sm:$0xff]  ;;  %v1252_v49 = vsub.f32 %v6477_v41, %v9082_v43  ;;  %v6597_v19 = vsub.f32 %v85_v52, %v6554_v59  ;;  %v9084_v38 = vand.u32 4294901760, %v6531_v30 }
  0x98   :  { %v6573_v17 = vsub.f32 %v6487_v53, %v9079_v7  ;;  %9080 = vst [vmem:[#allocation37_spill] sm:$0xff] %v6575_v63  ;;  %4772 = vmatpush3.msra.mxu0 %v6400_v57  ;;  %4799 = vmatpush3.msra.mxu1 %v9081_v40  ;;  %v6587_v7 = vsub.f32 %v86_v4, %v6546_v31  ;;  %v83_v40 = vld [vmem:[#allocation5 + $0x100] sm:$0xff]  ;;  %v9085_v43 = vand.u32 4294901760, %v6468_v28  ;;  %v8736_v28 = vand.u32 4294901760, %v6526_v33 }
  0x99   :  { %v6590_v53 = vsub.f32 %v44_v0, %v6548_v36  ;;  %4773 = vmatprep.subr.mxu0 %v6427_v56  ;;  %4800 = vmatprep.subr.mxu1 %v1337_v54  ;;  %v6601_v4 = vsub.f32 %v43_v45, %v6559_v26  ;;  %v9083_v0 = vand.u32 4294901760, %v6493_v29  ;;  %v6607_v56 = vand.u32 4294901760, %v100_v32 }
  0x9a   :  { %4774 = vmatpush3.msra.mxu0 %v6429_v13  ;;  %4801 = vmatpush3.msra.mxu1 %v1225_v51  ;;  %v6611_v52 = vsub.f32 %v102_v3, %v6566_v25  ;;  %v1365_v45 = vand.u32 4294901760, %v6573_v17  ;;  %v1371_v51 = vsub.f32 %v6531_v30, %v9084_v38  ;;  %v6618_v13 = vand.u32 4294901760, %v84_v5 }
  0x9b   :  { %v1259_v54 = vsub.f32 %v6493_v29, %v9083_v0  ;;  %4775 = vmatprep.subr.mxu0 %v6461_v16  ;;  %4802 = vmatprep.subr.mxu1 %v1344_v1  ;;  %v6624_v3 = vand.u32 4294901760, %v99_v37  ;;  %v6626_v57 = vand.u32 4294901760, %v83_v40  ;;  %v6630_v17 = vsub.f32 %v101_v35, %v6575_v63 }
  0x9c   :  { %4776 = vmatpush3.msra.mxu0 %v6442_v8  ;;  %4803 = vmatpush3.msra.mxu1 %v9085_v43  ;;  %v1253_v38 = vand.u32 4294901760, %v1252_v49  ;;  %v9086_v0 = vand.u32 4294901760, %v6557_v2  ;;  %v9087_v1 = vand.u32 4294901760, %v6516_v10  ;;  %v1372_v49 = vand.u32 4294901760, %v1371_v51 }
  0x9d   :  { %4777 = vmatprep.subr.mxu0 %v6502_v61  ;;  %4804 = vmatprep.subr.mxu1 %v1351_v46  ;;  %v1260_v16 = vand.u32 4294901760, %v1259_v54  ;;  %v6644_v46 = vsub.f32 %v100_v32, %v6607_v56  ;;  %v9088_v43 = vand.u32 4294901760, %v6579_v20  ;;  %v9090_v32 = vand.u32 4294901760, %v6590_v53 }
  0x9e   :  { %v1378_v8 = vsub.f32 %v6557_v2, %v9086_v0  ;;  %4778 = vmatpush3.msra.mxu0 %v6471_v47  ;;  %4805 = vmatpush3.msra.mxu1 %v1239_v21  ;;  %v1266_v35 = vsub.f32 %v6516_v10, %v9087_v1  ;;  %v6648_v0 = vsub.f32 %v84_v5, %v6618_v13 }
  0x9f   :  { %4779 = vmatprep.subr.mxu0 %v6504_v44  ;;  %4806 = vmatprep.subr.mxu1 %v1358_v24  ;;  %v1385_v21 = vsub.f32 %v6579_v20, %v9088_v43  ;;  %v6656_v1 = vsub.f32 %v83_v40, %v6626_v57  ;;  %v1179_v24 = vsub.f32 %v6590_v53, %v9090_v32  ;;  %v9092_v40 = vand.u32 4294901760, %v6601_v4 }
  0xa0   :  { %4780 = vmatpush3.msra.mxu0 %v6484_v62  ;;  %4807 = vmatpush3.msra.mxu1 %v1246_v39  ;;  %v6663_v5 = vsub.f32 %v99_v37, %v6624_v3  ;;  %v1379_v43 = vand.u32 4294901760, %v1378_v8  ;;  %v1273_v39 = vsub.f32 %v6526_v33, %v8736_v28  ;;  %v1267_v32 = vand.u32 4294901760, %v1266_v35 }
  0xa1   :  { %9089 = vst [vmem:[#allocation38_spill] sm:$0xff] %v6656_v1  ;;  %4781 = vmatprep.subr.mxu0 %v6566_v25  ;;  %4808 = vmatprep.subr.mxu1 %v1365_v45  ;;  %v1185_v54 = vsub.f32 %v6601_v4, %v9092_v40  ;;  %v9093_v37 = vand.u32 4294901760, %v6611_v52  ;;  %v1386_v45 = vand.u32 4294901760, %v1385_v21  ;;  %v9094_v28 = vand.u32 4294901760, %v6587_v7 }
  0xa2   :  { %9091 = vst [vmem:[#allocation39_spill] sm:$0xff] %v6663_v5  ;;  %4782 = vmatpush3.msra.mxu0 %v6546_v31  ;;  %4809 = vmatpush3.msra.mxu1 %v1253_v38  ;;  %v1180_v38 = vand.u32 4294901760, %v1179_v24  ;;  %v9095_v35 = vand.u32 4294901760, %v6630_v17  ;;  %v8740_v8 = vand.u32 4294901760, %v6663_v5  ;;  %v8739_v61 = vand.u32 4294901760, %v6656_v1 }
  0xa3   :  { %v1392_v51 = vsub.f32 %v6611_v52, %v9093_v37  ;;  %4783 = vmatprep.subr.mxu0 %v6575_v63  ;;  %4810 = vmatprep.subr.mxu1 %v1372_v49  ;;  %v1280_v40 = vsub.f32 %v6587_v7, %v9094_v28  ;;  %v1274_v49 = vand.u32 4294901760, %v1273_v39  ;;  %v1186_v21 = vand.u32 4294901760, %v1185_v54 }
  0xa4   :  { %4784 = vmatpush3.msra.mxu0 %v6554_v59  ;;  %4811 = vmatpush3.msra.mxu1 %v1260_v16  ;;  %v1399_v37 = vsub.f32 %v6630_v17, %v9095_v35  ;;  %v9096_v63 = vand.u32 4294901760, %v6597_v19  ;;  %v9097_v24 = vand.u32 4294901760, %v6644_v46  ;;  %v9098_v54 = vand.u32 4294901760, %v6648_v0 }
  0xa5   :  { %4785 = vmatprep.subr.mxu0 %v6607_v56  ;;  %4812 = vmatprep.subr.mxu1 %v1379_v43  ;;  %v1393_v16 = vand.u32 4294901760, %v1392_v51  ;;  %v1281_v43 = vand.u32 4294901760, %v1280_v40  ;;  %v1413_v51 = vsub.f32 %v6663_v5, %v8740_v8  ;;  %v9116_v8 = vld [vmem:[#allocation27_spill] sm:$0xff] }
  0xa6   :  { %v1287_v28 = vsub.f32 %v6597_v19, %v9096_v63  ;;  %4786 = vmatpush3.msra.mxu0 %v6618_v13  ;;  %4813 = vmatpush3.msra.mxu1 %v1267_v32  ;;  %v1406_v35 = vsub.f32 %v6644_v46, %v9097_v24  ;;  %v1294_v39 = vsub.f32 %v6648_v0, %v9098_v54  ;;  %v1400_v63 = vand.u32 4294901760, %v1399_v37  ;;  %v9102_v24 = vld [vmem:[#allocation22_spill] sm:$0xff]  ;;  %v9105_v54 = vld [vmem:[#allocation29_spill] sm:$0xff] }
  0xa7   :  { %4787 = vmatprep.subr.mxu0 %v6624_v3  ;;  %4814 = vmatprep.subr.mxu1 %v1386_v45  ;;  %v1301_v45 = vsub.f32 %v6656_v1, %v8739_v61  ;;  %v1414_v37 = vand.u32 4294901760, %v1413_v51  ;;  %v9108_v51 = vld [vmem:[#allocation15_spill] sm:$0xff]  ;;  %v9115_v61 = vld [vmem:[#allocation26_spill] sm:$0xff] }
  0xa8   :  { %4788 = vmatpush3.msra.mxu0 %v6626_v57  ;;  %1181 = vmatprep.mubr.f32.mxu0 %v1180_v38  ;;  %v1288_v32 = vand.u32 4294901760, %v1287_v28  ;;  %v1407_v40 = vand.u32 4294901760, %v1406_v35  ;;  %v1295_v38 = vand.u32 4294901760, %v1294_v39  ;;  %v9100_v28 = vld [vmem:[#allocation25_spill] sm:$0xff]  ;;  %v9106_v39 = vld [vmem:[#allocation30_spill] sm:$0xff] }
  0xa9   :  { %4815 = vmatpush3.msra.mxu1 %v1274_v49  ;;  %1187 = vmatmul.mubr.f32.vlgmr.msra.gmra.mxu0 %v1186_v21  ;;  %v1302_v49 = vand.u32 4294901760, %v1301_v45  ;;  %v9099_v21 = vld [vmem:[#allocation12_spill] sm:$0xff]  ;;  %v9103_v35 = vld [vmem:[#allocation13_spill] sm:$0xff] }
  0xaa   :  { %4816 = vmatprep.subr.mxu1 %v1393_v16  ;;  %4827 = vmatprep.subr.mxu0 %v6272_v27  ;;  %v9101_v16 = vld [vmem:[#allocation11_spill] sm:$0xff]  ;;  %v9110_v45 = vld [vmem:[#allocation16_spill] sm:$0xff] }
  0xab   :  { %4817 = vmatpush3.msra.mxu1 %v1281_v43  ;;  %4828 = vmatpush3.msra.mxu0 %v6267_v60  ;;  %v9104_v43 = vld [vmem:[#allocation28_spill] sm:$0xff] }
  0xac   :  { %4818 = vmatprep.subr.mxu1 %v1400_v63  ;;  %4829 = vmatprep.subr.mxu0 %v6292_v23  ;;  %v9107_v63 = vld [vmem:[#allocation14_spill] sm:$0xff] }
  0xad   :  { %4819 = vmatpush3.msra.mxu1 %v1288_v32  ;;  %4830 = vmatpush3.msra.mxu0 %v6278_v12  ;;  %v9109_v32 = vld [vmem:[#allocation17_spill] sm:$0xff] }
  0xae   :  { %4820 = vmatprep.subr.mxu1 %v1407_v40  ;;  %4831 = vmatprep.subr.mxu0 %v6300_v34  ;;  %v9111_v40 = vld [vmem:[#allocation19_spill] sm:$0xff] }
  0xaf   :  { %4821 = vmatpush3.msra.mxu1 %v1295_v38  ;;  %4832 = vmatpush3.msra.mxu0 %v6289_v50  ;;  %v9112_v38 = vld [vmem:[#allocation18_spill] sm:$0xff] }
  0xb0   :  { %4822 = vmatprep.subr.mxu1 %v1414_v37  ;;  %4833 = vmatprep.subr.mxu0 %v6350_v9  ;;  %v9113_v37 = vld [vmem:[#allocation20_spill] sm:$0xff] }
  0xb1   :  { %4823 = vmatpush3.msra.mxu1 %v1302_v49  ;;  %1417 = vmatprep.mubr.f32.mxu1 %v6548_v36  ;;  %v9114_v49 = vld [vmem:[#allocation21_spill] sm:$0xff]  ;;  %v9118_v36 = vld [vmem:[#allocation32_spill] sm:$0xff] }
  0xb2   :  { %4834 = vmatpush3.msra.mxu0 %v6312_v14  ;;  %1419 = vmatmul.mubr.f32.vlgmr.msra.gmra.mxu1 %v6559_v26  ;;  %v9117_v26 = vld [vmem:[#allocation33_spill] sm:$0xff] }
  0xb3   :  { %4835 = vmatprep.subr.mxu0 %v6362_v22  ;;  %4862 = vmatprep.subr.mxu1 %v6244_v48 }
  0xb4   :  { %4836 = vmatpush3.msra.mxu0 %v6356_v6  ;;  %4863 = vmatpush3.msra.mxu1 %v6246_v11 }
  0xb5   :  { %4837 = vmatprep.subr.mxu0 %v6392_v42  ;;  %4864 = vmatprep.subr.mxu1 %v6259_v55 }
  0xb6   :  { %4838 = vmatpush3.msra.mxu0 %v6373_v18  ;;  %4865 = vmatpush3.msra.mxu1 %v6251_v15 }
  0xb7   :  { %4839 = vmatprep.subr.mxu0 %v6422_v58  ;;  %4866 = vmatprep.subr.mxu1 %v9099_v21 }
  0xb8   :  { %4840 = vmatpush3.msra.mxu0 %v9100_v28  ;;  %4867 = vmatpush3.msra.mxu1 %v9101_v16 }
  0xb9   :  { %4841 = vmatprep.subr.mxu0 %v9102_v24  ;;  %4868 = vmatprep.subr.mxu1 %v9103_v35 }
  0xba   :  { %4842 = vmatpush3.msra.mxu0 %v9104_v43  ;;  %4869 = vmatpush3.msra.mxu1 %v9105_v54 }
  0xbb   :  { %4843 = vmatprep.subr.mxu0 %v9106_v39  ;;  %4870 = vmatprep.subr.mxu1 %v9107_v63 }
  0xbc   :  { %4844 = vmatpush3.msra.mxu0 %v6477_v41  ;;  %4871 = vmatpush3.msra.mxu1 %v9108_v51 }
  0xbd   :  { %4845 = vmatprep.subr.mxu0 %v6531_v30  ;;  %4872 = vmatprep.subr.mxu1 %v9109_v32 }
  0xbe   :  { %4846 = vmatpush3.msra.mxu0 %v6493_v29  ;;  %4873 = vmatpush3.msra.mxu1 %v9110_v45 }
  0xbf   :  { %4847 = vmatprep.subr.mxu0 %v6557_v2  ;;  %4874 = vmatprep.subr.mxu1 %v9111_v40 }
  0xc0   :  { %4848 = vmatpush3.msra.mxu0 %v6516_v10  ;;  %4875 = vmatpush3.msra.mxu1 %v9112_v38 }
  0xc1   :  { %4849 = vmatprep.subr.mxu0 %v6579_v20  ;;  %4876 = vmatprep.subr.mxu1 %v9113_v37 }
  0xc2   :  { %4850 = vmatpush3.msra.mxu0 %v6526_v33  ;;  %4877 = vmatpush3.msra.mxu1 %v9114_v49  ;;  %v9119_v33 = vld [vmem:[#allocation24_spill] sm:$0xff] }
  0xc3   :  { %4851 = vmatprep.subr.mxu0 %v6611_v52  ;;  %4878 = vmatprep.subr.mxu1 %v9115_v61 }
  0xc4   :  { %4852 = vmatpush3.msra.mxu0 %v6587_v7  ;;  %4879 = vmatpush3.msra.mxu1 %v9116_v8 }
  0xc5   :  { %4853 = vmatprep.subr.mxu0 %v6630_v17  ;;  %4880 = vmatprep.subr.mxu1 %v9117_v26 }
  0xc6   :  { %4854 = vmatpush3.msra.mxu0 %v6597_v19  ;;  %4881 = vmatpush3.msra.mxu1 %v9118_v36 }
  0xc7   :  { %4855 = vmatprep.subr.mxu0 %v6644_v46  ;;  %4882 = vmatprep.subr.mxu1 %v9119_v33  ;;  %v9120_v33 = vand.u32 4294901760, %v6272_v27  ;;  %v9125_v27 = vand.u32 4294901760, %v6300_v34  ;;  %v9130_v34 = vand.u32 4294901760, %v6601_v4 }
  0xc8   :  { %4856 = vmatpush3.msra.mxu0 %v6648_v0  ;;  %4883 = vmatpush3.msra.mxu1 %v6471_v47  ;;  %v9121_v47 = vand.u32 4294901760, %v6267_v60  ;;  %v9126_v60 = vand.u32 4294901760, %v6289_v50  ;;  %v9132_v50 = vand.u32 4294901760, %v6356_v6  ;;  %v9136_v6 = vand.u32 4294901760, %v9100_v28 }
  0xc9   :  { %4857 = vmatprep.subr.mxu0 %v6663_v5  ;;  %4884 = vmatprep.subr.mxu1 %v6504_v44  ;;  %v9122_v5 = vld [vmem:[#allocation37_spill] sm:$0xff] }
  0xca   :  { %4858 = vmatpush3.msra.mxu0 %v6656_v1  ;;  %1554 = vmatprep.mubr.f32.mxu0 %v6590_v53  ;;  %v9123_v1 = vand.u32 4294901760, %v6292_v23  ;;  %v9127_v23 = vand.u32 4294901760, %v6350_v9  ;;  %v9133_v9 = vand.u32 4294901760, %v6392_v42  ;;  %v9139_v42 = vand.u32 4294901760, %v9106_v39 }
  0xcb   :  { %4885 = vmatpush3.msra.mxu1 %v6484_v62  ;;  %1557 = vmatmul.mubr.f32.vlgmr.msra.gmra.mxu0 %v6601_v4  ;;  %v9124_v62 = vand.u32 4294901760, %v6278_v12  ;;  %v9128_v12 = vand.u32 4294901760, %v6590_v53  ;;  %v145_v53 = vld [vmem:[#allocation5 + $0x2f0] sm:$0xff]  ;;  %v9145_v39 = vand.u32 4294901760, %v6516_v10  ;;  %v126_v10 = vld [vmem:[#allocation5 + $0x258] sm:$0xff] }
  0xcc   :  { %4886 = vmatprep.subr.mxu1 %v6566_v25  ;;  %4897 = vmatprep.subr.mxu0 %v9120_v33  ;;  %v9140_v33 = vand.u32 4294901760, %v6477_v41 }
  0xcd   :  { %4887 = vmatpush3.msra.mxu1 %v6546_v31  ;;  %4898 = vmatpush3.msra.mxu0 %v9121_v47  ;;  %v9131_v47 = vand.u32 4294901760, %v6362_v22  ;;  %v9135_v22 = vand.u32 4294901760, %v6422_v58  ;;  %v129_v58 = vld [vmem:[#allocation5 + $0x270] sm:$0xff] }
  0xce   :  { %4888 = vmatprep.subr.mxu1 %v9122_v5  ;;  %4899 = vmatprep.subr.mxu0 %v9123_v1  ;;  %v144_v1 = vld [vmem:[#allocation5 + $0x2e8] sm:$0xff]  ;;  %v6833_v28 = vand.u32 4294901760, %v129_v58 }
  0xcf   :  { %4889 = vmatpush3.msra.mxu1 %v6554_v59  ;;  %4900 = vmatpush3.msra.mxu0 %v9124_v62  ;;  %v9129_v62 = vand.u32 4294901760, %v6312_v14  ;;  %v9134_v14 = vand.u32 4294901760, %v6373_v18  ;;  %v9138_v18 = vand.u32 4294901760, %v9104_v43  ;;  %v127_v43 = vld [vmem:[#allocation5 + $0x260] sm:$0xff] }
  0xd0   :  { %4890 = vmatprep.subr.mxu1 %v6607_v56  ;;  %4901 = vmatprep.subr.mxu0 %v9125_v27 }
  0xd1   :  { %4891 = vmatpush3.msra.mxu1 %v6618_v13  ;;  %4902 = vmatpush3.msra.mxu0 %v9126_v60 }
  0xd2   :  { %4892 = vmatprep.subr.mxu1 %v6624_v3  ;;  %4903 = vmatprep.subr.mxu0 %v9127_v23 }
  0xd3   :  { %4893 = vmatpush3.msra.mxu1 %v6626_v57  ;;  %1661 = vmatprep.mubr.f32.mxu1 %v9128_v12 }
  0xd4   :  { %4904 = vmatpush3.msra.mxu0 %v9129_v62  ;;  %1665 = vmatmul.mubr.f32.vlgmr.msra.gmra.mxu1 %v9130_v34  ;;  %v9153_v62 = vand.u32 4294901760, %v6587_v7 }
  0xd5   :  { %4905 = vmatprep.subr.mxu0 %v9131_v47  ;;  %4932 = vmatprep.subr.mxu1 %v6244_v48  ;;  %v130_v48 = vld [vmem:[#allocation5 + $0x278] sm:$0xff]  ;;  %v6886_v47 = vand.u32 4294901760, %v126_v10 }
  0xd6   :  { %4906 = vmatpush3.msra.mxu0 %v9132_v50  ;;  %4933 = vmatpush3.msra.mxu1 %v6246_v11  ;;  %v9137_v11 = vand.u32 4294901760, %v9102_v24  ;;  %v9142_v24 = vand.u32 4294901760, %v6493_v29  ;;  %v125_v50 = vld [vmem:[#allocation5 + $0x250] sm:$0xff] }
  0xd7   :  { %4907 = vmatprep.subr.mxu0 %v9133_v9  ;;  %4934 = vmatprep.subr.mxu1 %v6259_v55  ;;  %v146_v55 = vld [vmem:[#allocation5 + $0x2f8] sm:$0xff]  ;;  %9154 = vst [vmem:[#allocation13_spill] sm:$0xff] %v6886_v47 }
  0xd8   :  { %4908 = vmatpush3.msra.mxu0 %v9134_v14  ;;  %4935 = vmatpush3.msra.mxu1 %v6251_v15  ;;  %v6820_v15 = vand.u32 4294901760, %v130_v48  ;;  %v6828_v4 = vand.u32 4294901760, %v146_v55  ;;  %v9157_v14 = vand.u32 4294901760, %v6597_v19  ;;  %v140_v19 = vld [vmem:[#allocation5 + $0x2c8] sm:$0xff] }
  0xd9   :  { %4909 = vmatprep.subr.mxu0 %v9135_v22  ;;  %4936 = vmatprep.subr.mxu1 %v9099_v21  ;;  %v9141_v21 = vand.u32 4294901760, %v6531_v30  ;;  %v6846_v30 = vand.u32 4294901760, %v144_v1 }
  0xda   :  { %4910 = vmatpush3.msra.mxu0 %v9136_v6  ;;  %4937 = vmatpush3.msra.mxu1 %v9101_v16  ;;  %v128_v16 = vld [vmem:[#allocation5 + $0x268] sm:$0xff]  ;;  %v6839_v41 = vsub.f32 %v130_v48, %v6820_v15  ;;  %v9158_v48 = vand.u32 4294901760, %v6644_v46  ;;  %v9159_v6 = vld [vmem:[#allocation24_spill] sm:$0xff] }
  0xdb   :  { %4911 = vmatprep.subr.mxu0 %v9137_v11  ;;  %4938 = vmatprep.subr.mxu1 %v9103_v35  ;;  %v6841_v35 = vand.u32 4294901760, %v145_v53  ;;  %9144 = vst [vmem:[#allocation12_spill] sm:$0xff] %v6846_v30  ;;  %v6851_v29 = vand.u32 4294901760, %v128_v16  ;;  %v6877_v12 = vsub.f32 %v144_v1, %v6846_v30 }
  0xdc   :  { %4912 = vmatpush3.msra.mxu0 %v9138_v18  ;;  %4939 = vmatpush3.msra.mxu1 %v9105_v54  ;;  %v9143_v54 = vand.u32 4294901760, %v6557_v2  ;;  %v6860_v2 = vsub.f32 %v129_v58, %v6833_v28  ;;  %v8756_v60 = vand.u32 4294901760, %v6839_v41  ;;  %v123_v58 = vld [vmem:[#allocation5 + $0x240] sm:$0xff] }
  0xdd   :  { %4913 = vmatprep.subr.mxu0 %v9139_v42  ;;  %4940 = vmatprep.subr.mxu1 %v9107_v63  ;;  %9146 = vst [vmem:[#allocation25_spill] sm:$0xff] %v6851_v29  ;;  %v143_v63 = vld [vmem:[#allocation5 + $0x2e0] sm:$0xff]  ;;  %v6869_v23 = vsub.f32 %v145_v53, %v6841_v35  ;;  %v9162_v42 = vand.u32 4294901760, %v6648_v0  ;;  %v9163_v53 = vld [vmem:[#allocation23_spill] sm:$0xff] }
  0xde   :  { %4914 = vmatpush3.msra.mxu0 %v9140_v33  ;;  %4941 = vmatpush3.msra.mxu1 %v9108_v51  ;;  %v6854_v51 = vsub.f32 %v146_v55, %v6828_v4  ;;  %v6903_v22 = vsub.f32 %v6839_v41, %v8756_v60  ;;  %v6911_v55 = vand.u32 4294901760, %v125_v50  ;;  %v6926_v33 = vsub.f32 %v126_v10, %v6886_v47  ;;  %v9169_v10 = vld [vmem:[#allocation35_spill] sm:$0xff] }
  0xdf   :  { %4915 = vmatprep.subr.mxu0 %v9141_v21  ;;  %4942 = vmatprep.subr.mxu1 %v9109_v32  ;;  %v9147_v32 = vand.u32 4294901760, %v6579_v20  ;;  %v9151_v20 = vand.u32 4294901760, %v6611_v52  ;;  %v141_v52 = vld [vmem:[#allocation5 + $0x2d0] sm:$0xff]  ;;  %v9164_v21 = vld [vmem:[#allocation39_spill] sm:$0xff] }
  0xe0   :  { %4916 = vmatpush3.msra.mxu0 %v9142_v24  ;;  %4943 = vmatpush3.msra.mxu1 %v9110_v45  ;;  %v6862_v45 = vand.u32 4294901760, %v127_v43  ;;  %v8757_v34 = vand.u32 4294901760, %v6854_v51  ;;  %v6909_v11 = vand.u32 4294901760, %v141_v52  ;;  %9161 = vst [vmem:[#allocation30_spill] sm:$0xff] %v6911_v55 }
  0xe1   :  { %4917 = vmatprep.subr.mxu0 %v9143_v54  ;;  %4944 = vmatprep.subr.mxu1 %v9111_v40  ;;  %v9149_v40 = vld [vmem:[#allocation31_spill] sm:$0xff] }
  0xe2   :  { %4918 = vmatpush3.msra.mxu0 %v9145_v39  ;;  %4945 = vmatpush3.msra.mxu1 %v9112_v38  ;;  %9148 = vst [vmem:[#allocation11_spill] sm:$0xff] %v6862_v45  ;;  %v9150_v27 = vand.u32 4294901760, %v9149_v40  ;;  %v142_v38 = vld [vmem:[#allocation5 + $0x2d8] sm:$0xff]  ;;  %v6892_v9 = vsub.f32 %v127_v43, %v6862_v45  ;;  %9160 = vst [vmem:[#allocation29_spill] sm:$0xff] %v6909_v11  ;;  %v6923_v46 = vsub.f32 %v6854_v51, %v8757_v34  ;;  %v139_v43 = vld [vmem:[#allocation5 + $0x2c0] sm:$0xff] }
  0xe3   :  { %4919 = vmatprep.subr.mxu0 %v9147_v32  ;;  %4946 = vmatprep.subr.mxu1 %v9113_v37  ;;  %v6874_v37 = vand.u32 4294901760, %v143_v63  ;;  %v6894_v7 = vand.u32 4294901760, %v142_v38 }
  0xe4   :  { %4920 = vmatpush3.msra.mxu0 %v9150_v27  ;;  %4947 = vmatpush3.msra.mxu1 %v9114_v49  ;;  %v6883_v49 = vsub.f32 %v128_v16, %v6851_v29  ;;  %v9165_v16 = vand.u32 4294901760, %v9164_v21  ;;  %v8752_v54 = vand.u32 4294901760, %v6892_v9  ;;  %v6952_v27 = vand.u32 4294901760, %v140_v19 }
  0xe5   :  { %4921 = vmatprep.subr.mxu0 %v9151_v20  ;;  %4948 = vmatprep.subr.mxu1 %v9115_v61  ;;  %9152 = vst [vmem:[#allocation22_spill] sm:$0xff] %v6874_v37  ;;  %v9155_v61 = vand.u32 4294901760, %v6630_v17  ;;  %9156 = vst [vmem:[#allocation28_spill] sm:$0xff] %v6894_v7  ;;  %v8754_v17 = vand.u32 4294901760, %v6869_v23  ;;  %v6915_v18 = vsub.f32 %v143_v63, %v6874_v37  ;;  %v9167_v63 = vld [vmem:[#allocation38_spill] sm:$0xff]  ;;  %v6954_v20 = vand.u32 4294901760, %v123_v58 }
  0xe6   :  { %4922 = vmatpush3.msra.mxu0 %v9153_v62  ;;  %4949 = vmatpush3.msra.mxu1 %v9116_v8  ;;  %v8753_v8 = vand.u32 4294901760, %v6860_v2  ;;  %v8750_v1 = vand.u32 4294901760, %v6883_v49  ;;  %v6941_v39 = vsub.f32 %v142_v38, %v6894_v7  ;;  %v9168_v32 = vand.u32 4294901760, %v9167_v63  ;;  %9170 = vst [vmem:[#allocation15_spill] sm:$0xff] %v6952_v27  ;;  %v9172_v62 = vld [vmem:[#allocation34_spill] sm:$0xff]  ;;  %v9173_v38 = vld [vmem:[#allocation36_spill] sm:$0xff] }
  0xe7   :  { %4923 = vmatprep.subr.mxu0 %v9155_v61  ;;  %4950 = vmatprep.subr.mxu1 %v9117_v26  ;;  %v124_v26 = vld [vmem:[#allocation5 + $0x248] sm:$0xff]  ;;  %v6950_v40 = vsub.f32 %v6869_v23, %v8754_v17  ;;  %9171 = vst [vmem:[#allocation17_spill] sm:$0xff] %v6954_v20  ;;  %v6959_v61 = vsub.f32 %v125_v50, %v6911_v55  ;;  %v6978_v21 = vand.u32 4294901760, %v139_v43  ;;  %v138_v63 = vld [vmem:[#allocation5 + $0x2b8] sm:$0xff] }
  0xe8   :  { %4924 = vmatpush3.msra.mxu0 %v9157_v14  ;;  %4951 = vmatpush3.msra.mxu1 %v9118_v36  ;;  %v8751_v36 = vand.u32 4294901760, %v6877_v12  ;;  %v6935_v0 = vsub.f32 %v6860_v2, %v8753_v8  ;;  %v6937_v24 = vand.u32 4294901760, %v124_v26  ;;  %v6976_v50 = vsub.f32 %v6883_v49, %v8750_v1 }
  0xe9   :  { %4925 = vmatprep.subr.mxu0 %v9158_v48  ;;  %4952 = vmatprep.subr.mxu1 %v9159_v6  ;;  %v8755_v48 = vand.u32 4294901760, %v6915_v18  ;;  %v122_v6 = vld [vmem:[#allocation5 + $0x238] sm:$0xff]  ;;  %9174 = vst [vmem:[#allocation16_spill] sm:$0xff] %v6978_v21  ;;  %v8761_v8 = vand.u32 4294901760, %v6959_v61  ;;  %v7025_v60 = vsub.f32 %v139_v43, %v6978_v21 }
  0xea   :  { %4926 = vmatpush3.msra.mxu0 %v9162_v42  ;;  %4953 = vmatpush3.msra.mxu1 %v9163_v53  ;;  %9166 = vst [vmem:[#allocation14_spill] sm:$0xff] %v6937_v24  ;;  %v6964_v14 = vsub.f32 %v6877_v12, %v8751_v36  ;;  %v6968_v42 = vsub.f32 %v141_v52, %v6909_v11  ;;  %v2171_v53 = vand.u32 4294901760, %v6923_v46  ;;  %v6999_v1 = vand.u32 4294901760, %v122_v6  ;;  %v119_v52 = vld [vmem:[#allocation5 + $0x220] sm:$0xff] }
  0xeb   :  { %4927 = vmatprep.subr.mxu0 %v9165_v16  ;;  %4954 = vmatprep.subr.mxu1 %v6504_v44  ;;  %v8758_v16 = vand.u32 4294901760, %v6926_v33  ;;  %v6990_v46 = vsub.f32 %v6892_v9, %v8752_v54  ;;  %v7002_v36 = vsub.f32 %v140_v19, %v6952_v27  ;;  %v7017_v19 = vand.u32 4294901760, %v138_v63  ;;  %9179 = vst [vmem:[#allocation26_spill] sm:$0xff] %v7025_v60  ;;  %v136_v54 = vld [vmem:[#allocation5 + $0x2a8] sm:$0xff] }
  0xec   :  { %4928 = vmatpush3.msra.mxu0 %v9168_v32  ;;  %1831 = vmatprep.mubr.f32.mxu0 %v9169_v10  ;;  %v8759_v32 = vand.u32 4294901760, %v6941_v39  ;;  %9177 = vst [vmem:[#allocation20_spill] sm:$0xff] %v6999_v1 }
  0xed   :  { %4955 = vmatpush3.msra.mxu1 %v9172_v62  ;;  %1833 = vmatmul.mubr.f32.vlgmr.msra.gmra.mxu0 %v9173_v38  ;;  %v6997_v62 = vsub.f32 %v123_v58, %v6954_v20  ;;  %v8760_v58 = vand.u32 4294901760, %v6968_v42  ;;  %9178 = vst [vmem:[#allocation21_spill] sm:$0xff] %v7017_v19  ;;  %v7022_v17 = vsub.f32 %v6926_v33, %v8758_v16 }
  0xee   :  { %4956 = vmatprep.subr.mxu1 %v6566_v25  ;;  %4967 = vmatprep.subr.mxu0 %v6828_v4  ;;  %v6985_v25 = vsub.f32 %v124_v26, %v6937_v24  ;;  %v121_v26 = vld [vmem:[#allocation5 + $0x230] sm:$0xff]  ;;  %v7033_v34 = vsub.f32 %v6941_v39, %v8759_v32 }
  0xef   :  { %4957 = vmatpush3.msra.mxu1 %v6546_v31  ;;  %4968 = vmatpush3.msra.mxu0 %v6820_v15  ;;  %v2178_v31 = vand.u32 4294901760, %v6950_v40  ;;  %9176 = vst [vmem:[#allocation18_spill] sm:$0xff] %v6997_v62  ;;  %v137_v40 = vld [vmem:[#allocation5 + $0x2b0] sm:$0xff] }
  0xf0   :  { %9175 = vst [vmem:[#allocation19_spill] sm:$0xff] %v6985_v25  ;;  %4958 = vmatprep.subr.mxu1 %v9122_v5  ;;  %4969 = vmatprep.subr.mxu0 %v6841_v35  ;;  %v7010_v5 = vsub.f32 %v6915_v18, %v8755_v48  ;;  %v120_v48 = vld [vmem:[#allocation5 + $0x228] sm:$0xff]  ;;  %v7043_v43 = vand.u32 4294901760, %v137_v40 }
  0xf1   :  { %4959 = vmatpush3.msra.mxu1 %v6554_v59  ;;  %4970 = vmatpush3.msra.mxu0 %v6833_v28  ;;  %v7035_v59 = vand.u32 4294901760, %v121_v26  ;;  %v7060_v16 = vand.u32 4294901760, %v120_v48 }
  0xf2   :  { %4960 = vmatprep.subr.mxu1 %v6607_v56  ;;  %4971 = vmatprep.subr.mxu0 %v6846_v30  ;;  %9182 = vst [vmem:[#allocation32_spill] sm:$0xff] %v7043_v43  ;;  %v2192_v44 = vand.u32 4294901760, %v7010_v5  ;;  %v135_v56 = vld [vmem:[#allocation5 + $0x2a0] sm:$0xff]  ;;  %v46_v5 = vld [vmem:[#allocation2 + $0x28] sm:$0xff]  ;;  %v7106_v30 = vsub.f32 %v137_v40, %v7043_v43  ;;  %v9193_v40 = vand.u32 4294901760, %v6964_v14 }
  0xf3   :  { %4961 = vmatpush3.msra.mxu1 %v6618_v13  ;;  %4972 = vmatpush3.msra.mxu0 %v6851_v29  ;;  %9180 = vst [vmem:[#allocation27_spill] sm:$0xff] %v7035_v59  ;;  %v7041_v13 = vsub.f32 %v122_v6, %v6999_v1  ;;  %v7058_v6 = vsub.f32 %v6959_v61, %v8761_v8  ;;  %9183 = vst [vmem:[#allocation37_spill] sm:$0xff] %v7060_v16  ;;  %v2199_v8 = vand.u32 4294901760, %v7033_v34 }
  0xf4   :  { %4962 = vmatprep.subr.mxu1 %v6624_v3  ;;  %4973 = vmatprep.subr.mxu0 %v6874_v37  ;;  %v7053_v3 = vsub.f32 %v6968_v42, %v8760_v58  ;;  %v7068_v58 = vand.u32 4294901760, %v119_v52  ;;  %v7073_v32 = vsub.f32 %v121_v26, %v7035_v59  ;;  %v118_v37 = vld [vmem:[#allocation5 + $0x218] sm:$0xff]  ;;  %v9188_v34 = vand.u32 4294901760, %v7002_v36 }
  0xf5   :  { %9181 = vst [vmem:[#allocation33_spill] sm:$0xff] %v7041_v13  ;;  %4963 = vmatpush3.msra.mxu1 %v6626_v57  ;;  %1935 = vmatprep.mubr.f32.mxu1 %v9169_v10  ;;  %v7065_v10 = vand.u32 4294901760, %v136_v54  ;;  %v7081_v57 = vsub.f32 %v138_v63, %v7017_v19  ;;  %v7091_v26 = vand.u32 4294901760, %v135_v56  ;;  %v9191_v63 = vand.u32 4294901760, %v7025_v60 }
  0xf6   :  { %4974 = vmatpush3.msra.mxu0 %v6862_v45  ;;  %1937 = vmatmul.mubr.f32.vlgmr.msra.gmra.mxu1 %v9173_v38  ;;  %9185 = vst [vmem:[#allocation24_spill] sm:$0xff] %v7068_v58  ;;  %v9186_v45 = vand.u32 4294901760, %v6985_v25 }
  0xf7   :  { %9184 = vst [vmem:[#allocation31_spill] sm:$0xff] %v7065_v10  ;;  %4975 = vmatprep.subr.mxu0 %v6894_v7  ;;  %5002 = vmatprep.subr.mxu1 %v2171_v53  ;;  %v9187_v7 = vand.u32 4294901760, %v6903_v22  ;;  %v7089_v53 = vsub.f32 %v7002_v36, %v9188_v34  ;;  %v2094_v22 = vand.u32 4294901760, %v7058_v6  ;;  %v7103_v34 = vsub.f32 %v120_v48, %v7060_v16  ;;  %v117_v48 = vld [vmem:[#allocation5 + $0x210] sm:$0xff] }
  0xf8   :  { %v7078_v38 = vsub.f32 %v6985_v25, %v9186_v45  ;;  %4976 = vmatpush3.msra.mxu0 %v6886_v47  ;;  %v9189_v45 = vand.u32 4294901760, %v6997_v62  ;;  %v45_v25 = vld [vmem:[#allocation2 + $0x20] sm:$0xff]  ;;  %v134_v47 = vld [vmem:[#allocation5 + $0x298] sm:$0xff]  ;;  %v7119_v6 = vand.u32 4294901760, %v118_v37 }
  0xf9   :  { %5003 = vmatpush3.msra.mxu1 %v9187_v7  ;;  %4977 = vmatprep.subr.mxu0 %v6909_v11  ;;  %v2206_v7 = vand.u32 4294901760, %v7053_v3  ;;  %v7117_v3 = vsub.f32 %v119_v52, %v7068_v58  ;;  %v7121_v11 = vand.u32 4294901760, %v46_v5  ;;  %v7131_v52 = vand.u32 4294901760, %v45_v25 }
  0xfa   :  { %v7096_v29 = vsub.f32 %v6997_v62, %v9189_v45  ;;  %5004 = vmatprep.subr.mxu1 %v2178_v31  ;;  %4978 = vmatpush3.msra.mxu0 %v6911_v55  ;;  %v9190_v45 = vand.u32 4294901760, %v6935_v0  ;;  %v7114_v31 = vsub.f32 %v7025_v60, %v9191_v63  ;;  %v2101_v0 = vand.u32 4294901760, %v7078_v38  ;;  %v133_v55 = vld [vmem:[#allocation5 + $0x290] sm:$0xff] }
  0xfb   :  { %9192 = vst [vmem:[#allocation23_spill] sm:$0xff] %v7121_v11  ;;  %4979 = vmatprep.subr.mxu0 %v6952_v27  ;;  %v7129_v63 = vsub.f32 %v136_v54, %v7065_v10  ;;  %9194 = vst [vmem:[#allocation39_spill] sm:$0xff] %v7131_v52  ;;  %v9195_v62 = vand.u32 4294901760, %v6976_v50  ;;  %v2213_v27 = vand.u32 4294901760, %v7089_v53  ;;  %v9196_v38 = vand.u32 4294901760, %v7041_v13  ;;  %v132_v54 = vld [vmem:[#allocation5 + $0x288] sm:$0xff]  ;;  %2279 = vmatprep.mubr.f32.mxu1 %v7121_v11 }
  0xfc   :  { %5005 = vmatpush3.msra.mxu1 %v9190_v45  ;;  %4980 = vmatpush3.msra.mxu0 %v6937_v24  ;;  %v2108_v14 = vand.u32 4294901760, %v7096_v29  ;;  %v7147_v60 = vand.u32 4294901760, %v117_v48  ;;  %v7151_v29 = vsub.f32 %v135_v56, %v7091_v26  ;;  %v9197_v53 = vand.u32 4294901760, %v6990_v46 }
  0xfd   :  { %5006 = vmatprep.subr.mxu1 %v9193_v40  ;;  %v7138_v40 = vand.u32 4294901760, %v134_v47  ;;  %v7143_v45 = vsub.f32 %v7041_v13, %v9196_v38  ;;  %4981 = vmatprep.subr.mxu0 %v6978_v21  ;;  %v2220_v38 = vand.u32 4294901760, %v7114_v31  ;;  %v7158_v21 = vsub.f32 %v118_v37, %v7119_v6  ;;  %v131_v31 = vld [vmem:[#allocation5 + $0x280] sm:$0xff] }
  0xfe   :  { %5007 = vmatpush3.msra.mxu1 %v9195_v62  ;;  %v116_v62 = vld [vmem:[#allocation5 + $0x208] sm:$0xff]  ;;  %4982 = vmatpush3.msra.mxu0 %v6954_v20  ;;  %v7163_v24 = vsub.f32 %v46_v5, %v7121_v11  ;;  %v9199_v56 = vand.u32 4294901760, %v7081_v57  ;;  %v7169_v20 = vand.u32 4294901760, %v132_v54  ;;  %v7173_v37 = vsub.f32 %v45_v25, %v7131_v52 }
  0xff   :  { %5008 = vmatprep.subr.mxu1 %v2192_v44  ;;  %v7160_v44 = vand.u32 4294901760, %v133_v55  ;;  %4983 = vmatprep.subr.mxu0 %v7017_v19  ;;  %v9200_v5 = vand.u32 4294901760, %v7022_v17  ;;  %v7179_v19 = vand.u32 4294901760, %v116_v62  ;;  %v7183_v13 = vsub.f32 %v134_v47, %v7138_v40  ;;  %v9236_v11 = vld [vmem:[#allocation31_spill] sm:$0xff] }
 0x100   :  { %5009 = vmatpush3.msra.mxu1 %v9197_v53  ;;  %v2226_v50 = vsub.f32 %v7081_v57, %v9199_v56  ;;  %v115_v53 = vld [vmem:[#allocation5 + $0x200] sm:$0xff]  ;;  %4984 = vmatpush3.msra.mxu0 %v6999_v1  ;;  %v9201_v25 = vand.u32 4294901760, %v7106_v30  ;;  %v7190_v1 = vsub.f32 %v117_v48, %v7147_v60  ;;  %v9202_v17 = vand.u32 4294901760, %v7073_v32 }
 0x101   :  { %9198 = vst [vmem:[#allocation38_spill] sm:$0xff] %v7160_v44  ;;  %5010 = vmatprep.subr.mxu1 %v2199_v8  ;;  %v2115_v8 = vand.u32 4294901760, %v7143_v45  ;;  %4985 = vmatprep.subr.mxu0 %v7043_v43  ;;  %v7197_v47 = vand.u32 4294901760, %v131_v31  ;;  %v7199_v56 = vand.u32 4294901760, %v115_v53 }
 0x102   :  { %5011 = vmatpush3.msra.mxu1 %v9200_v5  ;;  %v2233_v46 = vsub.f32 %v7106_v30, %v9201_v25  ;;  %v2121_v45 = vsub.f32 %v7073_v32, %v9202_v17  ;;  %4986 = vmatpush3.msra.mxu0 %v7035_v59  ;;  %v7203_v25 = vsub.f32 %v133_v55, %v7160_v44  ;;  %v2227_v48 = vand.u32 4294901760, %v2226_v50 }
 0x103   :  { %5012 = vmatprep.subr.mxu1 %v2206_v7  ;;  %4987 = vmatprep.subr.mxu0 %v7065_v10  ;;  %v9203_v17 = vand.u32 4294901760, %v7129_v63  ;;  %v7213_v7 = vsub.f32 %v116_v62, %v7179_v19  ;;  %v9204_v55 = vand.u32 4294901760, %v7103_v34  ;;  %v7220_v50 = vsub.f32 %v132_v54, %v7169_v20 }
 0x104   :  { %5013 = vmatpush3.msra.mxu1 %v2094_v22  ;;  %4988 = vmatpush3.msra.mxu0 %v7060_v16  ;;  %v2122_v22 = vand.u32 4294901760, %v2121_v45  ;;  %v9205_v59 = vand.u32 4294901760, %v7151_v29  ;;  %v9207_v54 = vand.u32 4294901760, %v7163_v24  ;;  %v9209_v45 = vand.u32 4294901760, %v7117_v3 }
 0x105   :  { %5014 = vmatprep.subr.mxu1 %v2213_v27  ;;  %v2240_v5 = vsub.f32 %v7129_v63, %v9203_v17  ;;  %v2128_v10 = vsub.f32 %v7103_v34, %v9204_v55  ;;  %4989 = vmatprep.subr.mxu0 %v7091_v26  ;;  %v2234_v17 = vand.u32 4294901760, %v2233_v46  ;;  %v7229_v55 = vsub.f32 %v115_v53, %v7199_v56 }
 0x106   :  { %5015 = vmatpush3.msra.mxu1 %v2101_v0  ;;  %v2247_v0 = vsub.f32 %v7151_v29, %v9205_v59  ;;  %4990 = vmatpush3.msra.mxu0 %v7068_v58  ;;  %v2041_v27 = vsub.f32 %v7163_v24, %v9207_v54  ;;  %v7236_v46 = vsub.f32 %v131_v31, %v7197_v47  ;;  %v9210_v53 = vand.u32 4294901760, %v7173_v37 }
 0x107   :  { %5016 = vmatprep.subr.mxu1 %v2220_v38  ;;  %9206 = vst [vmem:[#allocation35_spill] sm:$0xff] %v7229_v55  ;;  %4991 = vmatprep.subr.mxu0 %v7138_v40  ;;  %v2241_v59 = vand.u32 4294901760, %v2240_v5  ;;  %v2129_v54 = vand.u32 4294901760, %v2128_v10  ;;  %v9211_v31 = vand.u32 4294901760, %v7183_v13  ;;  %v8806_v58 = vand.u32 4294901760, %v7229_v55 }
 0x108   :  { %5017 = vmatpush3.msra.mxu1 %v2108_v14  ;;  %9208 = vst [vmem:[#allocation34_spill] sm:$0xff] %v7236_v46  ;;  %v2135_v14 = vsub.f32 %v7117_v3, %v9209_v45  ;;  %v2047_v62 = vsub.f32 %v7173_v37, %v9210_v53  ;;  %4992 = vmatpush3.msra.mxu0 %v7119_v6  ;;  %v9212_v45 = vand.u32 4294901760, %v7158_v21  ;;  %v2042_v10 = vand.u32 4294901760, %v2041_v27 }
 0x109   :  { %5018 = vmatprep.subr.mxu1 %v2227_v48  ;;  %v2254_v38 = vsub.f32 %v7183_v13, %v9211_v31  ;;  %4993 = vmatprep.subr.mxu0 %v7160_v44  ;;  %v2248_v48 = vand.u32 4294901760, %v2247_v0  ;;  %v8807_v5 = vand.u32 4294901760, %v7236_v46  ;;  %v9214_v44 = vand.u32 4294901760, %v7190_v1 }
 0x10a   :  { %5019 = vmatpush3.msra.mxu1 %v2115_v8  ;;  %v2142_v53 = vsub.f32 %v7158_v21, %v9212_v45  ;;  %4994 = vmatpush3.msra.mxu0 %v7147_v60  ;;  %v9213_v8 = vand.u32 4294901760, %v7203_v25  ;;  %v2048_v0 = vand.u32 4294901760, %v2047_v62  ;;  %v9215_v27 = vand.u32 4294901760, %v7220_v50 }
 0x10b   :  { %5020 = vmatprep.subr.mxu1 %v2234_v17  ;;  %4995 = vmatprep.subr.mxu0 %v7169_v20  ;;  %v2136_v17 = vand.u32 4294901760, %v2135_v14  ;;  %v2149_v45 = vsub.f32 %v7190_v1, %v9214_v44  ;;  %v9216_v62 = vand.u32 4294901760, %v7213_v7 }
 0x10c   :  { %5021 = vmatpush3.msra.mxu1 %v2122_v22  ;;  %v2261_v31 = vsub.f32 %v7203_v25, %v9213_v8  ;;  %4996 = vmatpush3.msra.mxu0 %v7179_v19  ;;  %v2255_v22 = vand.u32 4294901760, %v2254_v38  ;;  %v2268_v8 = vsub.f32 %v7220_v50, %v9215_v27  ;;  %v2275_v38 = vsub.f32 %v7236_v46, %v8807_v5  ;;  %v9220_v27 = vld [vmem:[#allocation26_spill] sm:$0xff]  ;;  %v9234_v5 = vld [vmem:[#allocation20_spill] sm:$0xff] }
 0x10d   :  { %5022 = vmatprep.subr.mxu1 %v2241_v59  ;;  %4997 = vmatprep.subr.mxu0 %v7197_v47  ;;  %v2143_v59 = vand.u32 4294901760, %v2142_v53  ;;  %v2156_v14 = vsub.f32 %v7213_v7, %v9216_v62  ;;  %v9223_v62 = vld [vmem:[#allocation11_spill] sm:$0xff] }
 0x10e   :  { %5023 = vmatpush3.msra.mxu1 %v2129_v54  ;;  %4998 = vmatpush3.msra.mxu0 %v7199_v56  ;;  %v2262_v44 = vand.u32 4294901760, %v2261_v31  ;;  %v2150_v54 = vand.u32 4294901760, %v2149_v45  ;;  %v2269_v53 = vand.u32 4294901760, %v2268_v8  ;;  %v2276_v31 = vand.u32 4294901760, %v2275_v38  ;;  %v9218_v45 = vld [vmem:[#allocation19_spill] sm:$0xff]  ;;  %v9221_v8 = vld [vmem:[#allocation22_spill] sm:$0xff] }
 0x10f   :  { %5024 = vmatprep.subr.mxu1 %v2248_v48  ;;  %2043 = vmatprep.mubr.f32.mxu0 %v2042_v10  ;;  %v2163_v48 = vsub.f32 %v7229_v55, %v8806_v58  ;;  %v2157_v10 = vand.u32 4294901760, %v2156_v14  ;;  %v9224_v14 = vld [vmem:[#allocation28_spill] sm:$0xff]  ;;  %v9226_v38 = vld [vmem:[#allocation13_spill] sm:$0xff] }
 0x110   :  { %5025 = vmatpush3.msra.mxu1 %v2136_v17  ;;  %2049 = vmatmul.mubr.f32.vlgmr.msra.gmra.mxu0 %v2048_v0  ;;  %v9217_v0 = vld [vmem:[#allocation12_spill] sm:$0xff]  ;;  %v9233_v58 = vld [vmem:[#allocation21_spill] sm:$0xff] }
 0x111   :  { %5026 = vmatprep.subr.mxu1 %v2255_v22  ;;  %5037 = vmatprep.subr.mxu0 %v6854_v51  ;;  %v2164_v17 = vand.u32 4294901760, %v2163_v48  ;;  %v9219_v22 = vld [vmem:[#allocation25_spill] sm:$0xff]  ;;  %v9228_v48 = vld [vmem:[#allocation30_spill] sm:$0xff] }
 0x112   :  { %5027 = vmatpush3.msra.mxu1 %v2143_v59  ;;  %5038 = vmatpush3.msra.mxu0 %v6839_v41  ;;  %v9222_v59 = vld [vmem:[#allocation18_spill] sm:$0xff] }
 0x113   :  { %5028 = vmatprep.subr.mxu1 %v2262_v44  ;;  %5039 = vmatprep.subr.mxu0 %v6869_v23  ;;  %v9225_v44 = vld [vmem:[#allocation33_spill] sm:$0xff] }
 0x114   :  { %5029 = vmatpush3.msra.mxu1 %v2150_v54  ;;  %5040 = vmatpush3.msra.mxu0 %v6860_v2  ;;  %v9227_v54 = vld [vmem:[#allocation29_spill] sm:$0xff] }
 0x115   :  { %5030 = vmatprep.subr.mxu1 %v2269_v53  ;;  %5041 = vmatprep.subr.mxu0 %v6877_v12  ;;  %v9229_v53 = vld [vmem:[#allocation15_spill] sm:$0xff] }
 0x116   :  { %5031 = vmatpush3.msra.mxu1 %v2157_v10  ;;  %5042 = vmatpush3.msra.mxu0 %v6883_v49  ;;  %v9230_v10 = vld [vmem:[#allocation14_spill] sm:$0xff] }
 0x117   :  { %5032 = vmatprep.subr.mxu1 %v2276_v31  ;;  %5043 = vmatprep.subr.mxu0 %v6915_v18  ;;  %v9231_v31 = vld [vmem:[#allocation16_spill] sm:$0xff] }
 0x118   :  { %5033 = vmatpush3.msra.mxu1 %v2164_v17  ;;  %5044 = vmatpush3.msra.mxu0 %v6892_v9  ;;  %v9232_v17 = vld [vmem:[#allocation17_spill] sm:$0xff] }
 0x119   :  { %2281 = vmatmul.mubr.f32.vlgmr.msra.gmra.mxu1 %v7131_v52  ;;  %5045 = vmatprep.subr.mxu0 %v6941_v39  ;;  %v9235_v52 = vld [vmem:[#allocation27_spill] sm:$0xff] }
 0x11a   :  { %5072 = vmatprep.subr.mxu1 %v6828_v4  ;;  %5046 = vmatpush3.msra.mxu0 %v6926_v33 }
 0x11b   :  { %5073 = vmatpush3.msra.mxu1 %v6820_v15  ;;  %5047 = vmatprep.subr.mxu0 %v6968_v42 }
 0x11c   :  { %5074 = vmatprep.subr.mxu1 %v6841_v35  ;;  %5048 = vmatpush3.msra.mxu0 %v6959_v61 }
 0x11d   :  { %5075 = vmatpush3.msra.mxu1 %v6833_v28  ;;  %5049 = vmatprep.subr.mxu0 %v7002_v36 }
 0x11e   :  { %5076 = vmatprep.subr.mxu1 %v9217_v0  ;;  %5050 = vmatpush3.msra.mxu0 %v9218_v45 }
 0x11f   :  { %5077 = vmatpush3.msra.mxu1 %v9219_v22  ;;  %5051 = vmatprep.subr.mxu0 %v9220_v27 }
 0x120   :  { %5078 = vmatprep.subr.mxu1 %v9221_v8  ;;  %5052 = vmatpush3.msra.mxu0 %v9222_v59 }
 0x121   :  { %5079 = vmatpush3.msra.mxu1 %v9223_v62  ;;  %5053 = vmatprep.subr.mxu0 %v7081_v57 }
 0x122   :  { %5080 = vmatprep.subr.mxu1 %v9224_v14  ;;  %5054 = vmatpush3.msra.mxu0 %v9225_v44 }
 0x123   :  { %5081 = vmatpush3.msra.mxu1 %v9226_v38  ;;  %5055 = vmatprep.subr.mxu0 %v7106_v30 }
 0x124   :  { %5082 = vmatprep.subr.mxu1 %v9227_v54  ;;  %5056 = vmatpush3.msra.mxu0 %v7073_v32 }
 0x125   :  { %5083 = vmatpush3.msra.mxu1 %v9228_v48  ;;  %5057 = vmatprep.subr.mxu0 %v7129_v63 }
 0x126   :  { %5084 = vmatprep.subr.mxu1 %v9229_v53  ;;  %5058 = vmatpush3.msra.mxu0 %v7103_v34 }
 0x127   :  { %5085 = vmatpush3.msra.mxu1 %v9230_v10  ;;  %5059 = vmatprep.subr.mxu0 %v7151_v29 }
 0x128   :  { %5086 = vmatprep.subr.mxu1 %v9231_v31  ;;  %5060 = vmatpush3.msra.mxu0 %v7117_v3 }
 0x129   :  { %5087 = vmatpush3.msra.mxu1 %v9232_v17  ;;  %5061 = vmatprep.subr.mxu0 %v7183_v13 }
 0x12a   :  { %5088 = vmatprep.subr.mxu1 %v9233_v58  ;;  %5062 = vmatpush3.msra.mxu0 %v7158_v21 }
 0x12b   :  { %5089 = vmatpush3.msra.mxu1 %v9234_v5  ;;  %5063 = vmatprep.subr.mxu0 %v7203_v25 }
 0x12c   :  { %5090 = vmatprep.subr.mxu1 %v7043_v43  ;;  %5064 = vmatpush3.msra.mxu0 %v7190_v1  ;;  %v9237_v43 = vld [vmem:[#allocation24_spill] sm:$0xff] }
 0x12d   :  { %5091 = vmatpush3.msra.mxu1 %v9235_v52  ;;  %5065 = vmatprep.subr.mxu0 %v7220_v50 }
 0x12e   :  { %5092 = vmatprep.subr.mxu1 %v9236_v11  ;;  %5066 = vmatpush3.msra.mxu0 %v7213_v7  ;;  %v9238_v11 = vand.u32 4294901760, %v6854_v51  ;;  %v9243_v51 = vand.u32 4294901760, %v6877_v12  ;;  %v9248_v12 = vand.u32 4294901760, %v7173_v37 }
 0x12f   :  { %5093 = vmatpush3.msra.mxu1 %v7060_v16  ;;  %5067 = vmatprep.subr.mxu0 %v7236_v46  ;;  %v9239_v16 = vand.u32 4294901760, %v6839_v41  ;;  %v9240_v46 = vld [vmem:[#allocation38_spill] sm:$0xff]  ;;  %v9244_v41 = vand.u32 4294901760, %v6883_v49  ;;  %v9250_v49 = vand.u32 4294901760, %v6926_v33  ;;  %v9255_v33 = vand.u32 4294901760, %v9220_v27 }
 0x130   :  { %5094 = vmatprep.subr.mxu1 %v7091_v26  ;;  %5068 = vmatpush3.msra.mxu0 %v7229_v55  ;;  %v9241_v55 = vand.u32 4294901760, %v6869_v23  ;;  %v9245_v23 = vand.u32 4294901760, %v6915_v18  ;;  %v9251_v18 = vand.u32 4294901760, %v6968_v42  ;;  %v9258_v42 = vand.u32 4294901760, %v9225_v44 }
 0x131   :  { %2416 = vmatprep.mubr.f32.mxu0 %v7163_v24  ;;  %5095 = vmatpush3.msra.mxu1 %v9237_v43  ;;  %v9242_v43 = vand.u32 4294901760, %v6860_v2  ;;  %v9246_v2 = vand.u32 4294901760, %v7163_v24  ;;  %v9253_v24 = vand.u32 4294901760, %v7002_v36  ;;  %v9257_v36 = vand.u32 4294901760, %v7081_v57 }
 0x132   :  { %2419 = vmatmul.mubr.f32.vlgmr.msra.gmra.mxu0 %v7173_v37  ;;  %5096 = vmatprep.subr.mxu1 %v7138_v40  ;;  %v161_v37 = vld [vmem:[#allocation5 + $0x370] sm:$0xff]  ;;  %v9261_v27 = vand.u32 4294901760, %v7129_v63  ;;  %v9264_v63 = vand.u32 4294901760, %v7151_v29 }
 0x133   :  { %5107 = vmatprep.subr.mxu0 %v9238_v11  ;;  %5097 = vmatpush3.msra.mxu1 %v7119_v6  ;;  %v9247_v11 = vand.u32 4294901760, %v6892_v9  ;;  %v9252_v9 = vand.u32 4294901760, %v6959_v61  ;;  %v157_v29 = vld [vmem:[#allocation5 + $0x350] sm:$0xff] }
 0x134   :  { %5108 = vmatpush3.msra.mxu0 %v9239_v16  ;;  %5098 = vmatprep.subr.mxu1 %v9240_v46  ;;  %v9249_v16 = vand.u32 4294901760, %v6941_v39  ;;  %v9256_v39 = vand.u32 4294901760, %v9222_v59 }
 0x135   :  { %5109 = vmatprep.subr.mxu0 %v9241_v55  ;;  %5099 = vmatpush3.msra.mxu1 %v7147_v60  ;;  %v176_v55 = vld [vmem:[#allocation5 + $0x3e8] sm:$0xff] }
 0x136   :  { %5110 = vmatpush3.msra.mxu0 %v9242_v43  ;;  %5100 = vmatprep.subr.mxu1 %v7169_v20  ;;  %v7416_v59 = vand.u32 4294901760, %v176_v55 }
 0x137   :  { %5111 = vmatprep.subr.mxu0 %v9243_v51  ;;  %5101 = vmatpush3.msra.mxu1 %v7179_v19  ;;  %v158_v51 = vld [vmem:[#allocation5 + $0x358] sm:$0xff] }
 0x138   :  { %5112 = vmatpush3.msra.mxu0 %v9244_v41  ;;  %5102 = vmatprep.subr.mxu1 %v7197_v47  ;;  %9262 = vst [vmem:[#allocation36_spill] sm:$0xff] %v7416_v59  ;;  %v9269_v41 = vand.u32 4294901760, %v7183_v13 }
 0x139   :  { %5113 = vmatprep.subr.mxu0 %v9245_v23  ;;  %5103 = vmatpush3.msra.mxu1 %v7199_v56 }
 0x13a   :  { %2523 = vmatprep.mubr.f32.mxu1 %v9246_v2  ;;  %5114 = vmatpush3.msra.mxu0 %v9247_v11  ;;  %v7450_v2 = vsub.f32 %v176_v55, %v7416_v59  ;;  %v9283_v55 = vld [vmem:[#allocation34_spill] sm:$0xff] }
 0x13b   :  { %2527 = vmatmul.mubr.f32.vlgmr.msra.gmra.mxu1 %v9248_v12  ;;  %5115 = vmatprep.subr.mxu0 %v9249_v16  ;;  %v172_v12 = vld [vmem:[#allocation5 + $0x3c8] sm:$0xff]  ;;  %v9273_v16 = vld [vmem:[#allocation32_spill] sm:$0xff] }
 0x13c   :  { %5142 = vmatprep.subr.mxu1 %v6828_v4  ;;  %5116 = vmatpush3.msra.mxu0 %v9250_v49  ;;  %v9254_v4 = vand.u32 4294901760, %v9218_v45  ;;  %v9260_v45 = vand.u32 4294901760, %v7073_v32  ;;  %v9263_v32 = vand.u32 4294901760, %v7103_v34 }
 0x13d   :  { %5143 = vmatpush3.msra.mxu1 %v6820_v15  ;;  %5117 = vmatprep.subr.mxu0 %v9251_v18  ;;  %v178_v15 = vld [vmem:[#allocation5 + $0x3f8] sm:$0xff]  ;;  %v7464_v18 = vand.u32 4294901760, %v158_v51 }
 0x13e   :  { %5144 = vmatprep.subr.mxu1 %v6841_v35  ;;  %5118 = vmatpush3.msra.mxu0 %v9252_v9  ;;  %v162_v35 = vld [vmem:[#allocation5 + $0x378] sm:$0xff]  ;;  %v7396_v61 = vand.u32 4294901760, %v178_v15  ;;  %v7467_v9 = vand.u32 4294901760, %v157_v29 }
 0x13f   :  { %5145 = vmatpush3.msra.mxu1 %v6833_v28  ;;  %5119 = vmatprep.subr.mxu0 %v9253_v24  ;;  %v177_v28 = vld [vmem:[#allocation5 + $0x3f0] sm:$0xff]  ;;  %v7401_v43 = vand.u32 4294901760, %v162_v35  ;;  %9274 = vst [vmem:[#allocation22_spill] sm:$0xff] %v7464_v18 }
 0x140   :  { %5146 = vmatprep.subr.mxu1 %v9217_v0  ;;  %5120 = vmatpush3.msra.mxu0 %v9254_v4  ;;  %v9259_v0 = vand.u32 4294901760, %v7106_v30  ;;  %v7406_v57 = vand.u32 4294901760, %v177_v28  ;;  %v175_v30 = vld [vmem:[#allocation5 + $0x3e0] sm:$0xff]  ;;  %9275 = vst [vmem:[#allocation18_spill] sm:$0xff] %v7467_v9 }
 0x141   :  { %5147 = vmatpush3.msra.mxu1 %v9219_v22  ;;  %5121 = vmatprep.subr.mxu0 %v9255_v33  ;;  %v160_v22 = vld [vmem:[#allocation5 + $0x368] sm:$0xff]  ;;  %v7425_v44 = vsub.f32 %v162_v35, %v7401_v43  ;;  %v7438_v34 = vand.u32 4294901760, %v175_v30  ;;  %v7489_v35 = vand.u32 4294901760, %v172_v12 }
 0x142   :  { %5148 = vmatprep.subr.mxu1 %v9221_v8  ;;  %5122 = vmatpush3.msra.mxu0 %v9256_v39  ;;  %v7414_v8 = vand.u32 4294901760, %v161_v37  ;;  %v9279_v33 = vld [vmem:[#allocation31_spill] sm:$0xff]  ;;  %v8817_v39 = vand.u32 4294901760, %v7450_v2 }
 0x143   :  { %5149 = vmatpush3.msra.mxu1 %v9223_v62  ;;  %5123 = vmatprep.subr.mxu0 %v9257_v36  ;;  %v159_v62 = vld [vmem:[#allocation5 + $0x360] sm:$0xff]  ;;  %9267 = vst [vmem:[#allocation19_spill] sm:$0xff] %v7438_v34  ;;  %v8822_v13 = vand.u32 4294901760, %v7425_v44  ;;  %v7478_v4 = vsub.f32 %v175_v30, %v7438_v34  ;;  %9280 = vst [vmem:[#allocation28_spill] sm:$0xff] %v7489_v35  ;;  %v9281_v36 = vand.u32 4294901760, %v7213_v7 }
 0x144   :  { %5150 = vmatprep.subr.mxu1 %v9224_v14  ;;  %5124 = vmatpush3.msra.mxu0 %v9258_v42  ;;  %v7419_v14 = vsub.f32 %v178_v15, %v7396_v61  ;;  %v9278_v15 = vand.u32 4294901760, %v7220_v50  ;;  %v9282_v42 = vld [vmem:[#allocation37_spill] sm:$0xff]  ;;  %v171_v30 = vld [vmem:[#allocation5 + $0x3c0] sm:$0xff] }
 0x145   :  { %5151 = vmatpush3.msra.mxu1 %v9226_v38  ;;  %5125 = vmatprep.subr.mxu0 %v9259_v0  ;;  %v7430_v38 = vand.u32 4294901760, %v160_v22  ;;  %v7498_v50 = vsub.f32 %v7425_v44, %v8822_v13  ;;  %v9284_v0 = vand.u32 4294901760, %v9283_v55 }
 0x146   :  { %5152 = vmatprep.subr.mxu1 %v9227_v54  ;;  %5126 = vmatpush3.msra.mxu0 %v9260_v45  ;;  %v174_v54 = vld [vmem:[#allocation5 + $0x3d8] sm:$0xff]  ;;  %v8823_v23 = vand.u32 4294901760, %v7419_v14  ;;  %v7507_v45 = vsub.f32 %v158_v51, %v7464_v18 }
 0x147   :  { %5153 = vmatpush3.msra.mxu1 %v9228_v48  ;;  %5127 = vmatprep.subr.mxu0 %v9261_v27  ;;  %9265 = vst [vmem:[#allocation12_spill] sm:$0xff] %v7430_v38  ;;  %v7433_v48 = vsub.f32 %v177_v28, %v7406_v57  ;;  %v7455_v11 = vand.u32 4294901760, %v174_v54  ;;  %v7462_v49 = vsub.f32 %v160_v22, %v7430_v38  ;;  %v156_v28 = vld [vmem:[#allocation5 + $0x348] sm:$0xff] }
 0x148   :  { %5154 = vmatprep.subr.mxu1 %v9229_v53  ;;  %5128 = vmatpush3.msra.mxu0 %v9263_v32  ;;  %v9266_v53 = vand.u32 4294901760, %v7117_v3  ;;  %v173_v3 = vld [vmem:[#allocation5 + $0x3d0] sm:$0xff]  ;;  %v7515_v22 = vsub.f32 %v157_v29, %v7467_v9  ;;  %v9285_v32 = vld [vmem:[#allocation35_spill] sm:$0xff] }
 0x149   :  { %5155 = vmatpush3.msra.mxu1 %v9230_v10  ;;  %5129 = vmatprep.subr.mxu0 %v9264_v63  ;;  %v7440_v10 = vand.u32 4294901760, %v159_v62  ;;  %9271 = vst [vmem:[#allocation26_spill] sm:$0xff] %v7455_v11  ;;  %v8816_v27 = vand.u32 4294901760, %v7462_v49  ;;  %v9286_v63 = vand.u32 4294901760, %v9285_v32  ;;  %v9289_v29 = vld [vmem:[#allocation24_spill] sm:$0xff]  ;;  %v8825_v32 = vand.u32 4294901760, %v7507_v45 }
 0x14a   :  { %5156 = vmatprep.subr.mxu1 %v9231_v31  ;;  %5130 = vmatpush3.msra.mxu0 %v9266_v53  ;;  %v7446_v31 = vsub.f32 %v161_v37, %v7414_v8  ;;  %v7501_v37 = vsub.f32 %v174_v54, %v7455_v11  ;;  %v9287_v54 = vld [vmem:[#allocation23_spill] sm:$0xff]  ;;  %v8820_v53 = vand.u32 4294901760, %v7478_v4 }
 0x14b   :  { %5157 = vmatpush3.msra.mxu1 %v9232_v17  ;;  %9268 = vst [vmem:[#allocation25_spill] sm:$0xff] %v7440_v10  ;;  %5131 = vmatprep.subr.mxu0 %v9269_v41  ;;  %v9270_v17 = vand.u32 4294901760, %v7158_v21  ;;  %v8819_v21 = vand.u32 4294901760, %v7433_v48  ;;  %v7473_v24 = vsub.f32 %v159_v62, %v7440_v10  ;;  %v155_v62 = vld [vmem:[#allocation5 + $0x340] sm:$0xff] }
 0x14c   :  { %5158 = vmatprep.subr.mxu1 %v9233_v58  ;;  %v9272_v58 = vand.u32 4294901760, %v7203_v25  ;;  %v7475_v25 = vand.u32 4294901760, %v173_v3  ;;  %2693 = vmatprep.mubr.f32.mxu0 %v9287_v54  ;;  %v8824_v55 = vand.u32 4294901760, %v7501_v37 }
 0x14d   :  { %5132 = vmatpush3.msra.mxu0 %v9270_v17  ;;  %5159 = vmatpush3.msra.mxu1 %v9234_v5  ;;  %v9276_v5 = vand.u32 4294901760, %v7190_v1  ;;  %v7486_v1 = vsub.f32 %v7419_v14, %v8823_v23  ;;  %v7512_v7 = vsub.f32 %v7433_v48, %v8819_v21  ;;  %v8821_v51 = vand.u32 4294901760, %v7473_v24  ;;  %v9290_v17 = vld [vmem:[#allocation39_spill] sm:$0xff] }
 0x14e   :  { %5133 = vmatprep.subr.mxu0 %v9272_v58  ;;  %5160 = vmatprep.subr.mxu1 %v9273_v16  ;;  %9277 = vst [vmem:[#allocation11_spill] sm:$0xff] %v7475_v25  ;;  %v7526_v41 = vsub.f32 %v173_v3, %v7475_v25  ;;  %v152_v23 = vld [vmem:[#allocation5 + $0x328] sm:$0xff]  ;;  %v151_v58 = vld [vmem:[#allocation5 + $0x320] sm:$0xff] }
 0x14f   :  { %5134 = vmatpush3.msra.mxu0 %v9276_v5  ;;  %5161 = vmatpush3.msra.mxu1 %v9235_v52  ;;  %v8818_v52 = vand.u32 4294901760, %v7446_v31  ;;  %v7539_v5 = vsub.f32 %v7450_v2, %v8817_v39 }
 0x150   :  { %5135 = vmatprep.subr.mxu0 %v9278_v15  ;;  %5162 = vmatprep.subr.mxu1 %v9279_v33  ;;  %v7542_v15 = vsub.f32 %v172_v12, %v7489_v35  ;;  %v7547_v33 = vand.u32 4294901760, %v171_v30  ;;  %v8827_v39 = vand.u32 4294901760, %v7526_v41 }
 0x151   :  { %5136 = vmatpush3.msra.mxu0 %v9281_v36  ;;  %5163 = vmatpush3.msra.mxu1 %v9282_v42  ;;  %v7534_v16 = vsub.f32 %v7446_v31, %v8818_v52  ;;  %v7549_v36 = vand.u32 4294901760, %v155_v62  ;;  %v170_v42 = vld [vmem:[#allocation5 + $0x3b8] sm:$0xff]  ;;  %v153_v52 = vld [vmem:[#allocation5 + $0x330] sm:$0xff] }
 0x152   :  { %5137 = vmatprep.subr.mxu0 %v9284_v0  ;;  %5164 = vmatprep.subr.mxu1 %v7091_v26  ;;  %v7521_v26 = vand.u32 4294901760, %v156_v28  ;;  %9291 = vst [vmem:[#allocation13_spill] sm:$0xff] %v7547_v33  ;;  %v154_v0 = vld [vmem:[#allocation5 + $0x338] sm:$0xff]  ;;  %v7582_v21 = vand.u32 4294901760, %v170_v42 }
 0x153   :  { %5138 = vmatpush3.msra.mxu0 %v9286_v63  ;;  %5165 = vmatpush3.msra.mxu1 %v9289_v29  ;;  %9292 = vst [vmem:[#allocation29_spill] sm:$0xff] %v7549_v36  ;;  %v8826_v63 = vand.u32 4294901760, %v7515_v22  ;;  %v7570_v29 = vsub.f32 %v7478_v4, %v8820_v53  ;;  %v8828_v53 = vand.u32 4294901760, %v7542_v15  ;;  %v7595_v13 = vand.u32 4294901760, %v154_v0 }
 0x154   :  { %9288 = vst [vmem:[#allocation33_spill] sm:$0xff] %v7521_v26  ;;  %2695 = vmatmul.mubr.f32.vlgmr.msra.gmra.mxu0 %v9290_v17  ;;  %5166 = vmatprep.subr.mxu1 %v7138_v40  ;;  %v7558_v40 = vsub.f32 %v7462_v49, %v8816_v27  ;;  %v7575_v27 = vsub.f32 %v7473_v24, %v8821_v51  ;;  %9294 = vst [vmem:[#allocation15_spill] sm:$0xff] %v7582_v21 }
 0x155   :  { %5177 = vmatprep.subr.mxu0 %v7396_v61  ;;  %5167 = vmatpush3.msra.mxu1 %v7119_v6  ;;  %v7565_v6 = vsub.f32 %v156_v28, %v7521_v26  ;;  %v7588_v51 = vsub.f32 %v155_v62, %v7549_v36  ;;  %9296 = vst [vmem:[#allocation16_spill] sm:$0xff] %v7595_v13 }
 0x156   :  { %5178 = vmatpush3.msra.mxu0 %v7401_v43  ;;  %5168 = vmatprep.subr.mxu1 %v9240_v46  ;;  %v2928_v46 = vand.u32 4294901760, %v7534_v16  ;;  %v169_v16 = vld [vmem:[#allocation5 + $0x3b0] sm:$0xff]  ;;  %v7598_v28 = vsub.f32 %v171_v30, %v7547_v33  ;;  %v7606_v62 = vsub.f32 %v7507_v45, %v8825_v32  ;;  %v7613_v12 = vsub.f32 %v7515_v22, %v8826_v63  ;;  %v168_v32 = vld [vmem:[#allocation5 + $0x3a8] sm:$0xff]  ;;  %v167_v30 = vld [vmem:[#allocation5 + $0x3a0] sm:$0xff] }
 0x157   :  { %5179 = vmatprep.subr.mxu0 %v7406_v57  ;;  %9293 = vst [vmem:[#allocation30_spill] sm:$0xff] %v7565_v6  ;;  %5169 = vmatpush3.msra.mxu1 %v7147_v60  ;;  %9295 = vst [vmem:[#allocation14_spill] sm:$0xff] %v7588_v51  ;;  %v7593_v60 = vsub.f32 %v7501_v37, %v8824_v55  ;;  %v7608_v55 = vand.u32 4294901760, %v153_v52  ;;  %v7627_v63 = vand.u32 4294901760, %v169_v16 }
 0x158   :  { %5180 = vmatpush3.msra.mxu0 %v7414_v8  ;;  %5170 = vmatprep.subr.mxu1 %v7169_v20  ;;  %9297 = vst [vmem:[#allocation17_spill] sm:$0xff] %v7598_v28  ;;  %v2935_v20 = vand.u32 4294901760, %v7558_v40  ;;  %v7622_v40 = vsub.f32 %v7526_v41, %v8827_v39  ;;  %v7637_v39 = vsub.f32 %v170_v42, %v7582_v21  ;;  %v2949_v42 = vand.u32 4294901760, %v7606_v62 }
 0x159   :  { %5181 = vmatprep.subr.mxu0 %v7416_v59  ;;  %5171 = vmatpush3.msra.mxu1 %v7179_v19  ;;  %9298 = vst [vmem:[#allocation21_spill] sm:$0xff] %v7608_v55  ;;  %v3054_v19 = vand.u32 4294901760, %v7570_v29  ;;  %9299 = vst [vmem:[#allocation20_spill] sm:$0xff] %v7627_v63  ;;  %v7634_v29 = vand.u32 4294901760, %v152_v23  ;;  %v7668_v62 = vand.u32 4294901760, %v151_v58  ;;  %v9308_v59 = vand.u32 4294901760, %v7598_v28 }
 0x15a   :  { %5182 = vmatpush3.msra.mxu0 %v7430_v38  ;;  %5172 = vmatprep.subr.mxu1 %v7197_v47  ;;  %v7632_v47 = vsub.f32 %v7542_v15, %v8828_v53  ;;  %9301 = vst [vmem:[#allocation38_spill] sm:$0xff] %v7637_v39  ;;  %v48_v38 = vld [vmem:[#allocation2 + $0x38] sm:$0xff]  ;;  %v9304_v53 = vand.u32 4294901760, %v7498_v50  ;;  %v3068_v3 = vand.u32 4294901760, %v7622_v40  ;;  %v166_v40 = vld [vmem:[#allocation5 + $0x398] sm:$0xff]  ;;  %v165_v50 = vld [vmem:[#allocation5 + $0x390] sm:$0xff] }
 0x15b   :  { %5183 = vmatprep.subr.mxu0 %v7438_v34  ;;  %5173 = vmatpush3.msra.mxu1 %v7199_v56  ;;  %9300 = vst [vmem:[#allocation27_spill] sm:$0xff] %v7634_v29  ;;  %v3061_v56 = vand.u32 4294901760, %v7593_v60  ;;  %v9302_v34 = vand.u32 4294901760, %v7486_v1  ;;  %v7655_v60 = vand.u32 4294901760, %v168_v32  ;;  %9306 = vst [vmem:[#allocation31_spill] sm:$0xff] %v7668_v62 }
 0x15c   :  { %2797 = vmatprep.mubr.f32.mxu1 %v9287_v54  ;;  %5184 = vmatpush3.msra.mxu0 %v7440_v10  ;;  %v7643_v54 = vsub.f32 %v154_v0, %v7595_v13  ;;  %v7652_v10 = vsub.f32 %v153_v52, %v7608_v55  ;;  %v150_v0 = vld [vmem:[#allocation5 + $0x318] sm:$0xff]  ;;  %v7666_v52 = vand.u32 4294901760, %v167_v30 }
 0x15d   :  { %2799 = vmatmul.mubr.f32.vlgmr.msra.gmra.mxu1 %v9290_v17  ;;  %5185 = vmatprep.subr.mxu0 %v7455_v11  ;;  %9303 = vst [vmem:[#allocation32_spill] sm:$0xff] %v7655_v60  ;;  %v149_v17 = vld [vmem:[#allocation5 + $0x310] sm:$0xff]  ;;  %v47_v11 = vld [vmem:[#allocation2 + $0x30] sm:$0xff] }
 0x15e   :  { %5212 = vmatprep.subr.mxu1 %v9302_v34  ;;  %5186 = vmatpush3.msra.mxu0 %v7464_v18  ;;  %v9305_v34 = vand.u32 4294901760, %v7565_v6  ;;  %v9307_v18 = vand.u32 4294901760, %v7512_v7 }
 0x15f   :  { %5213 = vmatpush3.msra.mxu1 %v9304_v53  ;;  %5187 = vmatprep.subr.mxu0 %v7475_v25  ;;  %v7675_v53 = vsub.f32 %v152_v23, %v7634_v29  ;;  %v7685_v25 = vsub.f32 %v7598_v28, %v9308_v59  ;;  %v7692_v23 = vand.u32 4294901760, %v150_v0  ;;  %v7703_v59 = vsub.f32 %v168_v32, %v7655_v60 }
 0x160   :  { %v7664_v1 = vsub.f32 %v7565_v6, %v9305_v34  ;;  %5214 = vmatprep.subr.mxu1 %v9307_v18  ;;  %v7679_v6 = vsub.f32 %v169_v16, %v7627_v63  ;;  %5188 = vmatpush3.msra.mxu0 %v7467_v9  ;;  %v9309_v18 = vand.u32 4294901760, %v7588_v51  ;;  %v7694_v34 = vand.u32 4294901760, %v48_v38 }
 0x161   :  { %5215 = vmatpush3.msra.mxu1 %v2928_v46  ;;  %5189 = vmatprep.subr.mxu0 %v7489_v35  ;;  %v9311_v16 = vand.u32 4294901760, %v7539_v5  ;;  %v7700_v9 = vand.u32 4294901760, %v149_v17  ;;  %v7705_v28 = vand.u32 4294901760, %v47_v11  ;;  %v7712_v35 = vand.u32 4294901760, %v166_v40 }
 0x162   :  { %v7690_v7 = vsub.f32 %v7588_v51, %v9309_v18  ;;  %9310 = vst [vmem:[#allocation37_spill] sm:$0xff] %v7694_v34  ;;  %5190 = vmatpush3.msra.mxu0 %v7521_v26  ;;  %v2963_v18 = vand.u32 4294901760, %v7664_v1  ;;  %v7710_v51 = vsub.f32 %v151_v58, %v7668_v62  ;;  %v9314_v32 = vand.u32 4294901760, %v7637_v39  ;;  %v164_v1 = vld [vmem:[#allocation5 + $0x388] sm:$0xff]  ;;  %3141 = vmatprep.mubr.f32.mxu1 %v7694_v34 }
 0x163   :  { %5216 = vmatprep.subr.mxu1 %v9311_v16  ;;  %9312 = vst [vmem:[#allocation34_spill] sm:$0xff] %v7705_v28  ;;  %5191 = vmatprep.subr.mxu0 %v7547_v33  ;;  %v7721_v46 = vand.u32 4294901760, %v165_v50  ;;  %v7725_v58 = vsub.f32 %v167_v30, %v7666_v52  ;;  %v9316_v5 = vand.u32 4294901760, %v7575_v27  ;;  %v148_v26 = vld [vmem:[#allocation5 + $0x308] sm:$0xff]  ;;  %v9317_v30 = vand.u32 4294901760, %v7643_v54 }
 0x164   :  { %5217 = vmatpush3.msra.mxu1 %v2935_v20  ;;  %9313 = vst [vmem:[#allocation35_spill] sm:$0xff] %v7710_v51  ;;  %v7719_v16 = vsub.f32 %v7637_v39, %v9314_v32  ;;  %5192 = vmatpush3.msra.mxu0 %v7549_v36  ;;  %v2970_v33 = vand.u32 4294901760, %v7690_v7  ;;  %v7733_v32 = vsub.f32 %v150_v0, %v7692_v23  ;;  %v163_v7 = vld [vmem:[#allocation5 + $0x380] sm:$0xff] }
 0x165   :  { %5218 = vmatprep.subr.mxu1 %v3054_v19  ;;  %9315 = vst [vmem:[#allocation23_spill] sm:$0xff] %v7721_v46  ;;  %v3082_v19 = vand.u32 4294901760, %v7685_v25  ;;  %v7736_v39 = vsub.f32 %v48_v38, %v7694_v34  ;;  %5193 = vmatprep.subr.mxu0 %v7582_v21  ;;  %v2976_v20 = vsub.f32 %v7643_v54, %v9317_v30  ;;  %v9318_v38 = vand.u32 4294901760, %v7652_v10  ;;  %v9354_v34 = vld [vmem:[#allocation21_spill] sm:$0xff] }
 0x166   :  { %5219 = vmatpush3.msra.mxu1 %v9316_v5  ;;  %v7743_v27 = vsub.f32 %v149_v17, %v7700_v9  ;;  %v147_v5 = vld [vmem:[#allocation5 + $0x300] sm:$0xff]  ;;  %v7747_v0 = vsub.f32 %v47_v11, %v7705_v28  ;;  %5194 = vmatpush3.msra.mxu0 %v7595_v13  ;;  %v7753_v21 = vand.u32 4294901760, %v164_v1  ;;  %v7757_v17 = vsub.f32 %v166_v40, %v7712_v35 }
 0x167   :  { %5220 = vmatprep.subr.mxu1 %v3061_v56  ;;  %v2983_v56 = vsub.f32 %v7652_v10, %v9318_v38  ;;  %5195 = vmatprep.subr.mxu0 %v7627_v63  ;;  %v3089_v11 = vand.u32 4294901760, %v7719_v16  ;;  %v9319_v25 = vand.u32 4294901760, %v7679_v6  ;;  %v7764_v13 = vand.u32 4294901760, %v148_v26 }
 0x168   :  { %5221 = vmatpush3.msra.mxu1 %v2949_v42  ;;  %5196 = vmatpush3.msra.mxu0 %v7608_v55  ;;  %v9320_v30 = vand.u32 4294901760, %v7613_v12  ;;  %v7770_v40 = vand.u32 4294901760, %v163_v7  ;;  %v7772_v36 = vand.u32 4294901760, %v147_v5  ;;  %v7776_v16 = vsub.f32 %v165_v50, %v7721_v46 }
 0x169   :  { %5222 = vmatprep.subr.mxu1 %v3068_v3  ;;  %v3095_v42 = vsub.f32 %v7679_v6, %v9319_v25  ;;  %5197 = vmatprep.subr.mxu0 %v7655_v60  ;;  %v9321_v25 = vand.u32 4294901760, %v7632_v47  ;;  %v2977_v38 = vand.u32 4294901760, %v2976_v20  ;;  %v9322_v55 = vand.u32 4294901760, %v7703_v59 }
 0x16a   :  { %5223 = vmatpush3.msra.mxu1 %v9320_v30  ;;  %v8871_v30 = vand.u32 4294901760, %v7710_v51  ;;  %5198 = vmatpush3.msra.mxu0 %v7634_v29  ;;  %v2984_v3 = vand.u32 4294901760, %v2983_v56  ;;  %v9323_v50 = vand.u32 4294901760, %v7675_v53  ;;  %v7792_v20 = vsub.f32 %v164_v1, %v7753_v21 }
 0x16b   :  { %5224 = vmatprep.subr.mxu1 %v9321_v25  ;;  %v3102_v12 = vsub.f32 %v7703_v59, %v9322_v55  ;;  %5199 = vmatprep.subr.mxu0 %v7666_v52  ;;  %v3096_v55 = vand.u32 4294901760, %v3095_v42  ;;  %v7796_v25 = vsub.f32 %v148_v26, %v7764_v13  ;;  %v9324_v63 = vand.u32 4294901760, %v7725_v58 }
 0x16c   :  { %5225 = vmatpush3.msra.mxu1 %v2963_v18  ;;  %v2990_v60 = vsub.f32 %v7675_v53, %v9323_v50  ;;  %5200 = vmatpush3.msra.mxu0 %v7668_v62  ;;  %v7804_v50 = vsub.f32 %v147_v5, %v7772_v36  ;;  %v9326_v1 = vand.u32 4294901760, %v7736_v39  ;;  %v7811_v26 = vsub.f32 %v163_v7, %v7770_v40 }
 0x16d   :  { %5226 = vmatprep.subr.mxu1 %v3082_v19  ;;  %v3109_v18 = vsub.f32 %v7725_v58, %v9324_v63  ;;  %5201 = vmatprep.subr.mxu0 %v7712_v35  ;;  %v3103_v63 = vand.u32 4294901760, %v3102_v12  ;;  %v9328_v5 = vand.u32 4294901760, %v7747_v0  ;;  %v9329_v7 = vand.u32 4294901760, %v7757_v17 }
 0x16e   :  { %5227 = vmatpush3.msra.mxu1 %v2970_v33  ;;  %9325 = vst [vmem:[#allocation24_spill] sm:$0xff] %v7804_v50  ;;  %v2903_v19 = vsub.f32 %v7736_v39, %v9326_v1  ;;  %9327 = vst [vmem:[#allocation39_spill] sm:$0xff] %v7811_v26  ;;  %v2997_v33 = vsub.f32 %v7710_v51, %v8871_v30  ;;  %5202 = vmatpush3.msra.mxu0 %v7692_v23  ;;  %v2991_v1 = vand.u32 4294901760, %v2990_v60 }
 0x16f   :  { %5228 = vmatprep.subr.mxu1 %v3089_v11  ;;  %v2909_v56 = vsub.f32 %v7747_v0, %v9328_v5  ;;  %v3116_v42 = vsub.f32 %v7757_v17, %v9329_v7  ;;  %5203 = vmatprep.subr.mxu0 %v7721_v46  ;;  %v3110_v12 = vand.u32 4294901760, %v3109_v18  ;;  %v9330_v30 = vand.u32 4294901760, %v7733_v32 }
 0x170   :  { %5229 = vmatpush3.msra.mxu1 %v2977_v38  ;;  %5204 = vmatpush3.msra.mxu0 %v7700_v9  ;;  %v2904_v60 = vand.u32 4294901760, %v2903_v19  ;;  %v9331_v38 = vand.u32 4294901760, %v7776_v16  ;;  %v8875_v11 = vand.u32 4294901760, %v7811_v26  ;;  %v9332_v46 = vand.u32 4294901760, %v7743_v27 }
 0x171   :  { %5230 = vmatprep.subr.mxu1 %v3096_v55  ;;  %v3004_v5 = vsub.f32 %v7733_v32, %v9330_v30  ;;  %5205 = vmatprep.subr.mxu0 %v7753_v21  ;;  %v2998_v55 = vand.u32 4294901760, %v2997_v33  ;;  %v2910_v18 = vand.u32 4294901760, %v2909_v56  ;;  %v8874_v47 = vand.u32 4294901760, %v7804_v50 }
 0x172   :  { %5231 = vmatpush3.msra.mxu1 %v2984_v3  ;;  %v3123_v7 = vsub.f32 %v7776_v16, %v9331_v38  ;;  %v3011_v30 = vsub.f32 %v7743_v27, %v9332_v46  ;;  %5206 = vmatpush3.msra.mxu0 %v7764_v13  ;;  %v3117_v3 = vand.u32 4294901760, %v3116_v42  ;;  %v9333_v19 = vand.u32 4294901760, %v7792_v20 }
 0x173   :  { %5232 = vmatprep.subr.mxu1 %v3103_v63  ;;  %5207 = vmatprep.subr.mxu0 %v7770_v40  ;;  %v3005_v63 = vand.u32 4294901760, %v3004_v5  ;;  %v9334_v56 = vand.u32 4294901760, %v7796_v25  ;;  %v3137_v42 = vsub.f32 %v7811_v26, %v8875_v11  ;;  %v9352_v11 = vld [vmem:[#allocation16_spill] sm:$0xff] }
 0x174   :  { %5233 = vmatpush3.msra.mxu1 %v2991_v1  ;;  %v3130_v38 = vsub.f32 %v7792_v20, %v9333_v19  ;;  %5208 = vmatpush3.msra.mxu0 %v7772_v36  ;;  %v3124_v46 = vand.u32 4294901760, %v3123_v7  ;;  %v3012_v1 = vand.u32 4294901760, %v3011_v30  ;;  %v9336_v30 = vld [vmem:[#allocation30_spill] sm:$0xff]  ;;  %v9338_v19 = vld [vmem:[#allocation17_spill] sm:$0xff] }
 0x175   :  { %5234 = vmatprep.subr.mxu1 %v3110_v12  ;;  %v3018_v33 = vsub.f32 %v7796_v25, %v9334_v56  ;;  %2905 = vmatprep.mubr.f32.mxu0 %v2904_v60  ;;  %v3025_v12 = vsub.f32 %v7804_v50, %v8874_v47  ;;  %v3138_v7 = vand.u32 4294901760, %v3137_v42  ;;  %v9341_v56 = vld [vmem:[#allocation25_spill] sm:$0xff]  ;;  %v9344_v42 = vld [vmem:[#allocation22_spill] sm:$0xff]  ;;  %v9351_v47 = vld [vmem:[#allocation15_spill] sm:$0xff] }
 0x176   :  { %5235 = vmatpush3.msra.mxu1 %v2998_v55  ;;  %2911 = vmatmul.mubr.f32.vlgmr.msra.gmra.mxu0 %v2910_v18  ;;  %v3131_v5 = vand.u32 4294901760, %v3130_v38  ;;  %v9335_v18 = vld [vmem:[#allocation36_spill] sm:$0xff]  ;;  %v9339_v38 = vld [vmem:[#allocation19_spill] sm:$0xff] }
 0x177   :  { %5236 = vmatprep.subr.mxu1 %v3117_v3  ;;  %5247 = vmatprep.subr.mxu0 %v7419_v14  ;;  %v3019_v60 = vand.u32 4294901760, %v3018_v33  ;;  %v3026_v55 = vand.u32 4294901760, %v3025_v12  ;;  %v9337_v3 = vld [vmem:[#allocation12_spill] sm:$0xff]  ;;  %v9342_v33 = vld [vmem:[#allocation38_spill] sm:$0xff] }
 0x178   :  { %5237 = vmatpush3.msra.mxu1 %v3005_v63  ;;  %5248 = vmatpush3.msra.mxu0 %v7425_v44  ;;  %v9340_v63 = vld [vmem:[#allocation14_spill] sm:$0xff] }
 0x179   :  { %5238 = vmatprep.subr.mxu1 %v3124_v46  ;;  %5249 = vmatprep.subr.mxu0 %v7433_v48  ;;  %v9343_v46 = vld [vmem:[#allocation26_spill] sm:$0xff] }
 0x17a   :  { %5239 = vmatpush3.msra.mxu1 %v3012_v1  ;;  %5250 = vmatpush3.msra.mxu0 %v7446_v31  ;;  %v9345_v1 = vld [vmem:[#allocation11_spill] sm:$0xff]  ;;  %v9346_v12 = vld [vmem:[#allocation18_spill] sm:$0xff] }
 0x17b   :  { %5240 = vmatprep.subr.mxu1 %v3131_v5  ;;  %5251 = vmatprep.subr.mxu0 %v7450_v2  ;;  %v9347_v5 = vld [vmem:[#allocation28_spill] sm:$0xff] }
 0x17c   :  { %5241 = vmatpush3.msra.mxu1 %v3019_v60  ;;  %5252 = vmatpush3.msra.mxu0 %v7462_v49  ;;  %v9348_v60 = vld [vmem:[#allocation33_spill] sm:$0xff] }
 0x17d   :  { %5242 = vmatprep.subr.mxu1 %v3138_v7  ;;  %5253 = vmatprep.subr.mxu0 %v7478_v4  ;;  %v9349_v7 = vld [vmem:[#allocation13_spill] sm:$0xff] }
 0x17e   :  { %5243 = vmatpush3.msra.mxu1 %v3026_v55  ;;  %5254 = vmatpush3.msra.mxu0 %v7473_v24  ;;  %v9350_v55 = vld [vmem:[#allocation29_spill] sm:$0xff] }
 0x17f   :  { %3143 = vmatmul.mubr.f32.vlgmr.msra.gmra.mxu1 %v7705_v28  ;;  %5255 = vmatprep.subr.mxu0 %v7501_v37  ;;  %v9353_v28 = vld [vmem:[#allocation20_spill] sm:$0xff] }
 0x180   :  { %5282 = vmatprep.subr.mxu1 %v7396_v61  ;;  %5256 = vmatpush3.msra.mxu0 %v7507_v45 }
 0x181   :  { %5283 = vmatpush3.msra.mxu1 %v7401_v43  ;;  %5257 = vmatprep.subr.mxu0 %v7526_v41 }
 0x182   :  { %5284 = vmatprep.subr.mxu1 %v7406_v57  ;;  %5258 = vmatpush3.msra.mxu0 %v7515_v22 }
 0x183   :  { %5285 = vmatpush3.msra.mxu1 %v7414_v8  ;;  %5259 = vmatprep.subr.mxu0 %v7542_v15 }
 0x184   :  { %5286 = vmatprep.subr.mxu1 %v9335_v18  ;;  %5260 = vmatpush3.msra.mxu0 %v9336_v30 }
 0x185   :  { %5287 = vmatpush3.msra.mxu1 %v9337_v3  ;;  %5261 = vmatprep.subr.mxu0 %v9338_v19 }
 0x186   :  { %5288 = vmatprep.subr.mxu1 %v9339_v38  ;;  %5262 = vmatpush3.msra.mxu0 %v9340_v63 }
 0x187   :  { %5289 = vmatpush3.msra.mxu1 %v9341_v56  ;;  %5263 = vmatprep.subr.mxu0 %v9342_v33 }
 0x188   :  { %5290 = vmatprep.subr.mxu1 %v9343_v46  ;;  %5264 = vmatpush3.msra.mxu0 %v7643_v54 }
 0x189   :  { %5291 = vmatpush3.msra.mxu1 %v9344_v42  ;;  %5265 = vmatprep.subr.mxu0 %v7679_v6 }
 0x18a   :  { %5292 = vmatprep.subr.mxu1 %v9345_v1  ;;  %5266 = vmatpush3.msra.mxu0 %v7652_v10 }
 0x18b   :  { %5293 = vmatpush3.msra.mxu1 %v9346_v12  ;;  %5267 = vmatprep.subr.mxu0 %v7703_v59 }
 0x18c   :  { %5294 = vmatprep.subr.mxu1 %v9347_v5  ;;  %5268 = vmatpush3.msra.mxu0 %v7675_v53 }
 0x18d   :  { %5295 = vmatpush3.msra.mxu1 %v9348_v60  ;;  %5269 = vmatprep.subr.mxu0 %v7725_v58 }
 0x18e   :  { %5296 = vmatprep.subr.mxu1 %v9349_v7  ;;  %5270 = vmatpush3.msra.mxu0 %v7710_v51  ;;  %v9355_v51 = vld [vmem:[#allocation32_spill] sm:$0xff] }
 0x18f   :  { %5297 = vmatpush3.msra.mxu1 %v9350_v55  ;;  %5271 = vmatprep.subr.mxu0 %v7757_v17 }
 0x190   :  { %5298 = vmatprep.subr.mxu1 %v9351_v47  ;;  %5272 = vmatpush3.msra.mxu0 %v7733_v32 }
 0x191   :  { %5299 = vmatpush3.msra.mxu1 %v9352_v11  ;;  %5273 = vmatprep.subr.mxu0 %v7776_v16 }
 0x192   :  { %5300 = vmatprep.subr.mxu1 %v9353_v28  ;;  %5274 = vmatpush3.msra.mxu0 %v7743_v27 }
 0x193   :  { %5301 = vmatpush3.msra.mxu1 %v9354_v34  ;;  %5275 = vmatprep.subr.mxu0 %v7792_v20 }
 0x194   :  { %5302 = vmatprep.subr.mxu1 %v9355_v51  ;;  %5276 = vmatpush3.msra.mxu0 %v7796_v25  ;;  %v9356_v51 = vand.u32 4294901760, %v7419_v14  ;;  %v9361_v14 = vand.u32 4294901760, %v7450_v2  ;;  %v9366_v2 = vand.u32 4294901760, %v7747_v0 }
 0x195   :  { %5303 = vmatpush3.msra.mxu1 %v7634_v29  ;;  %5277 = vmatprep.subr.mxu0 %v7811_v26  ;;  %v9357_v29 = vand.u32 4294901760, %v7425_v44  ;;  %v9358_v26 = vld [vmem:[#allocation23_spill] sm:$0xff]  ;;  %v9362_v44 = vand.u32 4294901760, %v7462_v49  ;;  %v9368_v49 = vand.u32 4294901760, %v7507_v45  ;;  %v9373_v45 = vand.u32 4294901760, %v9338_v19 }
 0x196   :  { %5304 = vmatprep.subr.mxu1 %v7666_v52  ;;  %5278 = vmatpush3.msra.mxu0 %v7804_v50  ;;  %v9359_v50 = vand.u32 4294901760, %v7433_v48  ;;  %v9363_v48 = vand.u32 4294901760, %v7478_v4  ;;  %v9369_v4 = vand.u32 4294901760, %v7526_v41 }
 0x197   :  { %3278 = vmatprep.mubr.f32.mxu0 %v7736_v39  ;;  %5305 = vmatpush3.msra.mxu1 %v7668_v62  ;;  %v9360_v62 = vand.u32 4294901760, %v7446_v31  ;;  %v9364_v31 = vand.u32 4294901760, %v7736_v39  ;;  %v210_v39 = vld [vmem:[#allocation5 + $0x4f8] sm:$0xff] }
 0x198   :  { %3281 = vmatmul.mubr.f32.vlgmr.msra.gmra.mxu0 %v7747_v0  ;;  %5306 = vmatprep.subr.mxu1 %v7712_v35  ;;  %v193_v0 = vld [vmem:[#allocation5 + $0x470] sm:$0xff] }
 0x199   :  { %5317 = vmatprep.subr.mxu0 %v9356_v51  ;;  %5307 = vmatpush3.msra.mxu1 %v7692_v23  ;;  %v9365_v51 = vand.u32 4294901760, %v7473_v24  ;;  %v9370_v24 = vand.u32 4294901760, %v7515_v22  ;;  %v9375_v22 = vand.u32 4294901760, %v9342_v33  ;;  %v191_v33 = vld [vmem:[#allocation5 + $0x460] sm:$0xff] }
 0x19a   :  { %5318 = vmatpush3.msra.mxu0 %v9357_v29  ;;  %5308 = vmatprep.subr.mxu1 %v9358_v26  ;;  %v9367_v29 = vand.u32 4294901760, %v7501_v37  ;;  %v9371_v37 = vand.u32 4294901760, %v7542_v15  ;;  %v209_v15 = vld [vmem:[#allocation5 + $0x4f0] sm:$0xff] }
 0x19b   :  { %5319 = vmatprep.subr.mxu0 %v9359_v50  ;;  %5309 = vmatpush3.msra.mxu1 %v7700_v9  ;;  %v9377_v50 = vand.u32 4294901760, %v7679_v6  ;;  %v7987_v19 = vand.u32 4294901760, %v209_v15 }
 0x19c   :  { %5320 = vmatpush3.msra.mxu0 %v9360_v62  ;;  %5310 = vmatprep.subr.mxu1 %v7753_v21  ;;  %v9376_v62 = vand.u32 4294901760, %v7643_v54  ;;  %v192_v54 = vld [vmem:[#allocation5 + $0x468] sm:$0xff] }
 0x19d   :  { %5321 = vmatprep.subr.mxu0 %v9361_v14  ;;  %5311 = vmatpush3.msra.mxu1 %v7764_v13  ;;  %v190_v14 = vld [vmem:[#allocation5 + $0x458] sm:$0xff] }
 0x19e   :  { %5322 = vmatpush3.msra.mxu0 %v9362_v44  ;;  %5312 = vmatprep.subr.mxu1 %v7770_v40  ;;  %v9384_v44 = vld [vmem:[#allocation35_spill] sm:$0xff] }
 0x19f   :  { %5323 = vmatprep.subr.mxu0 %v9363_v48  ;;  %5313 = vmatpush3.msra.mxu1 %v7772_v36  ;;  %v205_v48 = vld [vmem:[#allocation5 + $0x4d0] sm:$0xff] }
 0x1a0   :  { %3385 = vmatprep.mubr.f32.mxu1 %v9364_v31  ;;  %5324 = vmatpush3.msra.mxu0 %v9365_v51 }
 0x1a1   :  { %3389 = vmatmul.mubr.f32.vlgmr.msra.gmra.mxu1 %v9366_v2  ;;  %5325 = vmatprep.subr.mxu0 %v9367_v29  ;;  %v8030_v29 = vand.u32 4294901760, %v190_v14 }
 0x1a2   :  { %5352 = vmatprep.subr.mxu1 %v7396_v61  ;;  %5326 = vmatpush3.msra.mxu0 %v9368_v49  ;;  %v9372_v61 = vand.u32 4294901760, %v9336_v30  ;;  %v189_v49 = vld [vmem:[#allocation5 + $0x450] sm:$0xff] }
 0x1a3   :  { %5353 = vmatpush3.msra.mxu1 %v7401_v43  ;;  %5327 = vmatprep.subr.mxu0 %v9369_v4  ;;  %v194_v43 = vld [vmem:[#allocation5 + $0x478] sm:$0xff]  ;;  %9390 = vst [vmem:[#allocation19_spill] sm:$0xff] %v8030_v29 }
 0x1a4   :  { %5354 = vmatprep.subr.mxu1 %v7406_v57  ;;  %5328 = vmatpush3.msra.mxu0 %v9370_v24  ;;  %v7965_v57 = vand.u32 4294901760, %v210_v39  ;;  %v7973_v41 = vand.u32 4294901760, %v194_v43 }
 0x1a5   :  { %5355 = vmatpush3.msra.mxu1 %v7414_v8  ;;  %5329 = vmatprep.subr.mxu0 %v9371_v37  ;;  %v9374_v8 = vand.u32 4294901760, %v9340_v63  ;;  %v9379_v63 = vand.u32 4294901760, %v7703_v59  ;;  %v8005_v59 = vand.u32 4294901760, %v192_v54  ;;  %v9394_v37 = vand.u32 4294901760, %v7792_v20  ;;  %v9398_v20 = vld [vmem:[#allocation27_spill] sm:$0xff] }
 0x1a6   :  { %5356 = vmatprep.subr.mxu1 %v9335_v18  ;;  %5330 = vmatpush3.msra.mxu0 %v9372_v61  ;;  %v208_v18 = vld [vmem:[#allocation5 + $0x4e8] sm:$0xff]  ;;  %v7982_v30 = vsub.f32 %v210_v39, %v7965_v57  ;;  %v7993_v6 = vsub.f32 %v194_v43, %v7973_v41  ;;  %v9393_v39 = vand.u32 4294901760, %v7743_v27  ;;  %v9395_v61 = vld [vmem:[#allocation32_spill] sm:$0xff] }
 0x1a7   :  { %5357 = vmatpush3.msra.mxu1 %v9337_v3  ;;  %5331 = vmatprep.subr.mxu0 %v9373_v45  ;;  %v9378_v3 = vand.u32 4294901760, %v7652_v10  ;;  %v9380_v10 = vand.u32 4294901760, %v7675_v53  ;;  %9382 = vst [vmem:[#allocation36_spill] sm:$0xff] %v8005_v59  ;;  %v9385_v53 = vand.u32 4294901760, %v9384_v44  ;;  %v8039_v4 = vsub.f32 %v192_v54, %v8005_v59 }
 0x1a8   :  { %5358 = vmatprep.subr.mxu1 %v9339_v38  ;;  %5332 = vmatpush3.msra.mxu0 %v9374_v8  ;;  %v207_v38 = vld [vmem:[#allocation5 + $0x4e0] sm:$0xff]  ;;  %v8892_v2 = vand.u32 4294901760, %v7993_v6  ;;  %v8066_v45 = vand.u32 4294901760, %v189_v49  ;;  %v188_v8 = vld [vmem:[#allocation5 + $0x448] sm:$0xff] }
 0x1a9   :  { %5359 = vmatpush3.msra.mxu1 %v9341_v56  ;;  %5333 = vmatprep.subr.mxu0 %v9375_v22  ;;  %v7995_v56 = vand.u32 4294901760, %v193_v0  ;;  %v8886_v54 = vand.u32 4294901760, %v8039_v4  ;;  %v8098_v44 = vand.u32 4294901760, %v188_v8 }
 0x1aa   :  { %5360 = vmatprep.subr.mxu1 %v9343_v46  ;;  %5334 = vmatpush3.msra.mxu0 %v9376_v62  ;;  %v8000_v46 = vand.u32 4294901760, %v208_v18  ;;  %v8064_v43 = vsub.f32 %v7993_v6, %v8892_v2  ;;  %9396 = vst [vmem:[#allocation25_spill] sm:$0xff] %v8066_v45  ;;  %v8076_v62 = vsub.f32 %v190_v14, %v8030_v29  ;;  %v184_v2 = vld [vmem:[#allocation5 + $0x428] sm:$0xff] }
 0x1ab   :  { %5361 = vmatpush3.msra.mxu1 %v9344_v42  ;;  %5335 = vmatprep.subr.mxu0 %v9377_v50  ;;  %v206_v42 = vld [vmem:[#allocation5 + $0x4d8] sm:$0xff]  ;;  %v8022_v31 = vsub.f32 %v193_v0, %v7995_v56  ;;  %v9399_v50 = vld [vmem:[#allocation39_spill] sm:$0xff]  ;;  %9405 = vst [vmem:[#allocation26_spill] sm:$0xff] %v8098_v44 }
 0x1ac   :  { %5362 = vmatprep.subr.mxu1 %v9345_v1  ;;  %5336 = vmatpush3.msra.mxu0 %v9378_v3  ;;  %v9381_v1 = vand.u32 4294901760, %v7725_v58  ;;  %v8016_v58 = vsub.f32 %v209_v15, %v7987_v19  ;;  %v8024_v51 = vand.u32 4294901760, %v206_v42  ;;  %v9397_v15 = vand.u32 4294901760, %v7796_v25 }
 0x1ad   :  { %5363 = vmatpush3.msra.mxu1 %v9346_v12  ;;  %5337 = vmatprep.subr.mxu0 %v9379_v63  ;;  %v8007_v12 = vand.u32 4294901760, %v207_v38  ;;  %v8888_v27 = vand.u32 4294901760, %v8022_v31  ;;  %v187_v63 = vld [vmem:[#allocation5 + $0x440] sm:$0xff] }
 0x1ae   :  { %5364 = vmatprep.subr.mxu1 %v9347_v5  ;;  %5338 = vmatpush3.msra.mxu0 %v9380_v10  ;;  %v8894_v5 = vand.u32 4294901760, %v7982_v30  ;;  %9388 = vst [vmem:[#allocation17_spill] sm:$0xff] %v8024_v51  ;;  %v8070_v22 = vsub.f32 %v206_v42, %v8024_v51  ;;  %v9401_v10 = vld [vmem:[#allocation24_spill] sm:$0xff] }
 0x1af   :  { %5365 = vmatpush3.msra.mxu1 %v9348_v60  ;;  %5339 = vmatprep.subr.mxu0 %v9381_v1  ;;  %9383 = vst [vmem:[#allocation30_spill] sm:$0xff] %v8007_v12  ;;  %v8013_v60 = vand.u32 4294901760, %v191_v33  ;;  %v8049_v24 = vsub.f32 %v207_v38, %v8007_v12  ;;  %v203_v38 = vld [vmem:[#allocation5 + $0x4c0] sm:$0xff]  ;;  %v9402_v42 = vand.u32 4294901760, %v9401_v10  ;;  %v9403_v1 = vld [vmem:[#allocation37_spill] sm:$0xff] }
 0x1b0   :  { %5366 = vmatprep.subr.mxu1 %v9349_v7  ;;  %5340 = vmatpush3.msra.mxu0 %v9385_v53  ;;  %v9387_v7 = vand.u32 4294901760, %v7757_v17  ;;  %v8033_v17 = vsub.f32 %v208_v18, %v8000_v46  ;;  %v9400_v18 = vand.u32 4294901760, %v9399_v50  ;;  %v186_v50 = vld [vmem:[#allocation5 + $0x438] sm:$0xff] }
 0x1b1   :  { %5367 = vmatpush3.msra.mxu1 %v9350_v55  ;;  %9386 = vst [vmem:[#allocation12_spill] sm:$0xff] %v8013_v60  ;;  %v9389_v55 = vand.u32 4294901760, %v7733_v32  ;;  %v8044_v32 = vsub.f32 %v7982_v30, %v8894_v5  ;;  %v8887_v25 = vand.u32 4294901760, %v8049_v24  ;;  %3555 = vmatprep.mubr.f32.mxu0 %v9403_v1  ;;  %v182_v5 = vld [vmem:[#allocation5 + $0x418] sm:$0xff] }
 0x1b2   :  { %5341 = vmatprep.subr.mxu0 %v9387_v7  ;;  %5368 = vmatprep.subr.mxu1 %v9351_v47  ;;  %v9391_v47 = vand.u32 4294901760, %v7776_v16  ;;  %v8891_v16 = vand.u32 4294901760, %v8016_v58  ;;  %v8885_v0 = vand.u32 4294901760, %v8033_v17  ;;  %v202_v7 = vld [vmem:[#allocation5 + $0x4b8] sm:$0xff] }
 0x1b3   :  { %5342 = vmatpush3.msra.mxu0 %v9389_v55  ;;  %5369 = vmatpush3.msra.mxu1 %v9352_v11  ;;  %v8046_v11 = vand.u32 4294901760, %v205_v48  ;;  %v3895_v3 = vand.u32 4294901760, %v8044_v32  ;;  %v9406_v55 = vld [vmem:[#allocation31_spill] sm:$0xff]  ;;  %v8135_v10 = vsub.f32 %v8049_v24, %v8887_v25  ;;  %v185_v25 = vld [vmem:[#allocation5 + $0x430] sm:$0xff] }
 0x1b4   :  { %5343 = vmatprep.subr.mxu0 %v9391_v47  ;;  %5370 = vmatprep.subr.mxu1 %v9353_v28  ;;  %v8055_v28 = vsub.f32 %v191_v33, %v8013_v60 }
 0x1b5   :  { %9392 = vst [vmem:[#allocation14_spill] sm:$0xff] %v8046_v11  ;;  %5344 = vmatpush3.msra.mxu0 %v9393_v39  ;;  %5371 = vmatpush3.msra.mxu1 %v9354_v34  ;;  %v204_v34 = vld [vmem:[#allocation5 + $0x4c8] sm:$0xff]  ;;  %v8086_v33 = vsub.f32 %v205_v48, %v8046_v11  ;;  %v9407_v48 = vld [vmem:[#allocation34_spill] sm:$0xff]  ;;  %v8105_v39 = vsub.f32 %v189_v49, %v8066_v45  ;;  %v8122_v49 = vand.u32 4294901760, %v187_v63 }
 0x1b6   :  { %5345 = vmatprep.subr.mxu0 %v9394_v37  ;;  %5372 = vmatprep.subr.mxu1 %v9395_v61  ;;  %v8096_v14 = vand.u32 4294901760, %v204_v34  ;;  %v8889_v53 = vand.u32 4294901760, %v8055_v28  ;;  %v8110_v37 = vsub.f32 %v8022_v31, %v8888_v27  ;;  %v8890_v61 = vand.u32 4294901760, %v8070_v22 }
 0x1b7   :  { %5346 = vmatpush3.msra.mxu0 %v9397_v15  ;;  %5373 = vmatpush3.msra.mxu1 %v9398_v20  ;;  %v8118_v15 = vsub.f32 %v8033_v17, %v8885_v0  ;;  %v8120_v20 = vand.u32 4294901760, %v203_v38  ;;  %9409 = vst [vmem:[#allocation11_spill] sm:$0xff] %v8122_v49  ;;  %v8144_v0 = vsub.f32 %v188_v8, %v8098_v44 }
 0x1b8   :  { %5347 = vmatprep.subr.mxu0 %v9400_v18  ;;  %5374 = vmatprep.subr.mxu1 %v7666_v52  ;;  %v8094_v52 = vsub.f32 %v8016_v58, %v8891_v16  ;;  %9404 = vst [vmem:[#allocation38_spill] sm:$0xff] %v8096_v14  ;;  %v8893_v18 = vand.u32 4294901760, %v8076_v62  ;;  %v8152_v27 = vsub.f32 %v204_v34, %v8096_v14 }
 0x1b9   :  { %5348 = vmatpush3.msra.mxu0 %v9402_v42  ;;  %5375 = vmatpush3.msra.mxu1 %v9406_v55  ;;  %9408 = vst [vmem:[#allocation22_spill] sm:$0xff] %v8120_v20  ;;  %v8137_v42 = vand.u32 4294901760, %v202_v7  ;;  %v8895_v55 = vand.u32 4294901760, %v8086_v33  ;;  %9411 = vst [vmem:[#allocation28_spill] sm:$0xff] %v8144_v0  ;;  %v8160_v8 = vsub.f32 %v8070_v22, %v8890_v61  ;;  %v3909_v34 = vand.u32 4294901760, %v8118_v15  ;;  %v201_v61 = vld [vmem:[#allocation5 + $0x4b0] sm:$0xff] }
 0x1ba   :  { %3557 = vmatmul.mubr.f32.vlgmr.msra.gmra.mxu0 %v9407_v48  ;;  %5376 = vmatprep.subr.mxu1 %v7712_v35  ;;  %v8130_v35 = vsub.f32 %v8039_v4, %v8886_v54  ;;  %v8149_v54 = vsub.f32 %v8055_v28, %v8889_v53  ;;  %v8896_v53 = vand.u32 4294901760, %v8105_v39  ;;  %v8177_v16 = vsub.f32 %v203_v38, %v8120_v20  ;;  %v183_v38 = vld [vmem:[#allocation5 + $0x420] sm:$0xff] }
 0x1bb   :  { %5387 = vmatprep.subr.mxu0 %v7965_v57  ;;  %5377 = vmatpush3.msra.mxu1 %v7692_v23  ;;  %9410 = vst [vmem:[#allocation18_spill] sm:$0xff] %v8137_v42  ;;  %v3902_v23 = vand.u32 4294901760, %v8094_v52  ;;  %v8162_v52 = vand.u32 4294901760, %v186_v50  ;;  %v8187_v15 = vand.u32 4294901760, %v185_v25 }
 0x1bc   :  { %5388 = vmatpush3.msra.mxu0 %v7973_v41  ;;  %5378 = vmatprep.subr.mxu1 %v9358_v26  ;;  %v3790_v26 = vand.u32 4294901760, %v8110_v37  ;;  %v8174_v37 = vsub.f32 %v8076_v62, %v8893_v18  ;;  %9414 = vst [vmem:[#allocation29_spill] sm:$0xff] %v8177_v16  ;;  %v8190_v18 = vsub.f32 %v202_v7, %v8137_v42  ;;  %v199_v7 = vld [vmem:[#allocation5 + $0x4a0] sm:$0xff] }
 0x1bd   :  { %5389 = vmatprep.subr.mxu0 %v7987_v19  ;;  %5379 = vmatpush3.msra.mxu1 %v7700_v9  ;;  %9412 = vst [vmem:[#allocation33_spill] sm:$0xff] %v8162_v52  ;;  %v8169_v9 = vsub.f32 %v187_v63, %v8122_v49  ;;  %v8185_v63 = vsub.f32 %v8086_v33, %v8895_v55  ;;  %v9421_v55 = vand.u32 4294901760, %v8152_v27 }
 0x1be   :  { %5390 = vmatpush3.msra.mxu0 %v7995_v56  ;;  %5380 = vmatprep.subr.mxu1 %v7753_v21  ;;  %v3797_v21 = vand.u32 4294901760, %v8130_v35  ;;  %9415 = vst [vmem:[#allocation15_spill] sm:$0xff] %v8190_v18  ;;  %v200_v35 = vld [vmem:[#allocation5 + $0x4a8] sm:$0xff]  ;;  %v8202_v47 = vsub.f32 %v186_v50, %v8162_v52  ;;  %v9420_v50 = vand.u32 4294901760, %v8064_v43 }
 0x1bf   :  { %5391 = vmatprep.subr.mxu0 %v8000_v46  ;;  %9413 = vst [vmem:[#allocation13_spill] sm:$0xff] %v8169_v9  ;;  %5381 = vmatpush3.msra.mxu1 %v7764_v13  ;;  %v3916_v13 = vand.u32 4294901760, %v8135_v10  ;;  %v8209_v10 = vsub.f32 %v8105_v39, %v8896_v53  ;;  %v8234_v32 = vsub.f32 %v8152_v27, %v9421_v55  ;;  %v8241_v53 = vand.u32 4294901760, %v183_v38 }
 0x1c0   :  { %5392 = vmatpush3.msra.mxu0 %v8005_v59  ;;  %5382 = vmatprep.subr.mxu1 %v7770_v40  ;;  %9416 = vst [vmem:[#allocation16_spill] sm:$0xff] %v8202_v47  ;;  %v8204_v40 = vand.u32 4294901760, %v201_v61  ;;  %v49_v59 = vld [vmem:[#allocation2 + $0x40] sm:$0xff] }
 0x1c1   :  { %5393 = vmatprep.subr.mxu0 %v8007_v12  ;;  %5383 = vmatpush3.msra.mxu1 %v7772_v36  ;;  %v50_v12 = vld [vmem:[#allocation2 + $0x48] sm:$0xff]  ;;  %9423 = vst [vmem:[#allocation35_spill] sm:$0xff] %v8241_v53  ;;  %v8243_v36 = vand.u32 4294901760, %v182_v5  ;;  %v3818_v43 = vand.u32 4294901760, %v8209_v10 }
 0x1c2   :  { %3659 = vmatprep.mubr.f32.mxu1 %v9403_v1  ;;  %9417 = vst [vmem:[#allocation20_spill] sm:$0xff] %v8204_v40  ;;  %5394 = vmatpush3.msra.mxu0 %v8013_v60  ;;  %v8214_v1 = vand.u32 4294901760, %v184_v2  ;;  %v8223_v60 = vsub.f32 %v185_v25, %v8187_v15  ;;  %v8267_v55 = vand.u32 4294901760, %v50_v12 }
 0x1c3   :  { %3661 = vmatmul.mubr.f32.vlgmr.msra.gmra.mxu1 %v9407_v48  ;;  %5395 = vmatprep.subr.mxu0 %v8024_v51  ;;  %v8225_v48 = vand.u32 4294901760, %v200_v35  ;;  %v198_v51 = vld [vmem:[#allocation5 + $0x498] sm:$0xff] }
 0x1c4   :  { %9418 = vst [vmem:[#allocation21_spill] sm:$0xff] %v8214_v1  ;;  %5422 = vmatprep.subr.mxu1 %v3895_v3  ;;  %5396 = vmatpush3.msra.mxu0 %v8030_v29  ;;  %v9422_v3 = vand.u32 4294901760, %v8144_v0  ;;  %v8251_v29 = vsub.f32 %v201_v61, %v8204_v40  ;;  %9426 = vst [vmem:[#allocation32_spill] sm:$0xff] %v8267_v55  ;;  %v8270_v61 = vand.u32 4294901760, %v198_v51 }
 0x1c5   :  { %9419 = vst [vmem:[#allocation23_spill] sm:$0xff] %v8225_v48  ;;  %5423 = vmatpush3.msra.mxu1 %v9420_v50  ;;  %5397 = vmatprep.subr.mxu0 %v8046_v11  ;;  %v8247_v50 = vand.u32 4294901760, %v199_v7 }
 0x1c6   :  { %v8239_v25 = vsub.f32 %v8144_v0, %v9422_v3  ;;  %5424 = vmatprep.subr.mxu1 %v3902_v23  ;;  %5398 = vmatpush3.msra.mxu0 %v8066_v45  ;;  %v8255_v3 = vsub.f32 %v184_v2, %v8214_v1  ;;  %v9424_v0 = vand.u32 4294901760, %v8177_v16  ;;  %v9425_v23 = vand.u32 4294901760, %v8169_v9  ;;  %v197_v45 = vld [vmem:[#allocation5 + $0x490] sm:$0xff] }
 0x1c7   :  { %5425 = vmatpush3.msra.mxu1 %v3790_v26  ;;  %5399 = vmatprep.subr.mxu0 %v8096_v14  ;;  %v9427_v2 = vand.u32 4294901760, %v8190_v18  ;;  %v8286_v14 = vsub.f32 %v183_v38, %v8241_v53  ;;  %v8300_v38 = vsub.f32 %v199_v7, %v8247_v50 }
 0x1c8   :  { %v8260_v11 = vsub.f32 %v8177_v16, %v9424_v0  ;;  %v8265_v10 = vsub.f32 %v8169_v9, %v9425_v23  ;;  %5426 = vmatprep.subr.mxu1 %v3909_v34  ;;  %v8278_v0 = vsub.f32 %v200_v35, %v8225_v48  ;;  %v8280_v16 = vand.u32 4294901760, %v49_v59  ;;  %5400 = vmatpush3.msra.mxu0 %v8098_v44  ;;  %v180_v44 = vld [vmem:[#allocation5 + $0x408] sm:$0xff] }
 0x1c9   :  { %v8275_v26 = vsub.f32 %v8190_v18, %v9427_v2  ;;  %5427 = vmatpush3.msra.mxu1 %v3797_v21  ;;  %v3937_v23 = vand.u32 4294901760, %v8234_v32  ;;  %v3825_v34 = vand.u32 4294901760, %v8239_v25  ;;  %v8289_v9 = vsub.f32 %v182_v5, %v8243_v36  ;;  %v181_v2 = vld [vmem:[#allocation5 + $0x410] sm:$0xff]  ;;  %5401 = vmatprep.subr.mxu0 %v8120_v20  ;;  %v196_v25 = vld [vmem:[#allocation5 + $0x488] sm:$0xff] }
 0x1ca   :  { %9428 = vst [vmem:[#allocation27_spill] sm:$0xff] %v8280_v16  ;;  %5428 = vmatprep.subr.mxu1 %v3916_v13  ;;  %v9429_v35 = vand.u32 4294901760, %v8202_v47  ;;  %5402 = vmatpush3.msra.mxu0 %v8122_v49  ;;  %v9430_v5 = vand.u32 4294901760, %v8149_v54  ;;  %v3944_v13 = vand.u32 4294901760, %v8260_v11  ;;  %v3832_v20 = vand.u32 4294901760, %v8265_v10  ;;  %v179_v11 = vld [vmem:[#allocation5 + $0x400] sm:$0xff] }
 0x1cb   :  { %v8310_v21 = vsub.f32 %v50_v12, %v8267_v55  ;;  %5403 = vmatprep.subr.mxu0 %v8137_v42  ;;  %v9432_v32 = vand.u32 4294901760, %v8160_v8  ;;  %v3951_v7 = vand.u32 4294901760, %v8275_v26  ;;  %v8316_v49 = vand.u32 4294901760, %v181_v2  ;;  %4003 = vmatprep.mubr.f32.mxu1 %v8267_v55 }
 0x1cc   :  { %v8295_v18 = vsub.f32 %v8202_v47, %v9429_v35  ;;  %5429 = vmatpush3.msra.mxu1 %v9430_v5  ;;  %v8307_v35 = vand.u32 4294901760, %v197_v45  ;;  %v195_v5 = vld [vmem:[#allocation5 + $0x480] sm:$0xff]  ;;  %v8320_v10 = vsub.f32 %v49_v59, %v8280_v16  ;;  %5404 = vmatpush3.msra.mxu0 %v8162_v52  ;;  %v9433_v12 = vand.u32 4294901760, %v8174_v37  ;;  %v9470_v55 = vld [vmem:[#allocation23_spill] sm:$0xff] }
 0x1cd   :  { %5430 = vmatprep.subr.mxu1 %v9432_v32  ;;  %v8325_v42 = vand.u32 4294901760, %v196_v25  ;;  %v8327_v8 = vand.u32 4294901760, %v180_v44  ;;  %v8331_v32 = vsub.f32 %v198_v51, %v8270_v61  ;;  %5405 = vmatprep.subr.mxu0 %v8204_v40  ;;  %v9434_v54 = vand.u32 4294901760, %v8185_v63 }
 0x1ce   :  { %9431 = vst [vmem:[#allocation39_spill] sm:$0xff] %v8307_v35  ;;  %5431 = vmatpush3.msra.mxu1 %v9433_v12  ;;  %v3839_v59 = vand.u32 4294901760, %v8295_v18  ;;  %v9435_v52 = vand.u32 4294901760, %v8251_v29  ;;  %v9436_v12 = vand.u32 4294901760, %v8223_v60  ;;  %5406 = vmatpush3.msra.mxu0 %v8187_v15  ;;  %v8345_v51 = vand.u32 4294901760, %v195_v5 }
 0x1cf   :  { %5432 = vmatprep.subr.mxu1 %v9434_v54  ;;  %v8347_v40 = vand.u32 4294901760, %v179_v11  ;;  %v8351_v18 = vsub.f32 %v197_v45, %v8307_v35  ;;  %5407 = vmatprep.subr.mxu0 %v8225_v48  ;;  %v9437_v54 = vand.u32 4294901760, %v8278_v0  ;;  %v8364_v45 = vsub.f32 %v180_v44, %v8327_v8 }
 0x1d0   :  { %v3957_v37 = vsub.f32 %v8251_v29, %v9435_v52  ;;  %v3845_v47 = vsub.f32 %v8223_v60, %v9436_v12  ;;  %5433 = vmatpush3.msra.mxu1 %v3818_v43  ;;  %v8355_v52 = vsub.f32 %v181_v2, %v8316_v49  ;;  %5408 = vmatpush3.msra.mxu0 %v8214_v1  ;;  %v9438_v63 = vand.u32 4294901760, %v8255_v3 }
 0x1d1   :  { %5434 = vmatprep.subr.mxu1 %v3937_v23  ;;  %v3964_v12 = vsub.f32 %v8278_v0, %v9437_v54  ;;  %v8371_v48 = vsub.f32 %v196_v25, %v8325_v42  ;;  %5409 = vmatprep.subr.mxu0 %v8247_v50  ;;  %v9439_v43 = vand.u32 4294901760, %v8300_v38  ;;  %v9441_v25 = vand.u32 4294901760, %v8310_v21 }
 0x1d2   :  { %5435 = vmatpush3.msra.mxu1 %v3825_v34  ;;  %v3852_v23 = vsub.f32 %v8255_v3, %v9438_v63  ;;  %v3958_v54 = vand.u32 4294901760, %v3957_v37  ;;  %v3846_v26 = vand.u32 4294901760, %v3845_v47  ;;  %5410 = vmatpush3.msra.mxu0 %v8241_v53  ;;  %v8380_v63 = vsub.f32 %v179_v11, %v8347_v40 }
 0x1d3   :  { %5436 = vmatprep.subr.mxu1 %v3944_v13  ;;  %v3971_v34 = vsub.f32 %v8300_v38, %v9439_v43  ;;  %v3765_v2 = vsub.f32 %v8310_v21, %v9441_v25  ;;  %v8387_v47 = vsub.f32 %v195_v5, %v8345_v51  ;;  %5411 = vmatprep.subr.mxu0 %v8270_v61  ;;  %v3965_v37 = vand.u32 4294901760, %v3964_v12 }
 0x1d4   :  { %5437 = vmatpush3.msra.mxu1 %v3832_v20  ;;  %9440 = vst [vmem:[#allocation24_spill] sm:$0xff] %v8380_v63  ;;  %v9443_v43 = vand.u32 4294901760, %v8286_v14  ;;  %v9444_v11 = vand.u32 4294901760, %v8320_v10  ;;  %5412 = vmatpush3.msra.mxu0 %v8243_v36  ;;  %v3853_v25 = vand.u32 4294901760, %v3852_v23  ;;  %v9445_v5 = vand.u32 4294901760, %v8331_v32 }
 0x1d5   :  { %9442 = vst [vmem:[#allocation37_spill] sm:$0xff] %v8387_v47  ;;  %5438 = vmatprep.subr.mxu1 %v3951_v7  ;;  %5413 = vmatprep.subr.mxu0 %v8307_v35  ;;  %v3972_v12 = vand.u32 4294901760, %v3971_v34  ;;  %v9447_v23 = vand.u32 4294901760, %v8351_v18  ;;  %v8942_v7 = vand.u32 4294901760, %v8387_v47  ;;  %v9448_v35 = vand.u32 4294901760, %v8355_v52 }
 0x1d6   :  { %v3859_v20 = vsub.f32 %v8286_v14, %v9443_v43  ;;  %v3771_v44 = vsub.f32 %v8320_v10, %v9444_v11  ;;  %5439 = vmatpush3.msra.mxu1 %v3839_v59  ;;  %v3978_v13 = vsub.f32 %v8331_v32, %v9445_v5  ;;  %v9446_v43 = vand.u32 4294901760, %v8289_v9  ;;  %5414 = vmatpush3.msra.mxu0 %v8316_v49 }
 0x1d7   :  { %5440 = vmatprep.subr.mxu1 %v3958_v54  ;;  %v3766_v59 = vand.u32 4294901760, %v3765_v2  ;;  %v3985_v5 = vsub.f32 %v8351_v18, %v9447_v23  ;;  %5415 = vmatprep.subr.mxu0 %v8325_v42  ;;  %v8941_v53 = vand.u32 4294901760, %v8380_v63  ;;  %v9449_v2 = vand.u32 4294901760, %v8371_v48 }
 0x1d8   :  { %v3866_v11 = vsub.f32 %v8289_v9, %v9446_v43  ;;  %5441 = vmatpush3.msra.mxu1 %v3846_v26  ;;  %v3860_v54 = vand.u32 4294901760, %v3859_v20  ;;  %v3772_v34 = vand.u32 4294901760, %v3771_v44  ;;  %v3873_v43 = vsub.f32 %v8355_v52, %v9448_v35  ;;  %5416 = vmatpush3.msra.mxu0 %v8327_v8 }
 0x1d9   :  { %5442 = vmatprep.subr.mxu1 %v3965_v37  ;;  %v3979_v26 = vand.u32 4294901760, %v3978_v13  ;;  %v3992_v23 = vsub.f32 %v8371_v48, %v9449_v2  ;;  %5417 = vmatprep.subr.mxu0 %v8345_v51  ;;  %v9450_v44 = vand.u32 4294901760, %v8364_v45  ;;  %v3986_v35 = vand.u32 4294901760, %v3985_v5  ;;  %v9454_v2 = vld [vmem:[#allocation30_spill] sm:$0xff] }
 0x1da   :  { %5443 = vmatpush3.msra.mxu1 %v3853_v25  ;;  %v3867_v37 = vand.u32 4294901760, %v3866_v11  ;;  %5418 = vmatpush3.msra.mxu0 %v8347_v40  ;;  %v3999_v13 = vsub.f32 %v8387_v47, %v8942_v7  ;;  %v3874_v25 = vand.u32 4294901760, %v3873_v43  ;;  %v9452_v43 = vld [vmem:[#allocation36_spill] sm:$0xff]  ;;  %v9468_v7 = vld [vmem:[#allocation33_spill] sm:$0xff] }
 0x1db   :  { %5444 = vmatprep.subr.mxu1 %v3972_v12  ;;  %v3880_v20 = vsub.f32 %v8364_v45, %v9450_v44  ;;  %3767 = vmatprep.mubr.f32.mxu0 %v3766_v59  ;;  %v3887_v12 = vsub.f32 %v8380_v63, %v8941_v53  ;;  %v3993_v11 = vand.u32 4294901760, %v3992_v23  ;;  %v9455_v23 = vld [vmem:[#allocation13_spill] sm:$0xff]  ;;  %v9457_v44 = vld [vmem:[#allocation15_spill] sm:$0xff]  ;;  %v9467_v53 = vld [vmem:[#allocation18_spill] sm:$0xff] }
 0x1dc   :  { %5445 = vmatpush3.msra.mxu1 %v3860_v54  ;;  %3773 = vmatmul.mubr.f32.vlgmr.msra.gmra.mxu0 %v3772_v34  ;;  %v4000_v5 = vand.u32 4294901760, %v3999_v13  ;;  %v9451_v34 = vld [vmem:[#allocation28_spill] sm:$0xff]  ;;  %v9460_v13 = vld [vmem:[#allocation19_spill] sm:$0xff] }
 0x1dd   :  { %5446 = vmatprep.subr.mxu1 %v3979_v26  ;;  %5457 = vmatprep.subr.mxu0 %v7982_v30  ;;  %v3881_v59 = vand.u32 4294901760, %v3880_v20  ;;  %v3888_v54 = vand.u32 4294901760, %v3887_v12  ;;  %v9453_v26 = vld [vmem:[#allocation29_spill] sm:$0xff] }
 0x1de   :  { %5447 = vmatpush3.msra.mxu1 %v3867_v37  ;;  %5458 = vmatpush3.msra.mxu0 %v7993_v6  ;;  %v9456_v37 = vld [vmem:[#allocation12_spill] sm:$0xff]  ;;  %v9458_v20 = vld [vmem:[#allocation17_spill] sm:$0xff] }
 0x1df   :  { %5448 = vmatprep.subr.mxu1 %v3986_v35  ;;  %5459 = vmatprep.subr.mxu0 %v8016_v58  ;;  %v9459_v35 = vld [vmem:[#allocation16_spill] sm:$0xff]  ;;  %v9462_v12 = vld [vmem:[#allocation25_spill] sm:$0xff] }
 0x1e0   :  { %5449 = vmatpush3.msra.mxu1 %v3874_v25  ;;  %5460 = vmatpush3.msra.mxu0 %v8022_v31  ;;  %v9461_v25 = vld [vmem:[#allocation14_spill] sm:$0xff] }
 0x1e1   :  { %5450 = vmatprep.subr.mxu1 %v3993_v11  ;;  %5461 = vmatprep.subr.mxu0 %v8033_v17  ;;  %v9463_v11 = vld [vmem:[#allocation38_spill] sm:$0xff] }
 0x1e2   :  { %5451 = vmatpush3.msra.mxu1 %v3881_v59  ;;  %5462 = vmatpush3.msra.mxu0 %v8039_v4  ;;  %v9464_v59 = vld [vmem:[#allocation26_spill] sm:$0xff] }
 0x1e3   :  { %5452 = vmatprep.subr.mxu1 %v4000_v5  ;;  %5463 = vmatprep.subr.mxu0 %v8049_v24  ;;  %v9465_v5 = vld [vmem:[#allocation22_spill] sm:$0xff] }
 0x1e4   :  { %5453 = vmatpush3.msra.mxu1 %v3888_v54  ;;  %5464 = vmatpush3.msra.mxu0 %v8055_v28  ;;  %v9466_v54 = vld [vmem:[#allocation11_spill] sm:$0xff] }
 0x1e5   :  { %4005 = vmatmul.mubr.f32.vlgmr.msra.gmra.mxu1 %v8280_v16  ;;  %5465 = vmatprep.subr.mxu0 %v8070_v22  ;;  %v9469_v16 = vld [vmem:[#allocation20_spill] sm:$0xff] }
 0x1e6   :  { %5492 = vmatprep.subr.mxu1 %v7965_v57  ;;  %5466 = vmatpush3.msra.mxu0 %v8076_v62 }
 0x1e7   :  { %5493 = vmatpush3.msra.mxu1 %v7973_v41  ;;  %5467 = vmatprep.subr.mxu0 %v8086_v33 }
 0x1e8   :  { %5494 = vmatprep.subr.mxu1 %v7987_v19  ;;  %5468 = vmatpush3.msra.mxu0 %v8105_v39 }
 0x1e9   :  { %5495 = vmatpush3.msra.mxu1 %v7995_v56  ;;  %5469 = vmatprep.subr.mxu0 %v8152_v27 }
 0x1ea   :  { %5496 = vmatprep.subr.mxu1 %v8000_v46  ;;  %5470 = vmatpush3.msra.mxu0 %v9451_v34 }
 0x1eb   :  { %5497 = vmatpush3.msra.mxu1 %v9452_v43  ;;  %5471 = vmatprep.subr.mxu0 %v9453_v26 }
 0x1ec   :  { %5498 = vmatprep.subr.mxu1 %v9454_v2  ;;  %5472 = vmatpush3.msra.mxu0 %v9455_v23 }
 0x1ed   :  { %5499 = vmatpush3.msra.mxu1 %v9456_v37  ;;  %5473 = vmatprep.subr.mxu0 %v9457_v44 }
 0x1ee   :  { %5500 = vmatprep.subr.mxu1 %v9458_v20  ;;  %5474 = vmatpush3.msra.mxu0 %v9459_v35 }
 0x1ef   :  { %5501 = vmatpush3.msra.mxu1 %v9460_v13  ;;  %5475 = vmatprep.subr.mxu0 %v8251_v29 }
 0x1f0   :  { %5502 = vmatprep.subr.mxu1 %v9461_v25  ;;  %5476 = vmatpush3.msra.mxu0 %v8223_v60 }
 0x1f1   :  { %5503 = vmatpush3.msra.mxu1 %v9462_v12  ;;  %5477 = vmatprep.subr.mxu0 %v8278_v0 }
 0x1f2   :  { %5504 = vmatprep.subr.mxu1 %v9463_v11  ;;  %5478 = vmatpush3.msra.mxu0 %v8255_v3 }
 0x1f3   :  { %5505 = vmatpush3.msra.mxu1 %v9464_v59  ;;  %5479 = vmatprep.subr.mxu0 %v8300_v38 }
 0x1f4   :  { %5506 = vmatprep.subr.mxu1 %v9465_v5  ;;  %5480 = vmatpush3.msra.mxu0 %v8286_v14 }
 0x1f5   :  { %5507 = vmatpush3.msra.mxu1 %v9466_v54  ;;  %5481 = vmatprep.subr.mxu0 %v8331_v32 }
 0x1f6   :  { %5508 = vmatprep.subr.mxu1 %v9467_v53  ;;  %5482 = vmatpush3.msra.mxu0 %v8289_v9 }
 0x1f7   :  { %5509 = vmatpush3.msra.mxu1 %v9468_v7  ;;  %5483 = vmatprep.subr.mxu0 %v8351_v18 }
 0x1f8   :  { %5510 = vmatprep.subr.mxu1 %v9469_v16  ;;  %5484 = vmatpush3.msra.mxu0 %v8355_v52  ;;  %v9471_v16 = vld [vmem:[#allocation35_spill] sm:$0xff] }
 0x1f9   :  { %5511 = vmatpush3.msra.mxu1 %v8187_v15  ;;  %5485 = vmatprep.subr.mxu0 %v8371_v48 }
 0x1fa   :  { %5512 = vmatprep.subr.mxu1 %v9470_v55  ;;  %5486 = vmatpush3.msra.mxu0 %v8364_v45  ;;  %v9472_v55 = vand.u32 4294901760, %v7982_v30  ;;  %v9477_v30 = vand.u32 4294901760, %v8033_v17  ;;  %v9482_v17 = vand.u32 4294901760, %v8320_v10 }
 0x1fb   :  { %5513 = vmatpush3.msra.mxu1 %v8214_v1  ;;  %5487 = vmatprep.subr.mxu0 %v8387_v47  ;;  %v9473_v1 = vand.u32 4294901760, %v7993_v6  ;;  %v9474_v47 = vld [vmem:[#allocation39_spill] sm:$0xff]  ;;  %v9478_v6 = vand.u32 4294901760, %v8039_v4  ;;  %v9484_v4 = vand.u32 4294901760, %v8076_v62  ;;  %v9494_v62 = vand.u32 4294901760, %v8223_v60 }
 0x1fc   :  { %5514 = vmatprep.subr.mxu1 %v8247_v50  ;;  %5488 = vmatpush3.msra.mxu0 %v8380_v63  ;;  %v9475_v63 = vand.u32 4294901760, %v8016_v58  ;;  %v9479_v58 = vand.u32 4294901760, %v8049_v24  ;;  %v9485_v24 = vand.u32 4294901760, %v8086_v33  ;;  %v9495_v33 = vand.u32 4294901760, %v8278_v0 }
 0x1fd   :  { %4140 = vmatprep.mubr.f32.mxu0 %v8310_v21  ;;  %5515 = vmatpush3.msra.mxu1 %v9471_v16  ;;  %v9476_v16 = vand.u32 4294901760, %v8022_v31  ;;  %v9480_v31 = vand.u32 4294901760, %v8310_v21  ;;  %v9498_v60 = vand.u32 4294901760, %v8286_v14  ;;  %v9501_v0 = vand.u32 4294901760, %v8351_v18  ;;  %v9502_v21 = vld [vmem:[#allocation20_spill] sm:$0xff] }
 0x1fe   :  { %4143 = vmatmul.mubr.f32.vlgmr.msra.gmra.mxu0 %v8320_v10  ;;  %5516 = vmatprep.subr.mxu1 %v8270_v61  ;;  %v9503_v14 = vand.u32 4294901760, %v8355_v52  ;;  %v9505_v10 = vld [vmem:[#allocation23_spill] sm:$0xff] }
 0x1ff   :  { %5527 = vmatprep.subr.mxu0 %v9472_v55  ;;  %5517 = vmatpush3.msra.mxu1 %v8243_v36  ;;  %v9499_v55 = vand.u32 4294901760, %v8331_v32  ;;  %v9508_v32 = vld [vmem:[#allocation37_spill] sm:$0xff] }
 0x200   :  { %5528 = vmatpush3.msra.mxu0 %v9473_v1  ;;  %5518 = vmatprep.subr.mxu1 %v9474_v47  ;;  %v9483_v1 = vand.u32 4294901760, %v8070_v22  ;;  %v9487_v22 = vand.u32 4294901760, %v8152_v27  ;;  %v9493_v27 = vand.u32 4294901760, %v8251_v29  ;;  %v9497_v29 = vand.u32 4294901760, %v8300_v38 }
 0x201   :  { %5529 = vmatprep.subr.mxu0 %v9475_v63  ;;  %5519 = vmatpush3.msra.mxu1 %v8316_v49  ;;  %v9504_v38 = vand.u32 4294901760, %v8371_v48  ;;  %v9509_v18 = vand.u32 4294901760, %v9508_v32  ;;  %v9510_v63 = vld [vmem:[#allocation24_spill] sm:$0xff]  ;;  %v9514_v48 = vld [vmem:[#allocation27_spill] sm:$0xff] }
 0x202   :  { %5530 = vmatpush3.msra.mxu0 %v9476_v16  ;;  %5520 = vmatprep.subr.mxu1 %v8325_v42  ;;  %v9481_v16 = vand.u32 4294901760, %v8055_v28  ;;  %v9486_v28 = vand.u32 4294901760, %v8105_v39  ;;  %v9496_v39 = vand.u32 4294901760, %v8255_v3  ;;  %v9500_v3 = vand.u32 4294901760, %v8289_v9  ;;  %v9507_v9 = vld [vmem:[#allocation21_spill] sm:$0xff] }
 0x203   :  { %5531 = vmatprep.subr.mxu0 %v9477_v30  ;;  %5521 = vmatpush3.msra.mxu1 %v8327_v8  ;;  %v9511_v52 = vand.u32 4294901760, %v9510_v63 }
 0x204   :  { %5532 = vmatpush3.msra.mxu0 %v9478_v6  ;;  %5522 = vmatprep.subr.mxu1 %v8345_v51 }
 0x205   :  { %5533 = vmatprep.subr.mxu0 %v9479_v58  ;;  %5523 = vmatpush3.msra.mxu1 %v8347_v40 }
 0x206   :  { %4247 = vmatprep.mubr.f32.mxu1 %v9480_v31  ;;  %5534 = vmatpush3.msra.mxu0 %v9481_v16 }
 0x207   :  { %4251 = vmatmul.mubr.f32.vlgmr.msra.gmra.mxu1 %v9482_v17  ;;  %5535 = vmatprep.subr.mxu0 %v9483_v1 }
 0x208   :  { %5562 = vmatprep.subr.mxu1 %v7965_v57  ;;  %5536 = vmatpush3.msra.mxu0 %v9484_v4  ;;  %v9488_v57 = vand.u32 4294901760, %v9451_v34 }
 0x209   :  { %5563 = vmatpush3.msra.mxu1 %v7973_v41  ;;  %5537 = vmatprep.subr.mxu0 %v9485_v24  ;;  %v9489_v41 = vand.u32 4294901760, %v9453_v26 }
 0x20a   :  { %5564 = vmatprep.subr.mxu1 %v7987_v19  ;;  %5538 = vmatpush3.msra.mxu0 %v9486_v28  ;;  %v9490_v19 = vand.u32 4294901760, %v9455_v23 }
 0x20b   :  { %5565 = vmatpush3.msra.mxu1 %v7995_v56  ;;  %5539 = vmatprep.subr.mxu0 %v9487_v22  ;;  %v9491_v56 = vand.u32 4294901760, %v9457_v44 }
 0x20c   :  { %5566 = vmatprep.subr.mxu1 %v8000_v46  ;;  %5540 = vmatpush3.msra.mxu0 %v9488_v57  ;;  %v9492_v46 = vand.u32 4294901760, %v9459_v35 }
 0x20d   :  { %5567 = vmatpush3.msra.mxu1 %v9452_v43  ;;  %5541 = vmatprep.subr.mxu0 %v9489_v41 }
 0x20e   :  { %5568 = vmatprep.subr.mxu1 %v9454_v2  ;;  %5542 = vmatpush3.msra.mxu0 %v9490_v19 }
 0x20f   :  { %5569 = vmatpush3.msra.mxu1 %v9456_v37  ;;  %5543 = vmatprep.subr.mxu0 %v9491_v56 }
 0x210   :  { %5570 = vmatprep.subr.mxu1 %v9458_v20  ;;  %5544 = vmatpush3.msra.mxu0 %v9492_v46 }
 0x211   :  { %5571 = vmatpush3.msra.mxu1 %v9460_v13  ;;  %5545 = vmatprep.subr.mxu0 %v9493_v27 }
 0x212   :  { %5572 = vmatprep.subr.mxu1 %v9461_v25  ;;  %5546 = vmatpush3.msra.mxu0 %v9494_v62 }
 0x213   :  { %5573 = vmatpush3.msra.mxu1 %v9462_v12  ;;  %5547 = vmatprep.subr.mxu0 %v9495_v33 }
 0x214   :  { %5574 = vmatprep.subr.mxu1 %v9463_v11  ;;  %5548 = vmatpush3.msra.mxu0 %v9496_v39  ;;  %v4546_v11 = vld [vmem:[%s8612_s2] ss:$0 sm:$0xff]  ;;  %s5672_s2 = smov [#allocation7]  }
 0x215   :  { %5575 = vmatpush3.msra.mxu1 %v9464_v59  ;;  %5549 = vmatprep.subr.mxu0 %v9497_v29  ;;  %s4536_s24 = sshll.u32 %s5672_s2, 4  ;;  %s4537_s24 = int_to_ptr.vmem [resolvable:$true] %s4536_s24 }
 0x216   :  { %5576 = vmatprep.subr.mxu1 %v9465_v5  ;;  %5550 = vmatpush3.msra.mxu0 %v9498_v60  ;;  %s5642_s25 = scalar_lea.vmem %s4537_s24, 128  ;;  %p5647_p11 = scmp.lt.s32.totalorder %s4537_s24, %s4537_s24 }
 0x217   :  { %5577 = vmatpush3.msra.mxu1 %v9466_v54  ;;  %5551 = vmatprep.subr.mxu0 %v9499_v55  ;;  %p5643_p10 = scmp.ne.s32.totalorder %s4537_s24, %s5642_s25  ;;  %p5648_p12 = scmp.lt.s32.totalorder %s5642_s25, %s5642_s25 }
 0x218   :  { %5578 = vmatprep.subr.mxu1 %v9467_v53  ;;  %5552 = vmatpush3.msra.mxu0 %v9500_v3  ;;  %v9506_v53 = vand.u32 4294901760, %v8364_v45  ;;  %v4614_v45 = vpop.f32.mrf.mxu1 }
 0x219   :  { %5579 = vmatpush3.msra.mxu1 %v9468_v7  ;;  %5553 = vmatprep.subr.mxu0 %v9501_v0  ;;  %v9512_v7 = vld [vmem:[#allocation32_spill] sm:$0xff]  ;;  %p5649_p13 = por %p5648_p12, %p5647_p11 }
 0x21a   :  { %5580 = vmatprep.subr.mxu1 %v9502_v21  ;;  %5554 = vmatpush3.msra.mxu0 %v9503_v14  ;;  %v4615_v43 = vpop.f32.mrf.mxu1 }
 0x21b   :  { %5581 = vmatpush3.msra.mxu1 %v8187_v15  ;;  %5555 = vmatprep.subr.mxu0 %v9504_v38  ;;  %v9513_v15 = vld [vmem:[#allocation35_spill] sm:$0xff]  ;;  %v4616_v6 = vadd.f32 %v4615_v43, %v4614_v45  ;;  %p5650_p0 = pnand %p5649_p13, %p5643_p10 }
 0x21c   :  { %5582 = vmatprep.subr.mxu1 %v9505_v10  ;;  %5556 = vmatpush3.msra.mxu0 %v9506_v53  ;;  %v4684_v26 = vpop.f32.mrf.mxu1 }
 0x21d   :  { %5583 = vmatpush3.msra.mxu1 %v9507_v9  ;;  %5557 = vmatprep.subr.mxu0 %v9509_v18 }
 0x21e   :  { %5584 = vmatprep.subr.mxu1 %v8247_v50  ;;  %5558 = vmatpush3.msra.mxu0 %v9511_v52  ;;  %v4579_v50 = vpop.f32.mrf.mxu0  ;;  %v4685_v2 = vpop.f32.mrf.mxu1 }
 0x21f   :  { %4417 = vmatprep.mubr.f32.mxu0 %v9512_v7  ;;  %5585 = vmatpush3.msra.mxu1 %v9513_v15  ;;  %v4686_v4 = vadd.f32 %v4685_v2, %v4684_v26 }
 0x220   :  { %4419 = vmatmul.mubr.f32.vlgmr.msra.gmra.mxu0 %v9514_v48  ;;  %5586 = vmatprep.subr.mxu1 %v8270_v61  ;;  %v4580_v61 = vpop.f32.mrf.mxu0  ;;  %v4754_v23 = vpop.f32.mrf.mxu1 }
 0x221   :  { %4521 = vmatprep.mubr.f32.mxu1 %v9512_v7  ;;  %5587 = vmatpush3.msra.mxu1 %v8243_v36  ;;  %v4581_v12 = vadd.f32 %v4580_v61, %v4579_v50 }
 0x222   :  { %5588 = vmatprep.subr.mxu1 %v9474_v47  ;;  %v4649_v34 = vpop.f32.mrf.mxu0  ;;  %v4755_v37 = vpop.f32.mrf.mxu1 }
 0x223   :  { %5589 = vmatpush3.msra.mxu1 %v8316_v49  ;;  %v327_v30 = vadd.f32 %v4581_v12, %v4546_v11  ;;  %v4756_v19 = vadd.f32 %v4755_v37, %v4754_v23 }
 0x224   :  { %5590 = vmatprep.subr.mxu1 %v8325_v42  ;;  %v4650_v36 = vpop.f32.mrf.mxu0  ;;  %v4824_v44 = vpop.f32.mrf.mxu1 }
 0x225   :  { %5591 = vmatpush3.msra.mxu1 %v8327_v8  ;;  %v4651_v31 = vadd.f32 %v4650_v36, %v4649_v34  ;;  %v559_v1 = vadd.f32 %v4616_v6, %v327_v30 }
 0x226   :  { %5592 = vmatprep.subr.mxu1 %v8345_v51  ;;  %v4719_v47 = vpop.f32.mrf.mxu0  ;;  %v4825_v20 = vpop.f32.mrf.mxu1 }
 0x227   :  { %5593 = vmatpush3.msra.mxu1 %v8347_v40  ;;  %v697_v28 = vadd.f32 %v4651_v31, %v559_v1  ;;  %v4826_v29 = vadd.f32 %v4825_v20, %v4824_v44 }
 0x228   :  { %4523 = vmatmul.mubr.f32.vlgmr.msra.gmra.mxu1 %v9514_v48  ;;  %v4720_v49 = vpop.f32.mrf.mxu0  ;;  %v4894_v35 = vpop.f32.mrf.mxu1 }
 0x229   :  { %v4721_v22 = vadd.f32 %v4720_v49, %v4719_v47  ;;  %v805_v41 = vadd.f32 %v4686_v4, %v697_v28 }
 0x22a   :  { %v4789_v42 = vpop.f32.mrf.mxu0  ;;  %v4895_v25 = vpop.f32.mrf.mxu1 }
 0x22b   :  { %v973_v27 = vadd.f32 %v4721_v22, %v805_v41  ;;  %v4896_v38 = vadd.f32 %v4895_v25, %v4894_v35 }
 0x22c   :  { %v4790_v8 = vpop.f32.mrf.mxu0  ;;  %v4964_v5 = vpop.f32.mrf.mxu1 }
 0x22d   :  { %v4791_v62 = vadd.f32 %v4790_v8, %v4789_v42  ;;  %v1077_v39 = vadd.f32 %v4756_v19, %v973_v27 }
 0x22e   :  { %v4859_v51 = vpop.f32.mrf.mxu0  ;;  %v4965_v58 = vpop.f32.mrf.mxu1 }
 0x22f   :  { %v1189_v55 = vadd.f32 %v4791_v62, %v1077_v39  ;;  %v4966_v63 = vadd.f32 %v4965_v58, %v4964_v5 }
 0x230   :  { %v4860_v40 = vpop.f32.mrf.mxu0  ;;  %v5034_v17 = vpop.f32.mrf.mxu1 }
 0x231   :  { %v4861_v3 = vadd.f32 %v4860_v40, %v4859_v51  ;;  %v1421_v14 = vadd.f32 %v4826_v29, %v1189_v55 }
 0x232   :  { %v4929_v13 = vpop.f32.mrf.mxu0  ;;  %v5035_v57 = vpop.f32.mrf.mxu1 }
 0x233   :  { %v1559_v53 = vadd.f32 %v4861_v3, %v1421_v14  ;;  %v5036_v45 = vadd.f32 %v5035_v57, %v5034_v17 }
 0x234   :  { %v4930_v59 = vpop.f32.mrf.mxu0  ;;  %v5104_v46 = vpop.f32.mrf.mxu1 }
 0x235   :  { %v4931_v9 = vadd.f32 %v4930_v59, %v4929_v13  ;;  %v1667_v18 = vadd.f32 %v4896_v38, %v1559_v53 }
 0x236   :  { %v4999_v54 = vpop.f32.mrf.mxu0  ;;  %v5105_v60 = vpop.f32.mrf.mxu1 }
 0x237   :  { %v1835_v15 = vadd.f32 %v4931_v9, %v1667_v18  ;;  %v5106_v49 = vadd.f32 %v5105_v60, %v5104_v46 }
 0x238   :  { %v5000_v16 = vpop.f32.mrf.mxu0  ;;  %v5174_v21 = vpop.f32.mrf.mxu1 }
 0x239   :  { %v5001_v48 = vadd.f32 %v5000_v16, %v4999_v54  ;;  %v1939_v61 = vadd.f32 %v4966_v63, %v1835_v15 }
 0x23a   :  { %v5069_v24 = vpop.f32.mrf.mxu0  ;;  %v5175_v32 = vpop.f32.mrf.mxu1 }
 0x23b   :  { %v2051_v43 = vadd.f32 %v5001_v48, %v1939_v61  ;;  %v5176_v51 = vadd.f32 %v5175_v32, %v5174_v21 }
 0x23c   :  { %v5070_v56 = vpop.f32.mrf.mxu0 }
 0x23d   :  { %v5071_v36 = vadd.f32 %v5070_v56, %v5069_v24  ;;  %v2283_v2 = vadd.f32 %v5036_v45, %v2051_v43 }
 0x23e   :  { %v5139_v33 = vpop.f32.mrf.mxu0 }
 0x23f   :  { %v5244_v7 = vpop.f32.mrf.mxu1  ;;  %v2421_v42 = vadd.f32 %v5071_v36, %v2283_v2 }
 0x240   :  { %v5140_v0 = vpop.f32.mrf.mxu0 }
 0x241   :  { %v5245_v34 = vpop.f32.mrf.mxu1  ;;  %v5141_v37 = vadd.f32 %v5140_v0, %v5139_v33  ;;  %v2529_v44 = vadd.f32 %v5106_v49, %v2421_v42 }
 0x242   :  { %v5209_v10 = vpop.f32.mrf.mxu0  ;;  %v5246_v11 = vadd.f32 %v5245_v34, %v5244_v7 }
 0x243   :  { %v2697_v35 = vadd.f32 %v5141_v37, %v2529_v44 }
 0x244   :  { %v5210_v52 = vpop.f32.mrf.mxu0 }
 0x245   :  { %v5211_v13 = vadd.f32 %v5210_v52, %v5209_v10  ;;  %v2801_v12 = vadd.f32 %v5176_v51, %v2697_v35 }
 0x247   :  { %v2913_v5 = vadd.f32 %v5211_v13, %v2801_v12 }
 0x249   :  { %v3145_v58 = vadd.f32 %v5246_v11, %v2913_v5 }
 0x258   :  { %v5279_v50 = vpop.f32.mrf.mxu0 }
 0x25a   :  { %v5280_v26 = vpop.f32.mrf.mxu0 }
 0x25b   :  { %v5281_v54 = vadd.f32 %v5280_v26, %v5279_v50 }
 0x25d   :  { %v3283_v17 = vadd.f32 %v5281_v54, %v3145_v58 }
 0x261   :  { %v5314_v47 = vpop.f32.mrf.mxu1 }
 0x263   :  { %v5315_v8 = vpop.f32.mrf.mxu1 }
 0x264   :  { %v5316_v31 = vadd.f32 %v5315_v8, %v5314_v47 }
 0x266   :  { %v3391_v24 = vadd.f32 %v5316_v31, %v3283_v17 }
 0x27a   :  { %v5349_v23 = vpop.f32.mrf.mxu0 }
 0x27c   :  { %v5350_v20 = vpop.f32.mrf.mxu0 }
 0x27d   :  { %v5351_v1 = vadd.f32 %v5350_v20, %v5349_v23 }
 0x27f   :  { %v3559_v41 = vadd.f32 %v5351_v1, %v3391_v24 }
 0x283   :  { %v5384_v40 = vpop.f32.mrf.mxu1 }
 0x285   :  { %v5385_v59 = vpop.f32.mrf.mxu1 }
 0x286   :  { %v5386_v28 = vadd.f32 %v5385_v59, %v5384_v40 }
 0x288   :  { %v3663_v46 = vadd.f32 %v5386_v28, %v3559_v41 }
 0x29c   :  { %v5419_v25 = vpop.f32.mrf.mxu0 }
 0x29e   :  { %v5420_v30 = vpop.f32.mrf.mxu0 }
 0x29f   :  { %v5421_v19 = vadd.f32 %v5420_v30, %v5419_v25 }
 0x2a1   :  { %v3775_v33 = vadd.f32 %v5421_v19, %v3663_v46 }
 0x2a5   :  { %v5454_v6 = vpop.f32.mrf.mxu1 }
 0x2a7   :  { %v5455_v4 = vpop.f32.mrf.mxu1 }
 0x2a8   :  { %v5456_v27 = vadd.f32 %v5455_v4, %v5454_v6 }
 0x2aa   :  { %v4007_v60 = vadd.f32 %v5456_v27, %v3775_v33 }
 0x2be   :  { %v5489_v16 = vpop.f32.mrf.mxu0 }
 0x2c0   :  { %v5490_v22 = vpop.f32.mrf.mxu0 }
 0x2c1   :  { %v5491_v39 = vadd.f32 %v5490_v22, %v5489_v16 }
 0x2c3   :  { %v4145_v3 = vadd.f32 %v5491_v39, %v4007_v60 }
 0x2c7   :  { %v5524_v57 = vpop.f32.mrf.mxu1 }
 0x2c9   :  { %v5525_v62 = vpop.f32.mrf.mxu1 }
 0x2ca   :  { %v5526_v55 = vadd.f32 %v5525_v62, %v5524_v57 }
 0x2cc   :  { %v4253_v14 = vadd.f32 %v5526_v55, %v4145_v3 }
 0x2e0   :  { %v5559_v56 = vpop.f32.mrf.mxu0 }
 0x2e2   :  { %v5560_v29 = vpop.f32.mrf.mxu0 }
 0x2e3   :  { %v5561_v0 = vadd.f32 %v5560_v29, %v5559_v56 }
 0x2e5   :  { %v4421_v10 = vadd.f32 %v5561_v0, %v4253_v14 }
 0x2e8   :  { %v5594_v21 = vpop.f32.mrf.mxu1 }
 0x2ea   :  { %v5595_v38 = vpop.f32.mrf.mxu1 }
 0x2eb   :  { %v5596_v53 = vadd.f32 %v5595_v38, %v5594_v21 }
 0x2ed   :  { %v4525_v9 = vadd.f32 %v5596_v53, %v4421_v10 }
 0x2ef   :  { %4529 = vst.msk [vmem:[#allocation7] sm:$0xff] %vm4528_vm0, %v4525_v9 }
 0x2f0   :  { %5653 = shalt.err (!%p5650_p0)
}
 0x2f1   :  { %4539 = dma.vmem_to_hbm [thread:$0]  %s4537_s24, 128, %s8613_s3, [#allocation4]  }
 0x2f2   :  { %5666 = dma.done.wait [#allocation4], 128  }
 0x2f3   :  { %5667 = vsyncadd [#allocation4], 4294967168 }
 0x2f4   :  { %4543 = vsyncpa [#allocation3], 1 }
 0x2f5   :  { %4544 = vsyncpa [#allocation6], 1 }
 0x2f6   :  { %4545 = vsyncpa [#allocation4], 1 }

</bundles_post_ra>
